<compile_context>
chip_gen: v7x
topology: tpu7x:2x2x1
jax: 0.10.0
libtpu: 0.0.40
codegen_flags: <defaults>
</compile_context>

<pallas_src>
import functools

import jax
import jax.numpy as jnp
from jax.experimental import pallas as pl
from jax.experimental.pallas import tpu as pltpu


def _relu_matmul_kernel(x_ref, w_ref, o_ref, xbf_ref):
    # x_ref:   (1, Cin, M)        pre-ReLU activations, f32 (resident across Cout tiles)
    # w_ref:   (tile_cout, Cin)   bf16 weight tile (streamed / double-buffered)
    # o_ref:   (1, tile_cout, M)  f32 output tile
    # xbf_ref: (Cin, M)           VMEM scratch holding relu(x) in bf16, computed once per image
    @pl.when(pl.program_id(1) == 0)
    def _():
        # ReLU (VPU) + bf16 cast, hoisted: runs once per image, not once per Cout tile.
        xbf_ref[...] = jnp.maximum(x_ref[0], 0.0).astype(jnp.bfloat16)

    o_ref[0] = jnp.dot(
        w_ref[...], xbf_ref[...], preferred_element_type=jnp.float32  # MXU, f32 accumulate
    ).astype(o_ref.dtype)


def prepare_weight(weight_oi11: jax.Array) -> jax.Array:
    """One-time weight prep: (Cout, Cin, 1, 1) -> (Cout, Cin), bf16.

    Do this once (e.g. at model load) and reuse the result for every call;
    doing it per call re-reads the full f32 weight from HBM.
    """
    cout, cin = weight_oi11.shape[0], weight_oi11.shape[1]
    return weight_oi11.reshape(cout, cin).astype(jnp.bfloat16)


def _default_tile_cout() -> int:
    """Per-generation Cout tile: fine tiles on v5e (overlap), coarse on v6e/v7x."""
    try:
        kind = jax.devices()[0].device_kind.lower()
    except Exception:
        return 336
    if "v5" in kind or "v4" in kind or "v3" in kind or "v2" in kind:
        return 336  # 4 steps: hide MXU compute under the nearly-balanced weight DMA
    return 672      # v6e / v7x: 2 steps, halves per-grid-step overhead


@jax.jit
def relu_conv1x1(x_nchw: jax.Array, w_mat_bf16: jax.Array) -> jax.Array:
    """x_nchw: (N, Cin, H, W); w_mat_bf16: (Cout, Cin) bf16. Returns (N, Cout, H, W) f32."""
    n, cin, h, w = x_nchw.shape
    cout = w_mat_bf16.shape[0]
    m = h * w

    tile_cout = _default_tile_cout()
    assert cout % tile_cout == 0 and tile_cout % 16 == 0

    # Free reshape only (no data-movement transpose).
    x_mat = x_nchw.reshape(n, cin, m)

    n_j = pl.cdiv(cout, tile_cout)
    out_mat = pl.pallas_call(
        _relu_matmul_kernel,
        out_shape=jax.ShapeDtypeStruct((n, cout, m), x_nchw.dtype),
        grid=(n, n_j),
        in_specs=[
            # x block index is constant across the Cout axis -> DMA'd once per image.
            pl.BlockSpec((1, cin, m), lambda b, j: (b, 0, 0)),
            # Weight tiles stream through VMEM, double-buffered against the MXU.
            pl.BlockSpec((tile_cout, cin), lambda b, j: (j, 0)),
        ],
        out_specs=pl.BlockSpec((1, tile_cout, m), lambda b, j: (b, j, 0)),
        scratch_shapes=[pltpu.VMEM((cin, m), jnp.bfloat16)],  # relu(x) in bf16, resident
        compiler_params=pltpu.CompilerParams(
            # Cout axis carries the scratch dependence (computed at j==0) -> "arbitrary".
            dimension_semantics=("parallel", "arbitrary"),
        ),
        cost_estimate=pl.CostEstimate(
            flops=2 * n * m * cin * cout,
            transcendentals=0,
            bytes_accessed=(n * cin * m * 4) + (n * cout * cin * 2) + (n * cout * m * 4),
        ),
    )(x_mat, w_mat_bf16)

    # (N, Cout, H*W) -> (N, Cout, H, W): free reshape, already NCHW.
    return out_mat.reshape(n, cout, h, w)


if __name__ == "__main__":
    key = jax.random.PRNGKey(0)
    k_x, k_w = jax.random.split(key)

    # Shapes implied by the module's forward pass (Conv2d channels are fixed at 1344).
    N, C, H, W = 1, 1344, 14, 14
    x = jax.random.normal(k_x, (N, C, H, W), dtype=jnp.float32)

    # Deterministic synthetic Conv2d weight: (Cout, Cin, 1, 1), no bias.
    fan_in = C  # 1x1 kernel
    bound = 1.0 / (fan_in ** 0.5)
    weight = jax.random.uniform(
        k_w, (C, C, 1, 1), minval=-bound, maxval=bound, dtype=jnp.float32
    )

    # One-time weight prep (outside the per-call path), then the jitted conv.
    w_bf16 = jax.block_until_ready(prepare_weight(weight))

    y = relu_conv1x1(x, w_bf16)
    jax.block_until_ready(y)

    # Reference: pure-f32 ReLU + 1x1 conv. The kernel uses bf16 operands with
    # f32 accumulation, so allow a correspondingly looser tolerance.
    x_relu = jnp.maximum(x, 0.0)
    ref = jnp.einsum("nchw,oc->nohw", x_relu, weight.reshape(C, C))
    assert y.shape == (N, C, H, W)
    assert jnp.allclose(y, ref, atol=2e-2, rtol=2e-2), float(jnp.max(jnp.abs(y - ref)))

    print("KERNEL_OK")
</pallas_src>

<mosaic_0001>
module attributes {stable_mosaic.version = 11 : i64} {
  func.func @_relu_matmul_kernel(%arg0: i32, %arg1: i32, %arg2: memref<1x1344x196xf32, #tpu.memory_space<vmem>>, %arg3: memref<672x1344xbf16, #tpu.memory_space<vmem>>, %arg4: memref<1x672x196xf32, #tpu.memory_space<vmem>>, %arg5: memref<1344x196xbf16, #tpu.memory_space<vmem>>) attributes {dimension_semantics = [#tpu.dimension_semantics<parallel>, #tpu.dimension_semantics<arbitrary>], iteration_bounds = array<i64: 1, 2>, scalar_prefetch = 0 : i64, scratch_operands = 1 : i64, tpu.core_type = #tpu.core_type<tc>, window_params = [{transform_indices = @transform_0, window_bounds = array<i64: 1, 1344, 196>}, {transform_indices = @transform_1, window_bounds = array<i64: 672, 1344>}, {transform_indices = @transform_2, window_bounds = array<i64: 1, 672, 196>}]} {
    %c0_i32 = arith.constant 0 : i32
    %0 = arith.cmpi eq, %arg1, %c0_i32 : i32
    %1 = arith.extui %0 : i1 to i32
    %c0_i32_0 = arith.constant 0 : i32
    %2 = arith.cmpi ne, %1, %c0_i32_0 : i32
    scf.if %2 {
      %c0_7 = arith.constant 0 : index
      %c0_8 = arith.constant 0 : index
      %c0_9 = arith.constant 0 : index
      %9 = vector.load %arg2[%c0_7, %c0_8, %c0_9] : memref<1x1344x196xf32, #tpu.memory_space<vmem>>, vector<1x1344x196xf32>
      %10 = vector.shape_cast %9 : vector<1x1344x196xf32> to vector<1344x196xf32>
      %cst_10 = arith.constant 0.000000e+00 : f32
      %11 = vector.broadcast %cst_10 : f32 to vector<1344x196xf32>
      %12 = arith.maximumf %10, %11 : vector<1344x196xf32>
      %13 = arith.truncf %12 : vector<1344x196xf32> to vector<1344x196xbf16>
      %c0_11 = arith.constant 0 : index
      %c0_12 = arith.constant 0 : index
      %14 = vector.load %arg5[%c0_11, %c0_12] : memref<1344x196xbf16, #tpu.memory_space<vmem>>, vector<1344x196xbf16>
      tpu.vector_store %arg5[%c0_11, %c0_12], %13 {strides = array<i32>} : memref<1344x196xbf16, #tpu.memory_space<vmem>>, vector<1344x196xbf16>,
    } else {
    }
    %c0 = arith.constant 0 : index
    %c0_1 = arith.constant 0 : index
    %3 = vector.load %arg3[%c0, %c0_1] : memref<672x1344xbf16, #tpu.memory_space<vmem>>, vector<672x1344xbf16>
    %c0_2 = arith.constant 0 : index
    %c0_3 = arith.constant 0 : index
    %4 = vector.load %arg5[%c0_2, %c0_3] : memref<1344x196xbf16, #tpu.memory_space<vmem>>, vector<1344x196xbf16>
    %cst = arith.constant dense<0.000000e+00> : vector<672x196xf32>
    %5 = tpu.matmul %3, %4, %cst {dimension_numbers = #tpu.dot_dimension_numbers<[1], [0], [0], [1], [0, 0, 1, 1], [], []>} : vector<672x1344xbf16>, vector<1344x196xbf16>, vector<672x196xf32> -> vector<672x196xf32>
    %c0_4 = arith.constant 0 : index
    %c0_5 = arith.constant 0 : index
    %c0_6 = arith.constant 0 : index
    %6 = vector.load %arg4[%c0_4, %c0_5, %c0_6] : memref<1x672x196xf32, #tpu.memory_space<vmem>>, vector<1x672x196xf32>
    %7 = vector.shape_cast %6 : vector<1x672x196xf32> to vector<672x196xf32>
    %8 = vector.shape_cast %5 : vector<672x196xf32> to vector<1x672x196xf32>
    tpu.vector_store %arg4[%c0_4, %c0_5, %c0_6], %8 {strides = array<i32>} : memref<1x672x196xf32, #tpu.memory_space<vmem>>, vector<1x672x196xf32>,
    return
  }
  func.func @transform_0(%arg0: i32, %arg1: i32) -> (i32, i32, i32) {
    %c0_i32 = arith.constant 0 : i32
    %c0_i32_0 = arith.constant 0 : i32
    %c0_i32_1 = arith.constant 0 : i32
    return %arg0, %c0_i32, %c0_i32_0 : i32, i32, i32
  }
  func.func @transform_1(%arg0: i32, %arg1: i32) -> (i32, i32) {
    %c0_i32 = arith.constant 0 : i32
    %c0_i32_0 = arith.constant 0 : i32
    return %arg1, %c0_i32 : i32, i32
  }
  func.func @transform_2(%arg0: i32, %arg1: i32) -> (i32, i32, i32) {
    %c0_i32 = arith.constant 0 : i32
    %c0_i32_0 = arith.constant 0 : i32
    return %arg0, %arg1, %c0_i32 : i32, i32, i32
  }
}

</mosaic_0001>

<bundles_post_ra>
// kernel: relu_conv1x1.1
= control target key start
LH: loop header
LB: loop body
LE: loop exit
PB: predicated region body
PF: predicated region fallthrough
CT: control target
= control target key end

     0   :  { %7 = vsyncpa [#allocation4], 0  ;;  %s11540_s0 = inlined_call_operand.vmem [shape: f32[1,1344,196], index: 0, kind: input, shape index: {}]   ;;  %s11541_s1 = inlined_call_operand.hbm [shape: bf16[1344,1344], index: 1, kind: input, shape index: {}]   ;;  %s11542_s2 = inlined_call_operand.vmem [shape: f32[1,1344,196], index: 2, kind: output, shape index: {}]  }
   0x1   :  { %9 = vsyncpa [#allocation4 + $0x1], 0  ;;  %s9526_s9 = smov 0   ;;  %s9528_s10 = smov 0  }
   0x2   :  { %s9530_s11 = smov 0   ;;  %s9532_s12 = smov 0  }
   0x3   :  { %s9534_s13 = smov 0   ;;  %s9536_s14 = smov 0  }
   0x4 LB: > { %s7334_s15 = sadd.s32 4294967295, %s9505_s14   ;;  %s24_s16 = sadd.s32 1, %s9501_s13  ;;  %s9505_s14 = sphi %s9536_s14, %s15_s14   ;;  %s9501_s13 = sphi %s9534_s13, %s11550_s13   ;;  %s9497_s12 = sphi %s9532_s12, %s11549_s12   ;;  %s9493_s11 = sphi %s9530_s11, %s11548_s11   ;;  %s9489_s10 = sphi %s9528_s10, %s11547_s10   ;;  %s9485_s9 = sphi %s9526_s9, %s11546_s9  }
   0x5   : > { %p25_p0 = scmp.ge.s32.totalorder %s24_s16, 2  ;;  %s60_s17 = sadd.s32 1, %s9493_s11 }
   0x6   : > { %p67_p1 = scmp.ne.s32.totalorder %s9493_s11, %s9489_s10  ;;  %p68_p2 = scmp.eq.s32.totalorder %s9505_s14, 0 }
   0x7   : > { %s11552_s16 = smov (%p25_p0, %s24_s16), 0  ;;  %p73_p4 = scmp.ne.s32.totalorder %s9489_s10, %s9485_s9 }
   0x8   : > { %p69_p3 = por %p68_p2, %p67_p1  ;;  %s57_s18 = ssub.s32 %s9501_s13, %s11552_s16 }
   0x9   : > { %p74_p5 = scmp.eq.s32.totalorder %s7334_s15, 0  ;;  %p58_p6 = scmp.eq.s32.totalorder %s57_s18, 0 }
   0xa   : > { %p8700_p8 = scmp.lt.s32.totalorder %s9505_s14, 2  ;;  %s133_s21 = sand.u32 1, %s9493_s11  }
   0xb   : > { %p9565_p7 = por %p74_p5, %p73_p4  ;;  %s8691_s22 = smul.u32 3696, %s133_s21 }
   0xc   : > { %s9571_s20 = scalar_select %p58_p6, %s9493_s11, %s60_s17  }
   0xd   : > { %s8701_s23 = smul.u32 59136, %s9501_s13  ;;  %p9575_p9 = pnand %p8700_p8, %p69_p3 }
   0xe   : > { %s137_s28 = scalar_lea.vmem [#allocation3], %s8691_s22  ;;  %s9587_s30 = scalar_lea.sflag [#allocation4], %s133_s21 }
   0xf   : > { %s9582_s27 = scalar_lea.hbm %s11541_s1, %s8701_s23  ;;  %s145_s29 = sshll.u32 %s137_s28, 4  ;;  %s9584_s29 = int_to_ptr.vmem [resolvable:$true] %s145_s29 }
  0x10   : > { %s9425_s3 = scalar_lea.hbm %s9582_s27, 59136  ;;  %p9427_p12 = pneg %p9575_p9 }
  0x11   : > { %p9426_p11 = scmp.ne.s32.totalorder %s9582_s27, %s9425_s3  ;;  %s9430_s6 = scalar_lea.hbm %s11541_s1, 118272 }
  0x12   : > { %p9431_p1 = scmp.lt.u32.totalorder %s9582_s27, %s11541_s1  ;;  %p9432_p2 = scmp.lt.u32.totalorder %s9430_s6, %s9425_s3 }
  0x13   : > { %p9428_p13 = pnand %p9427_p12, %p9426_p11  ;;  %p9434_p4 = scmp.lt.u32.totalorder %s9425_s3, %s9582_s27 }
  0x14   : > { %p9433_p3 = por %p9432_p2, %p9431_p1 }
  0x15   : > { %p9429_p0 = pneg %p9428_p13 }
  0x16   : > { %p9435_p5 = por %p9434_p4, %p9433_p3 }
  0x18   : > { %p9436_p6 = pnand %p9435_p5, %p9429_p0 }
  0x1a   : > { %9439 = shalt.err (!%p9436_p6)
}
  0x1b   : > { %s9440_s9 = scalar_lea.vmem %s9584_s29, 59136  ;;  %s9507_s15 = smov [#allocation3]  }
  0x1c   : > { %p9441_p8 = scmp.ne.s32.totalorder %s9584_s29, %s9440_s9  ;;  %s9445_s17 = sshll.u32 %s9507_s15, 4  ;;  %s9446_s17 = int_to_ptr.vmem [resolvable:$false] %s9445_s17 }
  0x1d   : > { %s9447_s18 = scalar_lea.vmem %s9446_s17, 118272  ;;  %p9448_p10 = scmp.lt.s32.totalorder %s9584_s29, %s9446_s17 }
  0x1e   : > { %p9443_p11 = pnand %p9441_p8, %p9427_p12  ;;  %p9449_p1 = scmp.lt.s32.totalorder %s9447_s18, %s9440_s9 }
  0x20   : > { %p9444_p13 = pneg %p9443_p11  ;;  %p9450_p2 = por %p9449_p1, %p9448_p10 }
  0x22   : > { %p9451_p3 = pnand %p9450_p2, %p9444_p13 }
  0x24   : > { %9454 = shalt.err (!%p9451_p3)
}
  0x25   : > { %s9508_s21 = smov 704   ;;  %s9509_s22 = smov 44  }
  0x26   : > { %8699 = dma.hbm_to_vmem [thread:$0]  (!%p9575_p9), %s9582_s27, 59136, %s9584_s29, %s9587_s30, %s9508_s21, %s9508_s21, %s9509_s22  }
  0x27   : > { %p153_p12 = scmp.lt.s32.totalorder %s9505_s14, 3  ;;  %p11545_p0 = scmp.ge.s32.totalorder %s9505_s14, 1 }
  0x29   : > { %p154_p4 = pnand %p11545_p0, %p153_p12 }
  0x2a   : > { %s159_s23 = sand.u32 (!%p154_p4), 1, %s9489_s10  }
  0x2b   : > { %157 = sbr.rel (%p154_p4) target bundleno = 1487 (0x5cf), region = 28  ;;  %s160_s26 = scalar_lea.sflag (!%p154_p4), [#allocation4], %s159_s23 }
  0x2c   : > { %s8693_s25 = smul.u32 (!%p154_p4), 3696, %s159_s23 }
  0x2e   : > { %s9619_s28 = scalar_lea.vmem (!%p154_p4), [#allocation3], %s8693_s25 }
  0x32   : > { %9480 = dma.done.wait (%p9565_p7), %s160_s26, 59136  }
  0x33   : > { %9482 = vsyncadd (%p9565_p7), %s160_s26, 4294908160  ;;  %s200_s3 = smul.u32 84, %s9497_s12  ;;  %p7343_p9 = scmp.ne.s32.totalorder %s9497_s12, 0 }
  0x34   : > { %v216_v0 = vld [vmem:[%s11540_s0] sm:$0xff] (!%p7343_p9)  ;;  %v218_v1 = vld [vmem:[%s11540_s0 + $0x10] sm:$0xff] (!%p7343_p9)  ;;  %v217_v2 = vld [vmem:[%s11540_s0 + $0x8] sm:$0xff] (!%p7343_p9)  ;;  %vm1057_vm0 = vcmask (!%p7343_p9), 556032  }
  0x35   : > { %p203_p10 = scmp.lt.s32.totalorder %s200_s3, 167  ;;  %215 = sbr.rel (%p7343_p9) target bundleno = 198 (0xc6), region = 36  ;;  %v552_v3 = vmax.f32 (!%p7343_p9), %v216_v0, 0.0  ;;  %v554_v4 = vmax.f32 (!%p7343_p9), %v218_v1, 0.0  ;;  %v219_v5 = vld [vmem:[%s11540_s0 + $0x18] sm:$0xff] (!%p7343_p9)  ;;  %v553_v6 = vmax.f32 (!%p7343_p9), %v217_v2, 0.0 }
  0x36   : > { %v220_v7 = vld [vmem:[%s11540_s0 + $0x20] sm:$0xff] (!%p7343_p9)  ;;  %v222_v8 = vld [vmem:[%s11540_s0 + $0x30] sm:$0xff] (!%p7343_p9)  ;;  %v555_v9 = vmax.f32 (!%p7343_p9), %v219_v5, 0.0  ;;  %v221_v12 = vld [vmem:[%s11540_s0 + $0x28] sm:$0xff] (!%p7343_p9) }
  0x37   : > { %s11554_s3 = smov (!%p203_p10, %s200_s3), 167  ;;  %v556_v10 = vmax.f32 (!%p7343_p9), %v220_v7, 0.0  ;;  %v558_v11 = vmax.f32 (!%p7343_p9), %v222_v8, 0.0  ;;  %v223_v13 = vld [vmem:[%s11540_s0 + $0x38] sm:$0xff] (!%p7343_p9)  ;;  %v224_v14 = vld [vmem:[%s11540_s0 + $0x40] sm:$0xff] (!%p7343_p9)  ;;  %v888_v15 = vpack.c.bf16 (!%p7343_p9), %v554_v4, %v552_v3  ;;  %v557_v16 = vmax.f32 (!%p7343_p9), %v221_v12, 0.0 }
  0x38   : > { %s7850_s24 = sshll.u32 %s11554_s3, 4  ;;  %v559_v17 = vmax.f32 (!%p7343_p9), %v223_v13, 0.0  ;;  %v226_v18 = vld [vmem:[%s11540_s0 + $0x50] sm:$0xff] (!%p7343_p9)  ;;  %v560_v19 = vmax.f32 (!%p7343_p9), %v224_v14, 0.0  ;;  %v225_v20 = vld [vmem:[%s11540_s0 + $0x48] sm:$0xff] (!%p7343_p9)  ;;  %v227_v21 = vld [vmem:[%s11540_s0 + $0x58] sm:$0xff] (!%p7343_p9)  ;;  %v889_v22 = vpack.c.bf16 (!%p7343_p9), %v555_v9, %v553_v6 }
  0x39   : > { %s9629_s30 = scalar_lea.vmem %s11542_s2, %s7850_s24  ;;  %v890_v23 = vpack.c.bf16 (!%p7343_p9), %v558_v11, %v556_v10  ;;  %v562_v24 = vmax.f32 (!%p7343_p9), %v226_v18, 0.0  ;;  %v561_v25 = vmax.f32 (!%p7343_p9), %v225_v20, 0.0  ;;  %v228_v26 = vld [vmem:[%s11540_s0 + $0x60] sm:$0xff] (!%p7343_p9)  ;;  %v230_v27 = vld [vmem:[%s11540_s0 + $0x70] sm:$0xff] (!%p7343_p9)  ;;  %v229_v28 = vld [vmem:[%s11540_s0 + $0x68] sm:$0xff] (!%p7343_p9)  ;;  %1056 = vst [vmem:[#allocation2] sm:$0xff] (!%p7343_p9), %v888_v15 }
  0x3a   : > { %v891_v29 = vpack.c.bf16 (!%p7343_p9), %v559_v17, %v557_v16  ;;  %v563_v30 = vmax.f32 (!%p7343_p9), %v227_v21, 0.0  ;;  %v564_v31 = vmax.f32 (!%p7343_p9), %v228_v26, 0.0  ;;  %v566_v32 = vmax.f32 (!%p7343_p9), %v230_v27, 0.0  ;;  %v231_v33 = vld [vmem:[%s11540_s0 + $0x78] sm:$0xff] (!%p7343_p9)  ;;  %v232_v34 = vld [vmem:[%s11540_s0 + $0x80] sm:$0xff] (!%p7343_p9)  ;;  %v234_v35 = vld [vmem:[%s11540_s0 + $0x90] sm:$0xff] (!%p7343_p9) }
  0x3b   : > { %1058 = vst.msk [vmem:[#allocation2 + $0x8] sm:$0xff] (!%p7343_p9), %vm1057_vm0, %v889_v22  ;;  %1059 = vst [vmem:[#allocation2 + $0x10] sm:$0xff] (!%p7343_p9), %v890_v23  ;;  %v892_v36 = vpack.c.bf16 (!%p7343_p9), %v562_v24, %v560_v19  ;;  %v565_v37 = vmax.f32 (!%p7343_p9), %v229_v28, 0.0  ;;  %v567_v38 = vmax.f32 (!%p7343_p9), %v231_v33, 0.0  ;;  %v568_v39 = vmax.f32 (!%p7343_p9), %v232_v34, 0.0  ;;  %v233_v40 = vld [vmem:[%s11540_s0 + $0x88] sm:$0xff] (!%p7343_p9) }
  0x3c   : > { %v235_v41 = vld [vmem:[%s11540_s0 + $0x98] sm:$0xff]  ;;  %v236_v42 = vld [vmem:[%s11540_s0 + $0xa0] sm:$0xff]  ;;  %1060 = vst.msk [vmem:[#allocation2 + $0x18] sm:$0xff] %vm1057_vm0, %v891_v29  ;;  %v893_v43 = vpack.c.bf16 %v563_v30, %v561_v25  ;;  %v894_v44 = vpack.c.bf16 %v566_v32, %v564_v31  ;;  %v570_v45 = vmax.f32 %v234_v35, 0.0  ;;  %v569_v46 = vmax.f32 %v233_v40, 0.0  ;;  %v238_v47 = vld [vmem:[%s11540_s0 + $0xb0] sm:$0xff] }
  0x3d   : > { %v237_v48 = vld [vmem:[%s11540_s0 + $0xa8] sm:$0xff]  ;;  %v239_v49 = vld [vmem:[%s11540_s0 + $0xb8] sm:$0xff]  ;;  %1061 = vst [vmem:[#allocation2 + $0x20] sm:$0xff] %v892_v36  ;;  %v895_v50 = vpack.c.bf16 %v567_v38, %v565_v37  ;;  %v571_v51 = vmax.f32 %v235_v41, 0.0  ;;  %v572_v52 = vmax.f32 %v236_v42, 0.0  ;;  %v574_v53 = vmax.f32 %v238_v47, 0.0 }
  0x3e   : > { %v240_v54 = vld [vmem:[%s11540_s0 + $0xc0] sm:$0xff]  ;;  %v242_v55 = vld [vmem:[%s11540_s0 + $0xd0] sm:$0xff]  ;;  %v241_v56 = vld [vmem:[%s11540_s0 + $0xc8] sm:$0xff]  ;;  %1062 = vst.msk [vmem:[#allocation2 + $0x28] sm:$0xff] %vm1057_vm0, %v893_v43  ;;  %v896_v57 = vpack.c.bf16 %v570_v45, %v568_v39  ;;  %v573_v58 = vmax.f32 %v237_v48, 0.0  ;;  %v575_v59 = vmax.f32 %v239_v49, 0.0 }
  0x3f   : > { %1063 = vst [vmem:[#allocation2 + $0x30] sm:$0xff] %v894_v44  ;;  %v576_v60 = vmax.f32 %v240_v54, 0.0  ;;  %v243_v61 = vld [vmem:[%s11540_s0 + $0xd8] sm:$0xff]  ;;  %v244_v62 = vld [vmem:[%s11540_s0 + $0xe0] sm:$0xff]  ;;  %v246_v63 = vld [vmem:[%s11540_s0 + $0xf0] sm:$0xff]  ;;  %v897_v0 = vpack.c.bf16 %v571_v51, %v569_v46  ;;  %v898_v1 = vpack.c.bf16 %v574_v53, %v572_v52  ;;  %v578_v2 = vmax.f32 %v242_v55, 0.0 }
  0x40   : > { %1064 = vst.msk [vmem:[#allocation2 + $0x38] sm:$0xff] %vm1057_vm0, %v895_v50  ;;  %v577_v3 = vmax.f32 %v241_v56, 0.0  ;;  %v245_v4 = vld [vmem:[%s11540_s0 + $0xe8] sm:$0xff]  ;;  %v247_v5 = vld [vmem:[%s11540_s0 + $0xf8] sm:$0xff]  ;;  %v248_v6 = vld [vmem:[%s11540_s0 + $0x100] sm:$0xff]  ;;  %v899_v7 = vpack.c.bf16 %v575_v59, %v573_v58  ;;  %v579_v8 = vmax.f32 %v243_v61, 0.0 }
  0x41   : > { %1065 = vst [vmem:[#allocation2 + $0x40] sm:$0xff] %v896_v57  ;;  %v580_v9 = vmax.f32 %v244_v62, 0.0  ;;  %v582_v10 = vmax.f32 %v246_v63, 0.0  ;;  %v250_v11 = vld [vmem:[%s11540_s0 + $0x110] sm:$0xff]  ;;  %v249_v12 = vld [vmem:[%s11540_s0 + $0x108] sm:$0xff]  ;;  %v251_v13 = vld [vmem:[%s11540_s0 + $0x118] sm:$0xff]  ;;  %v900_v14 = vpack.c.bf16 %v578_v2, %v576_v60 }
  0x42   : > { %1066 = vst.msk [vmem:[#allocation2 + $0x48] sm:$0xff] %vm1057_vm0, %v897_v0  ;;  %1067 = vst [vmem:[#allocation2 + $0x50] sm:$0xff] %v898_v1  ;;  %v581_v15 = vmax.f32 %v245_v4, 0.0  ;;  %v583_v16 = vmax.f32 %v247_v5, 0.0  ;;  %v584_v17 = vmax.f32 %v248_v6, 0.0  ;;  %v252_v18 = vld [vmem:[%s11540_s0 + $0x120] sm:$0xff]  ;;  %v901_v21 = vpack.c.bf16 %v579_v8, %v577_v3 }
  0x43   : > { %v254_v19 = vld [vmem:[%s11540_s0 + $0x130] sm:$0xff]  ;;  %v253_v20 = vld [vmem:[%s11540_s0 + $0x128] sm:$0xff]  ;;  %1068 = vst.msk [vmem:[#allocation2 + $0x58] sm:$0xff] %vm1057_vm0, %v899_v7  ;;  %v902_v22 = vpack.c.bf16 %v582_v10, %v580_v9  ;;  %v586_v23 = vmax.f32 %v250_v11, 0.0  ;;  %v585_v24 = vmax.f32 %v249_v12, 0.0  ;;  %v255_v25 = vld [vmem:[%s11540_s0 + $0x138] sm:$0xff] }
  0x44   : > { %v256_v26 = vld [vmem:[%s11540_s0 + $0x140] sm:$0xff]  ;;  %v258_v27 = vld [vmem:[%s11540_s0 + $0x150] sm:$0xff]  ;;  %1069 = vst [vmem:[#allocation2 + $0x60] sm:$0xff] %v900_v14  ;;  %v903_v28 = vpack.c.bf16 %v583_v16, %v581_v15  ;;  %v587_v29 = vmax.f32 %v251_v13, 0.0  ;;  %v588_v30 = vmax.f32 %v252_v18, 0.0  ;;  %v590_v31 = vmax.f32 %v254_v19, 0.0 }
  0x45   : > { %v257_v32 = vld [vmem:[%s11540_s0 + $0x148] sm:$0xff]  ;;  %v259_v33 = vld [vmem:[%s11540_s0 + $0x158] sm:$0xff]  ;;  %v260_v34 = vld [vmem:[%s11540_s0 + $0x160] sm:$0xff]  ;;  %1070 = vst.msk [vmem:[#allocation2 + $0x68] sm:$0xff] %vm1057_vm0, %v901_v21  ;;  %v904_v35 = vpack.c.bf16 %v586_v23, %v584_v17  ;;  %v589_v36 = vmax.f32 %v253_v20, 0.0  ;;  %v591_v37 = vmax.f32 %v255_v25, 0.0 }
  0x46   : > { %1071 = vst [vmem:[#allocation2 + $0x70] sm:$0xff] %v902_v22  ;;  %v592_v38 = vmax.f32 %v256_v26, 0.0  ;;  %v262_v39 = vld [vmem:[%s11540_s0 + $0x170] sm:$0xff]  ;;  %v261_v40 = vld [vmem:[%s11540_s0 + $0x168] sm:$0xff]  ;;  %v263_v41 = vld [vmem:[%s11540_s0 + $0x178] sm:$0xff]  ;;  %v905_v42 = vpack.c.bf16 %v587_v29, %v585_v24  ;;  %v906_v43 = vpack.c.bf16 %v590_v31, %v588_v30  ;;  %v594_v44 = vmax.f32 %v258_v27, 0.0 }
  0x47   : > { %1072 = vst.msk [vmem:[#allocation2 + $0x78] sm:$0xff] %vm1057_vm0, %v903_v28  ;;  %v593_v45 = vmax.f32 %v257_v32, 0.0  ;;  %v264_v46 = vld [vmem:[%s11540_s0 + $0x180] sm:$0xff]  ;;  %v266_v47 = vld [vmem:[%s11540_s0 + $0x190] sm:$0xff]  ;;  %v265_v48 = vld [vmem:[%s11540_s0 + $0x188] sm:$0xff]  ;;  %v907_v49 = vpack.c.bf16 %v591_v37, %v589_v36  ;;  %v595_v50 = vmax.f32 %v259_v33, 0.0 }
  0x48   : > { %1073 = vst [vmem:[#allocation2 + $0x80] sm:$0xff] %v904_v35  ;;  %v596_v51 = vmax.f32 %v260_v34, 0.0  ;;  %v598_v52 = vmax.f32 %v262_v39, 0.0  ;;  %v267_v53 = vld [vmem:[%s11540_s0 + $0x198] sm:$0xff]  ;;  %v268_v54 = vld [vmem:[%s11540_s0 + $0x1a0] sm:$0xff]  ;;  %v270_v55 = vld [vmem:[%s11540_s0 + $0x1b0] sm:$0xff]  ;;  %v908_v56 = vpack.c.bf16 %v594_v44, %v592_v38 }
  0x49   : > { %1074 = vst.msk [vmem:[#allocation2 + $0x88] sm:$0xff] %vm1057_vm0, %v905_v42  ;;  %1075 = vst [vmem:[#allocation2 + $0x90] sm:$0xff] %v906_v43  ;;  %v597_v57 = vmax.f32 %v261_v40, 0.0  ;;  %v599_v58 = vmax.f32 %v263_v41, 0.0  ;;  %v600_v59 = vmax.f32 %v264_v46, 0.0  ;;  %v269_v60 = vld [vmem:[%s11540_s0 + $0x1a8] sm:$0xff]  ;;  %v909_v63 = vpack.c.bf16 %v595_v50, %v593_v45 }
  0x4a   : > { %v271_v61 = vld [vmem:[%s11540_s0 + $0x1b8] sm:$0xff]  ;;  %v272_v62 = vld [vmem:[%s11540_s0 + $0x1c0] sm:$0xff]  ;;  %1076 = vst.msk [vmem:[#allocation2 + $0x98] sm:$0xff] %vm1057_vm0, %v907_v49  ;;  %v910_v0 = vpack.c.bf16 %v598_v52, %v596_v51  ;;  %v602_v1 = vmax.f32 %v266_v47, 0.0  ;;  %v601_v2 = vmax.f32 %v265_v48, 0.0  ;;  %v274_v3 = vld [vmem:[%s11540_s0 + $0x1d0] sm:$0xff] }
  0x4b   : > { %v273_v4 = vld [vmem:[%s11540_s0 + $0x1c8] sm:$0xff]  ;;  %1077 = vst [vmem:[#allocation2 + $0xa0] sm:$0xff] %v908_v56  ;;  %v911_v5 = vpack.c.bf16 %v599_v58, %v597_v57  ;;  %v603_v6 = vmax.f32 %v267_v53, 0.0  ;;  %v604_v7 = vmax.f32 %v268_v54, 0.0  ;;  %v606_v8 = vmax.f32 %v270_v55, 0.0  ;;  %v275_v9 = vld [vmem:[%s11540_s0 + $0x1d8] sm:$0xff] }
  0x4c   : > { %v276_v10 = vld [vmem:[%s11540_s0 + $0x1e0] sm:$0xff]  ;;  %v278_v11 = vld [vmem:[%s11540_s0 + $0x1f0] sm:$0xff]  ;;  %1078 = vst.msk [vmem:[#allocation2 + $0xa8] sm:$0xff] %vm1057_vm0, %v909_v63  ;;  %1079 = vst [vmem:[#allocation2 + $0xb0] sm:$0xff] %v910_v0  ;;  %v912_v12 = vpack.c.bf16 %v602_v1, %v600_v59  ;;  %v605_v13 = vmax.f32 %v269_v60, 0.0  ;;  %v607_v14 = vmax.f32 %v271_v61, 0.0 }
  0x4d   : > { %v608_v15 = vmax.f32 %v272_v62, 0.0  ;;  %v277_v16 = vld [vmem:[%s11540_s0 + $0x1e8] sm:$0xff]  ;;  %v279_v17 = vld [vmem:[%s11540_s0 + $0x1f8] sm:$0xff]  ;;  %v280_v18 = vld [vmem:[%s11540_s0 + $0x200] sm:$0xff]  ;;  %1080 = vst.msk [vmem:[#allocation2 + $0xb8] sm:$0xff] %vm1057_vm0, %v911_v5  ;;  %v913_v19 = vpack.c.bf16 %v603_v6, %v601_v2  ;;  %v914_v20 = vpack.c.bf16 %v606_v8, %v604_v7  ;;  %v610_v21 = vmax.f32 %v274_v3, 0.0 }
  0x4e   : > { %v609_v22 = vmax.f32 %v273_v4, 0.0  ;;  %v282_v23 = vld [vmem:[%s11540_s0 + $0x210] sm:$0xff]  ;;  %v281_v24 = vld [vmem:[%s11540_s0 + $0x208] sm:$0xff]  ;;  %1081 = vst [vmem:[#allocation2 + $0xc0] sm:$0xff] %v912_v12  ;;  %v915_v25 = vpack.c.bf16 %v607_v14, %v605_v13  ;;  %v611_v26 = vmax.f32 %v275_v9, 0.0  ;;  %v612_v27 = vmax.f32 %v276_v10, 0.0 }
  0x4f   : > { %v614_v28 = vmax.f32 %v278_v11, 0.0  ;;  %v283_v29 = vld [vmem:[%s11540_s0 + $0x218] sm:$0xff]  ;;  %v284_v30 = vld [vmem:[%s11540_s0 + $0x220] sm:$0xff]  ;;  %v286_v31 = vld [vmem:[%s11540_s0 + $0x230] sm:$0xff]  ;;  %1082 = vst.msk [vmem:[#allocation2 + $0xc8] sm:$0xff] %vm1057_vm0, %v913_v19  ;;  %v916_v32 = vpack.c.bf16 %v610_v21, %v608_v15  ;;  %v613_v33 = vmax.f32 %v277_v16, 0.0 }
  0x50   : > { %1083 = vst [vmem:[#allocation2 + $0xd0] sm:$0xff] %v914_v20  ;;  %v615_v34 = vmax.f32 %v279_v17, 0.0  ;;  %v616_v35 = vmax.f32 %v280_v18, 0.0  ;;  %v285_v36 = vld [vmem:[%s11540_s0 + $0x228] sm:$0xff]  ;;  %v287_v37 = vld [vmem:[%s11540_s0 + $0x238] sm:$0xff]  ;;  %v288_v38 = vld [vmem:[%s11540_s0 + $0x240] sm:$0xff]  ;;  %v917_v39 = vpack.c.bf16 %v611_v26, %v609_v22 }
  0x51   : > { %1084 = vst.msk [vmem:[#allocation2 + $0xd8] sm:$0xff] %vm1057_vm0, %v915_v25  ;;  %v918_v40 = vpack.c.bf16 %v614_v28, %v612_v27  ;;  %v618_v41 = vmax.f32 %v282_v23, 0.0  ;;  %v617_v42 = vmax.f32 %v281_v24, 0.0  ;;  %v290_v43 = vld [vmem:[%s11540_s0 + $0x250] sm:$0xff]  ;;  %v289_v44 = vld [vmem:[%s11540_s0 + $0x248] sm:$0xff]  ;;  %1085 = vst [vmem:[#allocation2 + $0xe0] sm:$0xff] %v916_v32 }
  0x52   : > { %v919_v45 = vpack.c.bf16 %v615_v34, %v613_v33  ;;  %v619_v46 = vmax.f32 %v283_v29, 0.0  ;;  %v620_v47 = vmax.f32 %v284_v30, 0.0  ;;  %v622_v48 = vmax.f32 %v286_v31, 0.0  ;;  %v291_v49 = vld [vmem:[%s11540_s0 + $0x258] sm:$0xff]  ;;  %v292_v50 = vld [vmem:[%s11540_s0 + $0x260] sm:$0xff]  ;;  %v294_v51 = vld [vmem:[%s11540_s0 + $0x270] sm:$0xff] }
  0x53   : > { %1086 = vst.msk [vmem:[#allocation2 + $0xe8] sm:$0xff] %vm1057_vm0, %v917_v39  ;;  %1087 = vst [vmem:[#allocation2 + $0xf0] sm:$0xff] %v918_v40  ;;  %v920_v52 = vpack.c.bf16 %v618_v41, %v616_v35  ;;  %v621_v53 = vmax.f32 %v285_v36, 0.0  ;;  %v623_v54 = vmax.f32 %v287_v37, 0.0  ;;  %v624_v55 = vmax.f32 %v288_v38, 0.0  ;;  %v293_v56 = vld [vmem:[%s11540_s0 + $0x268] sm:$0xff] }
  0x54   : > { %v295_v57 = vld [vmem:[%s11540_s0 + $0x278] sm:$0xff]  ;;  %v296_v58 = vld [vmem:[%s11540_s0 + $0x280] sm:$0xff]  ;;  %1088 = vst.msk [vmem:[#allocation2 + $0xf8] sm:$0xff] %vm1057_vm0, %v919_v45  ;;  %v921_v59 = vpack.c.bf16 %v619_v46, %v617_v42  ;;  %v922_v60 = vpack.c.bf16 %v622_v48, %v620_v47  ;;  %v626_v61 = vmax.f32 %v290_v43, 0.0  ;;  %v625_v62 = vmax.f32 %v289_v44, 0.0  ;;  %v298_v63 = vld [vmem:[%s11540_s0 + $0x290] sm:$0xff] }
  0x55   : > { %v297_v0 = vld [vmem:[%s11540_s0 + $0x288] sm:$0xff]  ;;  %1089 = vst [vmem:[#allocation2 + $0x100] sm:$0xff] %v920_v52  ;;  %v923_v1 = vpack.c.bf16 %v623_v54, %v621_v53  ;;  %v627_v2 = vmax.f32 %v291_v49, 0.0  ;;  %v628_v3 = vmax.f32 %v292_v50, 0.0  ;;  %v630_v4 = vmax.f32 %v294_v51, 0.0  ;;  %v299_v5 = vld [vmem:[%s11540_s0 + $0x298] sm:$0xff] }
  0x56   : > { %v300_v6 = vld [vmem:[%s11540_s0 + $0x2a0] sm:$0xff]  ;;  %v302_v7 = vld [vmem:[%s11540_s0 + $0x2b0] sm:$0xff]  ;;  %1090 = vst.msk [vmem:[#allocation2 + $0x108] sm:$0xff] %vm1057_vm0, %v921_v59  ;;  %1091 = vst [vmem:[#allocation2 + $0x110] sm:$0xff] %v922_v60  ;;  %v924_v8 = vpack.c.bf16 %v626_v61, %v624_v55  ;;  %v629_v9 = vmax.f32 %v293_v56, 0.0  ;;  %v631_v10 = vmax.f32 %v295_v57, 0.0 }
  0x57   : > { %v632_v11 = vmax.f32 %v296_v58, 0.0  ;;  %v301_v12 = vld [vmem:[%s11540_s0 + $0x2a8] sm:$0xff]  ;;  %v303_v13 = vld [vmem:[%s11540_s0 + $0x2b8] sm:$0xff]  ;;  %v304_v14 = vld [vmem:[%s11540_s0 + $0x2c0] sm:$0xff]  ;;  %1092 = vst.msk [vmem:[#allocation2 + $0x118] sm:$0xff] %vm1057_vm0, %v923_v1  ;;  %v925_v15 = vpack.c.bf16 %v627_v2, %v625_v62  ;;  %v926_v16 = vpack.c.bf16 %v630_v4, %v628_v3  ;;  %v634_v17 = vmax.f32 %v298_v63, 0.0 }
  0x58   : > { %v633_v18 = vmax.f32 %v297_v0, 0.0  ;;  %v306_v19 = vld [vmem:[%s11540_s0 + $0x2d0] sm:$0xff]  ;;  %v305_v20 = vld [vmem:[%s11540_s0 + $0x2c8] sm:$0xff]  ;;  %1093 = vst [vmem:[#allocation2 + $0x120] sm:$0xff] %v924_v8  ;;  %v927_v21 = vpack.c.bf16 %v631_v10, %v629_v9  ;;  %v635_v22 = vmax.f32 %v299_v5, 0.0  ;;  %v636_v23 = vmax.f32 %v300_v6, 0.0 }
  0x59   : > { %v638_v24 = vmax.f32 %v302_v7, 0.0  ;;  %v307_v25 = vld [vmem:[%s11540_s0 + $0x2d8] sm:$0xff]  ;;  %v308_v26 = vld [vmem:[%s11540_s0 + $0x2e0] sm:$0xff]  ;;  %v310_v27 = vld [vmem:[%s11540_s0 + $0x2f0] sm:$0xff]  ;;  %1094 = vst.msk [vmem:[#allocation2 + $0x128] sm:$0xff] %vm1057_vm0, %v925_v15  ;;  %v928_v28 = vpack.c.bf16 %v634_v17, %v632_v11  ;;  %v637_v29 = vmax.f32 %v301_v12, 0.0 }
  0x5a   : > { %1095 = vst [vmem:[#allocation2 + $0x130] sm:$0xff] %v926_v16  ;;  %v639_v30 = vmax.f32 %v303_v13, 0.0  ;;  %v640_v31 = vmax.f32 %v304_v14, 0.0  ;;  %v309_v32 = vld [vmem:[%s11540_s0 + $0x2e8] sm:$0xff]  ;;  %v311_v33 = vld [vmem:[%s11540_s0 + $0x2f8] sm:$0xff]  ;;  %v312_v34 = vld [vmem:[%s11540_s0 + $0x300] sm:$0xff]  ;;  %v929_v35 = vpack.c.bf16 %v635_v22, %v633_v18 }
  0x5b   : > { %1096 = vst.msk [vmem:[#allocation2 + $0x138] sm:$0xff] %vm1057_vm0, %v927_v21  ;;  %v930_v36 = vpack.c.bf16 %v638_v24, %v636_v23  ;;  %v642_v37 = vmax.f32 %v306_v19, 0.0  ;;  %v641_v38 = vmax.f32 %v305_v20, 0.0  ;;  %v314_v39 = vld [vmem:[%s11540_s0 + $0x310] sm:$0xff]  ;;  %v313_v40 = vld [vmem:[%s11540_s0 + $0x308] sm:$0xff]  ;;  %1097 = vst [vmem:[#allocation2 + $0x140] sm:$0xff] %v928_v28 }
  0x5c   : > { %v931_v41 = vpack.c.bf16 %v639_v30, %v637_v29  ;;  %v643_v42 = vmax.f32 %v307_v25, 0.0  ;;  %v644_v43 = vmax.f32 %v308_v26, 0.0  ;;  %v646_v44 = vmax.f32 %v310_v27, 0.0  ;;  %v315_v45 = vld [vmem:[%s11540_s0 + $0x318] sm:$0xff]  ;;  %v316_v46 = vld [vmem:[%s11540_s0 + $0x320] sm:$0xff]  ;;  %v318_v47 = vld [vmem:[%s11540_s0 + $0x330] sm:$0xff] }
  0x5d   : > { %1098 = vst.msk [vmem:[#allocation2 + $0x148] sm:$0xff] %vm1057_vm0, %v929_v35  ;;  %1099 = vst [vmem:[#allocation2 + $0x150] sm:$0xff] %v930_v36  ;;  %v932_v48 = vpack.c.bf16 %v642_v37, %v640_v31  ;;  %v645_v49 = vmax.f32 %v309_v32, 0.0  ;;  %v647_v50 = vmax.f32 %v311_v33, 0.0  ;;  %v648_v51 = vmax.f32 %v312_v34, 0.0  ;;  %v317_v52 = vld [vmem:[%s11540_s0 + $0x328] sm:$0xff] }
  0x5e   : > { %v319_v53 = vld [vmem:[%s11540_s0 + $0x338] sm:$0xff]  ;;  %v320_v54 = vld [vmem:[%s11540_s0 + $0x340] sm:$0xff]  ;;  %1100 = vst.msk [vmem:[#allocation2 + $0x158] sm:$0xff] %vm1057_vm0, %v931_v41  ;;  %v933_v55 = vpack.c.bf16 %v643_v42, %v641_v38  ;;  %v934_v56 = vpack.c.bf16 %v646_v44, %v644_v43  ;;  %v650_v57 = vmax.f32 %v314_v39, 0.0  ;;  %v649_v58 = vmax.f32 %v313_v40, 0.0  ;;  %v322_v59 = vld [vmem:[%s11540_s0 + $0x350] sm:$0xff] }
  0x5f   : > { %v321_v60 = vld [vmem:[%s11540_s0 + $0x348] sm:$0xff]  ;;  %1101 = vst [vmem:[#allocation2 + $0x160] sm:$0xff] %v932_v48  ;;  %v935_v61 = vpack.c.bf16 %v647_v50, %v645_v49  ;;  %v651_v62 = vmax.f32 %v315_v45, 0.0  ;;  %v652_v63 = vmax.f32 %v316_v46, 0.0  ;;  %v654_v0 = vmax.f32 %v318_v47, 0.0  ;;  %v323_v1 = vld [vmem:[%s11540_s0 + $0x358] sm:$0xff] }
  0x60   : > { %v324_v2 = vld [vmem:[%s11540_s0 + $0x360] sm:$0xff]  ;;  %v326_v3 = vld [vmem:[%s11540_s0 + $0x370] sm:$0xff]  ;;  %1102 = vst.msk [vmem:[#allocation2 + $0x168] sm:$0xff] %vm1057_vm0, %v933_v55  ;;  %1103 = vst [vmem:[#allocation2 + $0x170] sm:$0xff] %v934_v56  ;;  %v936_v4 = vpack.c.bf16 %v650_v57, %v648_v51  ;;  %v653_v5 = vmax.f32 %v317_v52, 0.0  ;;  %v655_v6 = vmax.f32 %v319_v53, 0.0 }
  0x61   : > { %v656_v7 = vmax.f32 %v320_v54, 0.0  ;;  %v325_v8 = vld [vmem:[%s11540_s0 + $0x368] sm:$0xff]  ;;  %v327_v9 = vld [vmem:[%s11540_s0 + $0x378] sm:$0xff]  ;;  %v328_v10 = vld [vmem:[%s11540_s0 + $0x380] sm:$0xff]  ;;  %1104 = vst.msk [vmem:[#allocation2 + $0x178] sm:$0xff] %vm1057_vm0, %v935_v61  ;;  %v937_v11 = vpack.c.bf16 %v651_v62, %v649_v58  ;;  %v938_v12 = vpack.c.bf16 %v654_v0, %v652_v63  ;;  %v658_v13 = vmax.f32 %v322_v59, 0.0 }
  0x62   : > { %v657_v14 = vmax.f32 %v321_v60, 0.0  ;;  %v330_v15 = vld [vmem:[%s11540_s0 + $0x390] sm:$0xff]  ;;  %v329_v16 = vld [vmem:[%s11540_s0 + $0x388] sm:$0xff]  ;;  %1105 = vst [vmem:[#allocation2 + $0x180] sm:$0xff] %v936_v4  ;;  %v939_v17 = vpack.c.bf16 %v655_v6, %v653_v5  ;;  %v659_v18 = vmax.f32 %v323_v1, 0.0  ;;  %v660_v19 = vmax.f32 %v324_v2, 0.0 }
  0x63   : > { %v662_v20 = vmax.f32 %v326_v3, 0.0  ;;  %v331_v21 = vld [vmem:[%s11540_s0 + $0x398] sm:$0xff]  ;;  %v332_v22 = vld [vmem:[%s11540_s0 + $0x3a0] sm:$0xff]  ;;  %v334_v23 = vld [vmem:[%s11540_s0 + $0x3b0] sm:$0xff]  ;;  %1106 = vst.msk [vmem:[#allocation2 + $0x188] sm:$0xff] %vm1057_vm0, %v937_v11  ;;  %v940_v24 = vpack.c.bf16 %v658_v13, %v656_v7  ;;  %v661_v25 = vmax.f32 %v325_v8, 0.0 }
  0x64   : > { %1107 = vst [vmem:[#allocation2 + $0x190] sm:$0xff] %v938_v12  ;;  %v663_v26 = vmax.f32 %v327_v9, 0.0  ;;  %v664_v27 = vmax.f32 %v328_v10, 0.0  ;;  %v333_v28 = vld [vmem:[%s11540_s0 + $0x3a8] sm:$0xff]  ;;  %v335_v29 = vld [vmem:[%s11540_s0 + $0x3b8] sm:$0xff]  ;;  %v336_v30 = vld [vmem:[%s11540_s0 + $0x3c0] sm:$0xff]  ;;  %v941_v31 = vpack.c.bf16 %v659_v18, %v657_v14 }
  0x65   : > { %1108 = vst.msk [vmem:[#allocation2 + $0x198] sm:$0xff] %vm1057_vm0, %v939_v17  ;;  %v942_v32 = vpack.c.bf16 %v662_v20, %v660_v19  ;;  %v666_v33 = vmax.f32 %v330_v15, 0.0  ;;  %v665_v34 = vmax.f32 %v329_v16, 0.0  ;;  %v338_v35 = vld [vmem:[%s11540_s0 + $0x3d0] sm:$0xff]  ;;  %v337_v36 = vld [vmem:[%s11540_s0 + $0x3c8] sm:$0xff]  ;;  %1109 = vst [vmem:[#allocation2 + $0x1a0] sm:$0xff] %v940_v24 }
  0x66   : > { %v943_v37 = vpack.c.bf16 %v663_v26, %v661_v25  ;;  %v667_v38 = vmax.f32 %v331_v21, 0.0  ;;  %v668_v39 = vmax.f32 %v332_v22, 0.0  ;;  %v670_v40 = vmax.f32 %v334_v23, 0.0  ;;  %v339_v41 = vld [vmem:[%s11540_s0 + $0x3d8] sm:$0xff]  ;;  %v340_v42 = vld [vmem:[%s11540_s0 + $0x3e0] sm:$0xff]  ;;  %v342_v43 = vld [vmem:[%s11540_s0 + $0x3f0] sm:$0xff] }
  0x67   : > { %1110 = vst.msk [vmem:[#allocation2 + $0x1a8] sm:$0xff] %vm1057_vm0, %v941_v31  ;;  %1111 = vst [vmem:[#allocation2 + $0x1b0] sm:$0xff] %v942_v32  ;;  %v944_v44 = vpack.c.bf16 %v666_v33, %v664_v27  ;;  %v669_v45 = vmax.f32 %v333_v28, 0.0  ;;  %v671_v46 = vmax.f32 %v335_v29, 0.0  ;;  %v672_v47 = vmax.f32 %v336_v30, 0.0  ;;  %v341_v48 = vld [vmem:[%s11540_s0 + $0x3e8] sm:$0xff] }
  0x68   : > { %v343_v49 = vld [vmem:[%s11540_s0 + $0x3f8] sm:$0xff]  ;;  %v344_v50 = vld [vmem:[%s11540_s0 + $0x400] sm:$0xff]  ;;  %1112 = vst.msk [vmem:[#allocation2 + $0x1b8] sm:$0xff] %vm1057_vm0, %v943_v37  ;;  %v945_v51 = vpack.c.bf16 %v667_v38, %v665_v34  ;;  %v946_v52 = vpack.c.bf16 %v670_v40, %v668_v39  ;;  %v674_v53 = vmax.f32 %v338_v35, 0.0  ;;  %v673_v54 = vmax.f32 %v337_v36, 0.0  ;;  %v346_v55 = vld [vmem:[%s11540_s0 + $0x410] sm:$0xff] }
  0x69   : > { %v345_v56 = vld [vmem:[%s11540_s0 + $0x408] sm:$0xff]  ;;  %1113 = vst [vmem:[#allocation2 + $0x1c0] sm:$0xff] %v944_v44  ;;  %v947_v57 = vpack.c.bf16 %v671_v46, %v669_v45  ;;  %v675_v58 = vmax.f32 %v339_v41, 0.0  ;;  %v676_v59 = vmax.f32 %v340_v42, 0.0  ;;  %v678_v60 = vmax.f32 %v342_v43, 0.0  ;;  %v347_v61 = vld [vmem:[%s11540_s0 + $0x418] sm:$0xff] }
  0x6a   : > { %v348_v62 = vld [vmem:[%s11540_s0 + $0x420] sm:$0xff]  ;;  %v350_v63 = vld [vmem:[%s11540_s0 + $0x430] sm:$0xff]  ;;  %1114 = vst.msk [vmem:[#allocation2 + $0x1c8] sm:$0xff] %vm1057_vm0, %v945_v51  ;;  %1115 = vst [vmem:[#allocation2 + $0x1d0] sm:$0xff] %v946_v52  ;;  %v948_v0 = vpack.c.bf16 %v674_v53, %v672_v47  ;;  %v677_v1 = vmax.f32 %v341_v48, 0.0  ;;  %v679_v2 = vmax.f32 %v343_v49, 0.0 }
  0x6b   : > { %v680_v3 = vmax.f32 %v344_v50, 0.0  ;;  %v349_v4 = vld [vmem:[%s11540_s0 + $0x428] sm:$0xff]  ;;  %v351_v5 = vld [vmem:[%s11540_s0 + $0x438] sm:$0xff]  ;;  %v352_v6 = vld [vmem:[%s11540_s0 + $0x440] sm:$0xff]  ;;  %1116 = vst.msk [vmem:[#allocation2 + $0x1d8] sm:$0xff] %vm1057_vm0, %v947_v57  ;;  %v949_v7 = vpack.c.bf16 %v675_v58, %v673_v54  ;;  %v950_v8 = vpack.c.bf16 %v678_v60, %v676_v59  ;;  %v682_v9 = vmax.f32 %v346_v55, 0.0 }
  0x6c   : > { %v681_v10 = vmax.f32 %v345_v56, 0.0  ;;  %v354_v11 = vld [vmem:[%s11540_s0 + $0x450] sm:$0xff]  ;;  %v353_v12 = vld [vmem:[%s11540_s0 + $0x448] sm:$0xff]  ;;  %1117 = vst [vmem:[#allocation2 + $0x1e0] sm:$0xff] %v948_v0  ;;  %v951_v13 = vpack.c.bf16 %v679_v2, %v677_v1  ;;  %v683_v14 = vmax.f32 %v347_v61, 0.0  ;;  %v684_v15 = vmax.f32 %v348_v62, 0.0 }
  0x6d   : > { %v686_v16 = vmax.f32 %v350_v63, 0.0  ;;  %v355_v17 = vld [vmem:[%s11540_s0 + $0x458] sm:$0xff]  ;;  %v356_v18 = vld [vmem:[%s11540_s0 + $0x460] sm:$0xff]  ;;  %v358_v19 = vld [vmem:[%s11540_s0 + $0x470] sm:$0xff]  ;;  %1118 = vst.msk [vmem:[#allocation2 + $0x1e8] sm:$0xff] %vm1057_vm0, %v949_v7  ;;  %v952_v20 = vpack.c.bf16 %v682_v9, %v680_v3  ;;  %v685_v21 = vmax.f32 %v349_v4, 0.0 }
  0x6e   : > { %1119 = vst [vmem:[#allocation2 + $0x1f0] sm:$0xff] %v950_v8  ;;  %v687_v22 = vmax.f32 %v351_v5, 0.0  ;;  %v688_v23 = vmax.f32 %v352_v6, 0.0  ;;  %v357_v24 = vld [vmem:[%s11540_s0 + $0x468] sm:$0xff]  ;;  %v359_v25 = vld [vmem:[%s11540_s0 + $0x478] sm:$0xff]  ;;  %v360_v26 = vld [vmem:[%s11540_s0 + $0x480] sm:$0xff]  ;;  %v953_v27 = vpack.c.bf16 %v683_v14, %v681_v10 }
  0x6f   : > { %1120 = vst.msk [vmem:[#allocation2 + $0x1f8] sm:$0xff] %vm1057_vm0, %v951_v13  ;;  %v954_v28 = vpack.c.bf16 %v686_v16, %v684_v15  ;;  %v690_v29 = vmax.f32 %v354_v11, 0.0  ;;  %v689_v30 = vmax.f32 %v353_v12, 0.0  ;;  %v362_v31 = vld [vmem:[%s11540_s0 + $0x490] sm:$0xff]  ;;  %v361_v32 = vld [vmem:[%s11540_s0 + $0x488] sm:$0xff]  ;;  %1121 = vst [vmem:[#allocation2 + $0x200] sm:$0xff] %v952_v20 }
  0x70   : > { %v955_v33 = vpack.c.bf16 %v687_v22, %v685_v21  ;;  %v691_v34 = vmax.f32 %v355_v17, 0.0  ;;  %v692_v35 = vmax.f32 %v356_v18, 0.0  ;;  %v694_v36 = vmax.f32 %v358_v19, 0.0  ;;  %v363_v37 = vld [vmem:[%s11540_s0 + $0x498] sm:$0xff]  ;;  %v364_v38 = vld [vmem:[%s11540_s0 + $0x4a0] sm:$0xff]  ;;  %v366_v39 = vld [vmem:[%s11540_s0 + $0x4b0] sm:$0xff] }
  0x71   : > { %1122 = vst.msk [vmem:[#allocation2 + $0x208] sm:$0xff] %vm1057_vm0, %v953_v27  ;;  %1123 = vst [vmem:[#allocation2 + $0x210] sm:$0xff] %v954_v28  ;;  %v956_v40 = vpack.c.bf16 %v690_v29, %v688_v23  ;;  %v693_v41 = vmax.f32 %v357_v24, 0.0  ;;  %v695_v42 = vmax.f32 %v359_v25, 0.0  ;;  %v696_v43 = vmax.f32 %v360_v26, 0.0  ;;  %v365_v44 = vld [vmem:[%s11540_s0 + $0x4a8] sm:$0xff] }
  0x72   : > { %v367_v45 = vld [vmem:[%s11540_s0 + $0x4b8] sm:$0xff]  ;;  %v368_v46 = vld [vmem:[%s11540_s0 + $0x4c0] sm:$0xff]  ;;  %1124 = vst.msk [vmem:[#allocation2 + $0x218] sm:$0xff] %vm1057_vm0, %v955_v33  ;;  %v957_v47 = vpack.c.bf16 %v691_v34, %v689_v30  ;;  %v958_v48 = vpack.c.bf16 %v694_v36, %v692_v35  ;;  %v698_v49 = vmax.f32 %v362_v31, 0.0  ;;  %v697_v50 = vmax.f32 %v361_v32, 0.0  ;;  %v370_v51 = vld [vmem:[%s11540_s0 + $0x4d0] sm:$0xff] }
  0x73   : > { %v369_v52 = vld [vmem:[%s11540_s0 + $0x4c8] sm:$0xff]  ;;  %1125 = vst [vmem:[#allocation2 + $0x220] sm:$0xff] %v956_v40  ;;  %v959_v53 = vpack.c.bf16 %v695_v42, %v693_v41  ;;  %v699_v54 = vmax.f32 %v363_v37, 0.0  ;;  %v700_v55 = vmax.f32 %v364_v38, 0.0  ;;  %v702_v56 = vmax.f32 %v366_v39, 0.0  ;;  %v371_v57 = vld [vmem:[%s11540_s0 + $0x4d8] sm:$0xff] }
  0x74   : > { %v372_v58 = vld [vmem:[%s11540_s0 + $0x4e0] sm:$0xff]  ;;  %v374_v59 = vld [vmem:[%s11540_s0 + $0x4f0] sm:$0xff]  ;;  %1126 = vst.msk [vmem:[#allocation2 + $0x228] sm:$0xff] %vm1057_vm0, %v957_v47  ;;  %1127 = vst [vmem:[#allocation2 + $0x230] sm:$0xff] %v958_v48  ;;  %v960_v60 = vpack.c.bf16 %v698_v49, %v696_v43  ;;  %v701_v61 = vmax.f32 %v365_v44, 0.0  ;;  %v703_v62 = vmax.f32 %v367_v45, 0.0 }
  0x75   : > { %v704_v63 = vmax.f32 %v368_v46, 0.0  ;;  %v373_v0 = vld [vmem:[%s11540_s0 + $0x4e8] sm:$0xff]  ;;  %v375_v1 = vld [vmem:[%s11540_s0 + $0x4f8] sm:$0xff]  ;;  %v376_v2 = vld [vmem:[%s11540_s0 + $0x500] sm:$0xff]  ;;  %1128 = vst.msk [vmem:[#allocation2 + $0x238] sm:$0xff] %vm1057_vm0, %v959_v53  ;;  %v961_v3 = vpack.c.bf16 %v699_v54, %v697_v50  ;;  %v962_v4 = vpack.c.bf16 %v702_v56, %v700_v55  ;;  %v706_v5 = vmax.f32 %v370_v51, 0.0 }
  0x76   : > { %v705_v6 = vmax.f32 %v369_v52, 0.0  ;;  %v378_v7 = vld [vmem:[%s11540_s0 + $0x510] sm:$0xff]  ;;  %v377_v8 = vld [vmem:[%s11540_s0 + $0x508] sm:$0xff]  ;;  %1129 = vst [vmem:[#allocation2 + $0x240] sm:$0xff] %v960_v60  ;;  %v963_v9 = vpack.c.bf16 %v703_v62, %v701_v61  ;;  %v707_v10 = vmax.f32 %v371_v57, 0.0  ;;  %v708_v11 = vmax.f32 %v372_v58, 0.0 }
  0x77   : > { %v710_v12 = vmax.f32 %v374_v59, 0.0  ;;  %v379_v13 = vld [vmem:[%s11540_s0 + $0x518] sm:$0xff]  ;;  %v380_v14 = vld [vmem:[%s11540_s0 + $0x520] sm:$0xff]  ;;  %v382_v15 = vld [vmem:[%s11540_s0 + $0x530] sm:$0xff]  ;;  %1130 = vst.msk [vmem:[#allocation2 + $0x248] sm:$0xff] %vm1057_vm0, %v961_v3  ;;  %v964_v16 = vpack.c.bf16 %v706_v5, %v704_v63  ;;  %v709_v17 = vmax.f32 %v373_v0, 0.0 }
  0x78   : > { %1131 = vst [vmem:[#allocation2 + $0x250] sm:$0xff] %v962_v4  ;;  %v711_v18 = vmax.f32 %v375_v1, 0.0  ;;  %v712_v19 = vmax.f32 %v376_v2, 0.0  ;;  %v381_v20 = vld [vmem:[%s11540_s0 + $0x528] sm:$0xff]  ;;  %v383_v21 = vld [vmem:[%s11540_s0 + $0x538] sm:$0xff]  ;;  %v384_v22 = vld [vmem:[%s11540_s0 + $0x540] sm:$0xff]  ;;  %v965_v23 = vpack.c.bf16 %v707_v10, %v705_v6 }
  0x79   : > { %1132 = vst.msk [vmem:[#allocation2 + $0x258] sm:$0xff] %vm1057_vm0, %v963_v9  ;;  %v966_v24 = vpack.c.bf16 %v710_v12, %v708_v11  ;;  %v714_v25 = vmax.f32 %v378_v7, 0.0  ;;  %v713_v26 = vmax.f32 %v377_v8, 0.0  ;;  %v386_v27 = vld [vmem:[%s11540_s0 + $0x550] sm:$0xff]  ;;  %v385_v28 = vld [vmem:[%s11540_s0 + $0x548] sm:$0xff]  ;;  %1133 = vst [vmem:[#allocation2 + $0x260] sm:$0xff] %v964_v16 }
  0x7a   : > { %v967_v29 = vpack.c.bf16 %v711_v18, %v709_v17  ;;  %v715_v30 = vmax.f32 %v379_v13, 0.0  ;;  %v716_v31 = vmax.f32 %v380_v14, 0.0  ;;  %v718_v32 = vmax.f32 %v382_v15, 0.0  ;;  %v387_v33 = vld [vmem:[%s11540_s0 + $0x558] sm:$0xff]  ;;  %v388_v34 = vld [vmem:[%s11540_s0 + $0x560] sm:$0xff]  ;;  %v390_v35 = vld [vmem:[%s11540_s0 + $0x570] sm:$0xff] }
  0x7b   : > { %1134 = vst.msk [vmem:[#allocation2 + $0x268] sm:$0xff] %vm1057_vm0, %v965_v23  ;;  %1135 = vst [vmem:[#allocation2 + $0x270] sm:$0xff] %v966_v24  ;;  %v968_v36 = vpack.c.bf16 %v714_v25, %v712_v19  ;;  %v717_v37 = vmax.f32 %v381_v20, 0.0  ;;  %v719_v38 = vmax.f32 %v383_v21, 0.0  ;;  %v720_v39 = vmax.f32 %v384_v22, 0.0  ;;  %v389_v40 = vld [vmem:[%s11540_s0 + $0x568] sm:$0xff] }
  0x7c   : > { %v391_v41 = vld [vmem:[%s11540_s0 + $0x578] sm:$0xff]  ;;  %v392_v42 = vld [vmem:[%s11540_s0 + $0x580] sm:$0xff]  ;;  %1136 = vst.msk [vmem:[#allocation2 + $0x278] sm:$0xff] %vm1057_vm0, %v967_v29  ;;  %v969_v43 = vpack.c.bf16 %v715_v30, %v713_v26  ;;  %v970_v44 = vpack.c.bf16 %v718_v32, %v716_v31  ;;  %v722_v45 = vmax.f32 %v386_v27, 0.0  ;;  %v721_v46 = vmax.f32 %v385_v28, 0.0  ;;  %v394_v47 = vld [vmem:[%s11540_s0 + $0x590] sm:$0xff] }
  0x7d   : > { %v393_v48 = vld [vmem:[%s11540_s0 + $0x588] sm:$0xff]  ;;  %1137 = vst [vmem:[#allocation2 + $0x280] sm:$0xff] %v968_v36  ;;  %v971_v49 = vpack.c.bf16 %v719_v38, %v717_v37  ;;  %v723_v50 = vmax.f32 %v387_v33, 0.0  ;;  %v724_v51 = vmax.f32 %v388_v34, 0.0  ;;  %v726_v52 = vmax.f32 %v390_v35, 0.0  ;;  %v395_v53 = vld [vmem:[%s11540_s0 + $0x598] sm:$0xff] }
  0x7e   : > { %v396_v54 = vld [vmem:[%s11540_s0 + $0x5a0] sm:$0xff]  ;;  %v398_v55 = vld [vmem:[%s11540_s0 + $0x5b0] sm:$0xff]  ;;  %1138 = vst.msk [vmem:[#allocation2 + $0x288] sm:$0xff] %vm1057_vm0, %v969_v43  ;;  %1139 = vst [vmem:[#allocation2 + $0x290] sm:$0xff] %v970_v44  ;;  %v972_v56 = vpack.c.bf16 %v722_v45, %v720_v39  ;;  %v725_v57 = vmax.f32 %v389_v40, 0.0  ;;  %v727_v58 = vmax.f32 %v391_v41, 0.0 }
  0x7f   : > { %v728_v59 = vmax.f32 %v392_v42, 0.0  ;;  %v397_v60 = vld [vmem:[%s11540_s0 + $0x5a8] sm:$0xff]  ;;  %v399_v61 = vld [vmem:[%s11540_s0 + $0x5b8] sm:$0xff]  ;;  %v400_v62 = vld [vmem:[%s11540_s0 + $0x5c0] sm:$0xff]  ;;  %1140 = vst.msk [vmem:[#allocation2 + $0x298] sm:$0xff] %vm1057_vm0, %v971_v49  ;;  %v973_v63 = vpack.c.bf16 %v723_v50, %v721_v46  ;;  %v974_v0 = vpack.c.bf16 %v726_v52, %v724_v51  ;;  %v730_v1 = vmax.f32 %v394_v47, 0.0 }
  0x80   : > { %v729_v2 = vmax.f32 %v393_v48, 0.0  ;;  %v402_v3 = vld [vmem:[%s11540_s0 + $0x5d0] sm:$0xff]  ;;  %v401_v4 = vld [vmem:[%s11540_s0 + $0x5c8] sm:$0xff]  ;;  %1141 = vst [vmem:[#allocation2 + $0x2a0] sm:$0xff] %v972_v56  ;;  %v975_v5 = vpack.c.bf16 %v727_v58, %v725_v57  ;;  %v731_v6 = vmax.f32 %v395_v53, 0.0  ;;  %v732_v7 = vmax.f32 %v396_v54, 0.0 }
  0x81   : > { %v734_v8 = vmax.f32 %v398_v55, 0.0  ;;  %v403_v9 = vld [vmem:[%s11540_s0 + $0x5d8] sm:$0xff]  ;;  %v404_v10 = vld [vmem:[%s11540_s0 + $0x5e0] sm:$0xff]  ;;  %v406_v11 = vld [vmem:[%s11540_s0 + $0x5f0] sm:$0xff]  ;;  %1142 = vst.msk [vmem:[#allocation2 + $0x2a8] sm:$0xff] %vm1057_vm0, %v973_v63  ;;  %v976_v12 = vpack.c.bf16 %v730_v1, %v728_v59  ;;  %v733_v13 = vmax.f32 %v397_v60, 0.0 }
  0x82   : > { %1143 = vst [vmem:[#allocation2 + $0x2b0] sm:$0xff] %v974_v0  ;;  %v735_v14 = vmax.f32 %v399_v61, 0.0  ;;  %v736_v15 = vmax.f32 %v400_v62, 0.0  ;;  %v405_v16 = vld [vmem:[%s11540_s0 + $0x5e8] sm:$0xff]  ;;  %v407_v17 = vld [vmem:[%s11540_s0 + $0x5f8] sm:$0xff]  ;;  %v408_v18 = vld [vmem:[%s11540_s0 + $0x600] sm:$0xff]  ;;  %v977_v19 = vpack.c.bf16 %v731_v6, %v729_v2 }
  0x83   : > { %1144 = vst.msk [vmem:[#allocation2 + $0x2b8] sm:$0xff] %vm1057_vm0, %v975_v5  ;;  %v978_v20 = vpack.c.bf16 %v734_v8, %v732_v7  ;;  %v738_v21 = vmax.f32 %v402_v3, 0.0  ;;  %v737_v22 = vmax.f32 %v401_v4, 0.0  ;;  %v410_v23 = vld [vmem:[%s11540_s0 + $0x610] sm:$0xff]  ;;  %v409_v24 = vld [vmem:[%s11540_s0 + $0x608] sm:$0xff]  ;;  %1145 = vst [vmem:[#allocation2 + $0x2c0] sm:$0xff] %v976_v12 }
  0x84   : > { %v979_v25 = vpack.c.bf16 %v735_v14, %v733_v13  ;;  %v739_v26 = vmax.f32 %v403_v9, 0.0  ;;  %v740_v27 = vmax.f32 %v404_v10, 0.0  ;;  %v742_v28 = vmax.f32 %v406_v11, 0.0  ;;  %v411_v29 = vld [vmem:[%s11540_s0 + $0x618] sm:$0xff]  ;;  %v412_v30 = vld [vmem:[%s11540_s0 + $0x620] sm:$0xff]  ;;  %v414_v31 = vld [vmem:[%s11540_s0 + $0x630] sm:$0xff] }
  0x85   : > { %1146 = vst.msk [vmem:[#allocation2 + $0x2c8] sm:$0xff] %vm1057_vm0, %v977_v19  ;;  %1147 = vst [vmem:[#allocation2 + $0x2d0] sm:$0xff] %v978_v20  ;;  %v980_v32 = vpack.c.bf16 %v738_v21, %v736_v15  ;;  %v741_v33 = vmax.f32 %v405_v16, 0.0  ;;  %v743_v34 = vmax.f32 %v407_v17, 0.0  ;;  %v744_v35 = vmax.f32 %v408_v18, 0.0  ;;  %v413_v36 = vld [vmem:[%s11540_s0 + $0x628] sm:$0xff] }
  0x86   : > { %v415_v37 = vld [vmem:[%s11540_s0 + $0x638] sm:$0xff]  ;;  %v416_v38 = vld [vmem:[%s11540_s0 + $0x640] sm:$0xff]  ;;  %1148 = vst.msk [vmem:[#allocation2 + $0x2d8] sm:$0xff] %vm1057_vm0, %v979_v25  ;;  %v981_v39 = vpack.c.bf16 %v739_v26, %v737_v22  ;;  %v982_v40 = vpack.c.bf16 %v742_v28, %v740_v27  ;;  %v746_v41 = vmax.f32 %v410_v23, 0.0  ;;  %v745_v42 = vmax.f32 %v409_v24, 0.0  ;;  %v418_v43 = vld [vmem:[%s11540_s0 + $0x650] sm:$0xff] }
  0x87   : > { %v417_v44 = vld [vmem:[%s11540_s0 + $0x648] sm:$0xff]  ;;  %1149 = vst [vmem:[#allocation2 + $0x2e0] sm:$0xff] %v980_v32  ;;  %v983_v45 = vpack.c.bf16 %v743_v34, %v741_v33  ;;  %v747_v46 = vmax.f32 %v411_v29, 0.0  ;;  %v748_v47 = vmax.f32 %v412_v30, 0.0  ;;  %v750_v48 = vmax.f32 %v414_v31, 0.0  ;;  %v419_v49 = vld [vmem:[%s11540_s0 + $0x658] sm:$0xff] }
  0x88   : > { %v420_v50 = vld [vmem:[%s11540_s0 + $0x660] sm:$0xff]  ;;  %v422_v51 = vld [vmem:[%s11540_s0 + $0x670] sm:$0xff]  ;;  %1150 = vst.msk [vmem:[#allocation2 + $0x2e8] sm:$0xff] %vm1057_vm0, %v981_v39  ;;  %1151 = vst [vmem:[#allocation2 + $0x2f0] sm:$0xff] %v982_v40  ;;  %v984_v52 = vpack.c.bf16 %v746_v41, %v744_v35  ;;  %v749_v53 = vmax.f32 %v413_v36, 0.0  ;;  %v751_v54 = vmax.f32 %v415_v37, 0.0 }
  0x89   : > { %v752_v55 = vmax.f32 %v416_v38, 0.0  ;;  %v421_v56 = vld [vmem:[%s11540_s0 + $0x668] sm:$0xff]  ;;  %v423_v57 = vld [vmem:[%s11540_s0 + $0x678] sm:$0xff]  ;;  %v424_v58 = vld [vmem:[%s11540_s0 + $0x680] sm:$0xff]  ;;  %1152 = vst.msk [vmem:[#allocation2 + $0x2f8] sm:$0xff] %vm1057_vm0, %v983_v45  ;;  %v985_v59 = vpack.c.bf16 %v747_v46, %v745_v42  ;;  %v986_v60 = vpack.c.bf16 %v750_v48, %v748_v47  ;;  %v754_v61 = vmax.f32 %v418_v43, 0.0 }
  0x8a   : > { %v753_v62 = vmax.f32 %v417_v44, 0.0  ;;  %v426_v63 = vld [vmem:[%s11540_s0 + $0x690] sm:$0xff]  ;;  %v425_v0 = vld [vmem:[%s11540_s0 + $0x688] sm:$0xff]  ;;  %1153 = vst [vmem:[#allocation2 + $0x300] sm:$0xff] %v984_v52  ;;  %v987_v1 = vpack.c.bf16 %v751_v54, %v749_v53  ;;  %v755_v2 = vmax.f32 %v419_v49, 0.0  ;;  %v756_v3 = vmax.f32 %v420_v50, 0.0 }
  0x8b   : > { %v758_v4 = vmax.f32 %v422_v51, 0.0  ;;  %v427_v5 = vld [vmem:[%s11540_s0 + $0x698] sm:$0xff]  ;;  %v428_v6 = vld [vmem:[%s11540_s0 + $0x6a0] sm:$0xff]  ;;  %v430_v7 = vld [vmem:[%s11540_s0 + $0x6b0] sm:$0xff]  ;;  %1154 = vst.msk [vmem:[#allocation2 + $0x308] sm:$0xff] %vm1057_vm0, %v985_v59  ;;  %v988_v8 = vpack.c.bf16 %v754_v61, %v752_v55  ;;  %v757_v9 = vmax.f32 %v421_v56, 0.0 }
  0x8c   : > { %1155 = vst [vmem:[#allocation2 + $0x310] sm:$0xff] %v986_v60  ;;  %v759_v10 = vmax.f32 %v423_v57, 0.0  ;;  %v760_v11 = vmax.f32 %v424_v58, 0.0  ;;  %v429_v12 = vld [vmem:[%s11540_s0 + $0x6a8] sm:$0xff]  ;;  %v431_v13 = vld [vmem:[%s11540_s0 + $0x6b8] sm:$0xff]  ;;  %v432_v14 = vld [vmem:[%s11540_s0 + $0x6c0] sm:$0xff]  ;;  %v989_v15 = vpack.c.bf16 %v755_v2, %v753_v62 }
  0x8d   : > { %1156 = vst.msk [vmem:[#allocation2 + $0x318] sm:$0xff] %vm1057_vm0, %v987_v1  ;;  %v990_v16 = vpack.c.bf16 %v758_v4, %v756_v3  ;;  %v762_v17 = vmax.f32 %v426_v63, 0.0  ;;  %v761_v18 = vmax.f32 %v425_v0, 0.0  ;;  %v434_v19 = vld [vmem:[%s11540_s0 + $0x6d0] sm:$0xff]  ;;  %v433_v20 = vld [vmem:[%s11540_s0 + $0x6c8] sm:$0xff]  ;;  %1157 = vst [vmem:[#allocation2 + $0x320] sm:$0xff] %v988_v8 }
  0x8e   : > { %v991_v21 = vpack.c.bf16 %v759_v10, %v757_v9  ;;  %v763_v22 = vmax.f32 %v427_v5, 0.0  ;;  %v764_v23 = vmax.f32 %v428_v6, 0.0  ;;  %v766_v24 = vmax.f32 %v430_v7, 0.0  ;;  %v435_v25 = vld [vmem:[%s11540_s0 + $0x6d8] sm:$0xff]  ;;  %v436_v26 = vld [vmem:[%s11540_s0 + $0x6e0] sm:$0xff]  ;;  %v438_v27 = vld [vmem:[%s11540_s0 + $0x6f0] sm:$0xff] }
  0x8f   : > { %1158 = vst.msk [vmem:[#allocation2 + $0x328] sm:$0xff] %vm1057_vm0, %v989_v15  ;;  %1159 = vst [vmem:[#allocation2 + $0x330] sm:$0xff] %v990_v16  ;;  %v992_v28 = vpack.c.bf16 %v762_v17, %v760_v11  ;;  %v765_v29 = vmax.f32 %v429_v12, 0.0  ;;  %v767_v30 = vmax.f32 %v431_v13, 0.0  ;;  %v768_v31 = vmax.f32 %v432_v14, 0.0  ;;  %v437_v32 = vld [vmem:[%s11540_s0 + $0x6e8] sm:$0xff] }
  0x90   : > { %v439_v33 = vld [vmem:[%s11540_s0 + $0x6f8] sm:$0xff]  ;;  %v440_v34 = vld [vmem:[%s11540_s0 + $0x700] sm:$0xff]  ;;  %1160 = vst.msk [vmem:[#allocation2 + $0x338] sm:$0xff] %vm1057_vm0, %v991_v21  ;;  %v993_v35 = vpack.c.bf16 %v763_v22, %v761_v18  ;;  %v994_v36 = vpack.c.bf16 %v766_v24, %v764_v23  ;;  %v770_v37 = vmax.f32 %v434_v19, 0.0  ;;  %v769_v38 = vmax.f32 %v433_v20, 0.0  ;;  %v442_v39 = vld [vmem:[%s11540_s0 + $0x710] sm:$0xff] }
  0x91   : > { %v441_v40 = vld [vmem:[%s11540_s0 + $0x708] sm:$0xff]  ;;  %1161 = vst [vmem:[#allocation2 + $0x340] sm:$0xff] %v992_v28  ;;  %v995_v41 = vpack.c.bf16 %v767_v30, %v765_v29  ;;  %v771_v42 = vmax.f32 %v435_v25, 0.0  ;;  %v772_v43 = vmax.f32 %v436_v26, 0.0  ;;  %v774_v44 = vmax.f32 %v438_v27, 0.0  ;;  %v443_v45 = vld [vmem:[%s11540_s0 + $0x718] sm:$0xff] }
  0x92   : > { %v444_v46 = vld [vmem:[%s11540_s0 + $0x720] sm:$0xff]  ;;  %v446_v47 = vld [vmem:[%s11540_s0 + $0x730] sm:$0xff]  ;;  %1162 = vst.msk [vmem:[#allocation2 + $0x348] sm:$0xff] %vm1057_vm0, %v993_v35  ;;  %1163 = vst [vmem:[#allocation2 + $0x350] sm:$0xff] %v994_v36  ;;  %v996_v48 = vpack.c.bf16 %v770_v37, %v768_v31  ;;  %v773_v49 = vmax.f32 %v437_v32, 0.0  ;;  %v775_v50 = vmax.f32 %v439_v33, 0.0 }
  0x93   : > { %v776_v51 = vmax.f32 %v440_v34, 0.0  ;;  %v445_v52 = vld [vmem:[%s11540_s0 + $0x728] sm:$0xff]  ;;  %v447_v53 = vld [vmem:[%s11540_s0 + $0x738] sm:$0xff]  ;;  %v448_v54 = vld [vmem:[%s11540_s0 + $0x740] sm:$0xff]  ;;  %1164 = vst.msk [vmem:[#allocation2 + $0x358] sm:$0xff] %vm1057_vm0, %v995_v41  ;;  %v997_v55 = vpack.c.bf16 %v771_v42, %v769_v38  ;;  %v998_v56 = vpack.c.bf16 %v774_v44, %v772_v43  ;;  %v778_v57 = vmax.f32 %v442_v39, 0.0 }
  0x94   : > { %v777_v58 = vmax.f32 %v441_v40, 0.0  ;;  %v450_v59 = vld [vmem:[%s11540_s0 + $0x750] sm:$0xff]  ;;  %v449_v60 = vld [vmem:[%s11540_s0 + $0x748] sm:$0xff]  ;;  %1165 = vst [vmem:[#allocation2 + $0x360] sm:$0xff] %v996_v48  ;;  %v999_v61 = vpack.c.bf16 %v775_v50, %v773_v49  ;;  %v779_v62 = vmax.f32 %v443_v45, 0.0  ;;  %v780_v63 = vmax.f32 %v444_v46, 0.0 }
  0x95   : > { %v782_v0 = vmax.f32 %v446_v47, 0.0  ;;  %v451_v1 = vld [vmem:[%s11540_s0 + $0x758] sm:$0xff]  ;;  %v452_v2 = vld [vmem:[%s11540_s0 + $0x760] sm:$0xff]  ;;  %v454_v3 = vld [vmem:[%s11540_s0 + $0x770] sm:$0xff]  ;;  %1166 = vst.msk [vmem:[#allocation2 + $0x368] sm:$0xff] %vm1057_vm0, %v997_v55  ;;  %v1000_v4 = vpack.c.bf16 %v778_v57, %v776_v51  ;;  %v781_v5 = vmax.f32 %v445_v52, 0.0 }
  0x96   : > { %1167 = vst [vmem:[#allocation2 + $0x370] sm:$0xff] %v998_v56  ;;  %v783_v6 = vmax.f32 %v447_v53, 0.0  ;;  %v784_v7 = vmax.f32 %v448_v54, 0.0  ;;  %v453_v8 = vld [vmem:[%s11540_s0 + $0x768] sm:$0xff]  ;;  %v455_v9 = vld [vmem:[%s11540_s0 + $0x778] sm:$0xff]  ;;  %v456_v10 = vld [vmem:[%s11540_s0 + $0x780] sm:$0xff]  ;;  %v1001_v11 = vpack.c.bf16 %v779_v62, %v777_v58 }
  0x97   : > { %1168 = vst.msk [vmem:[#allocation2 + $0x378] sm:$0xff] %vm1057_vm0, %v999_v61  ;;  %v1002_v12 = vpack.c.bf16 %v782_v0, %v780_v63  ;;  %v786_v13 = vmax.f32 %v450_v59, 0.0  ;;  %v785_v14 = vmax.f32 %v449_v60, 0.0  ;;  %v458_v15 = vld [vmem:[%s11540_s0 + $0x790] sm:$0xff]  ;;  %v457_v16 = vld [vmem:[%s11540_s0 + $0x788] sm:$0xff]  ;;  %1169 = vst [vmem:[#allocation2 + $0x380] sm:$0xff] %v1000_v4 }
  0x98   : > { %v1003_v17 = vpack.c.bf16 %v783_v6, %v781_v5  ;;  %v787_v18 = vmax.f32 %v451_v1, 0.0  ;;  %v788_v19 = vmax.f32 %v452_v2, 0.0  ;;  %v790_v20 = vmax.f32 %v454_v3, 0.0  ;;  %v459_v21 = vld [vmem:[%s11540_s0 + $0x798] sm:$0xff]  ;;  %v460_v22 = vld [vmem:[%s11540_s0 + $0x7a0] sm:$0xff]  ;;  %v462_v23 = vld [vmem:[%s11540_s0 + $0x7b0] sm:$0xff] }
  0x99   : > { %1170 = vst.msk [vmem:[#allocation2 + $0x388] sm:$0xff] %vm1057_vm0, %v1001_v11  ;;  %1171 = vst [vmem:[#allocation2 + $0x390] sm:$0xff] %v1002_v12  ;;  %v1004_v24 = vpack.c.bf16 %v786_v13, %v784_v7  ;;  %v789_v25 = vmax.f32 %v453_v8, 0.0  ;;  %v791_v26 = vmax.f32 %v455_v9, 0.0  ;;  %v792_v27 = vmax.f32 %v456_v10, 0.0  ;;  %v461_v28 = vld [vmem:[%s11540_s0 + $0x7a8] sm:$0xff] }
  0x9a   : > { %v463_v29 = vld [vmem:[%s11540_s0 + $0x7b8] sm:$0xff]  ;;  %v464_v30 = vld [vmem:[%s11540_s0 + $0x7c0] sm:$0xff]  ;;  %1172 = vst.msk [vmem:[#allocation2 + $0x398] sm:$0xff] %vm1057_vm0, %v1003_v17  ;;  %v1005_v31 = vpack.c.bf16 %v787_v18, %v785_v14  ;;  %v1006_v32 = vpack.c.bf16 %v790_v20, %v788_v19  ;;  %v794_v33 = vmax.f32 %v458_v15, 0.0  ;;  %v793_v34 = vmax.f32 %v457_v16, 0.0  ;;  %v466_v35 = vld [vmem:[%s11540_s0 + $0x7d0] sm:$0xff] }
  0x9b   : > { %v465_v36 = vld [vmem:[%s11540_s0 + $0x7c8] sm:$0xff]  ;;  %1173 = vst [vmem:[#allocation2 + $0x3a0] sm:$0xff] %v1004_v24  ;;  %v1007_v37 = vpack.c.bf16 %v791_v26, %v789_v25  ;;  %v795_v38 = vmax.f32 %v459_v21, 0.0  ;;  %v796_v39 = vmax.f32 %v460_v22, 0.0  ;;  %v798_v40 = vmax.f32 %v462_v23, 0.0  ;;  %v467_v41 = vld [vmem:[%s11540_s0 + $0x7d8] sm:$0xff] }
  0x9c   : > { %v468_v42 = vld [vmem:[%s11540_s0 + $0x7e0] sm:$0xff]  ;;  %v470_v43 = vld [vmem:[%s11540_s0 + $0x7f0] sm:$0xff]  ;;  %1174 = vst.msk [vmem:[#allocation2 + $0x3a8] sm:$0xff] %vm1057_vm0, %v1005_v31  ;;  %1175 = vst [vmem:[#allocation2 + $0x3b0] sm:$0xff] %v1006_v32  ;;  %v1008_v44 = vpack.c.bf16 %v794_v33, %v792_v27  ;;  %v797_v45 = vmax.f32 %v461_v28, 0.0  ;;  %v799_v46 = vmax.f32 %v463_v29, 0.0 }
  0x9d   : > { %v800_v47 = vmax.f32 %v464_v30, 0.0  ;;  %v469_v48 = vld [vmem:[%s11540_s0 + $0x7e8] sm:$0xff]  ;;  %v471_v49 = vld [vmem:[%s11540_s0 + $0x7f8] sm:$0xff]  ;;  %v472_v50 = vld [vmem:[%s11540_s0 + $0x800] sm:$0xff]  ;;  %1176 = vst.msk [vmem:[#allocation2 + $0x3b8] sm:$0xff] %vm1057_vm0, %v1007_v37  ;;  %v1009_v51 = vpack.c.bf16 %v795_v38, %v793_v34  ;;  %v1010_v52 = vpack.c.bf16 %v798_v40, %v796_v39  ;;  %v802_v53 = vmax.f32 %v466_v35, 0.0 }
  0x9e   : > { %v801_v54 = vmax.f32 %v465_v36, 0.0  ;;  %v474_v55 = vld [vmem:[%s11540_s0 + $0x810] sm:$0xff]  ;;  %v473_v56 = vld [vmem:[%s11540_s0 + $0x808] sm:$0xff]  ;;  %1177 = vst [vmem:[#allocation2 + $0x3c0] sm:$0xff] %v1008_v44  ;;  %v1011_v57 = vpack.c.bf16 %v799_v46, %v797_v45  ;;  %v803_v58 = vmax.f32 %v467_v41, 0.0  ;;  %v804_v59 = vmax.f32 %v468_v42, 0.0 }
  0x9f   : > { %v806_v60 = vmax.f32 %v470_v43, 0.0  ;;  %v475_v61 = vld [vmem:[%s11540_s0 + $0x818] sm:$0xff]  ;;  %v476_v62 = vld [vmem:[%s11540_s0 + $0x820] sm:$0xff]  ;;  %v478_v63 = vld [vmem:[%s11540_s0 + $0x830] sm:$0xff]  ;;  %1178 = vst.msk [vmem:[#allocation2 + $0x3c8] sm:$0xff] %vm1057_vm0, %v1009_v51  ;;  %v1012_v0 = vpack.c.bf16 %v802_v53, %v800_v47  ;;  %v805_v1 = vmax.f32 %v469_v48, 0.0 }
  0xa0   : > { %1179 = vst [vmem:[#allocation2 + $0x3d0] sm:$0xff] %v1010_v52  ;;  %v807_v2 = vmax.f32 %v471_v49, 0.0  ;;  %v808_v3 = vmax.f32 %v472_v50, 0.0  ;;  %v477_v4 = vld [vmem:[%s11540_s0 + $0x828] sm:$0xff]  ;;  %v479_v5 = vld [vmem:[%s11540_s0 + $0x838] sm:$0xff]  ;;  %v480_v6 = vld [vmem:[%s11540_s0 + $0x840] sm:$0xff]  ;;  %v1013_v7 = vpack.c.bf16 %v803_v58, %v801_v54 }
  0xa1   : > { %1180 = vst.msk [vmem:[#allocation2 + $0x3d8] sm:$0xff] %vm1057_vm0, %v1011_v57  ;;  %v1014_v8 = vpack.c.bf16 %v806_v60, %v804_v59  ;;  %v810_v9 = vmax.f32 %v474_v55, 0.0  ;;  %v809_v10 = vmax.f32 %v473_v56, 0.0  ;;  %v482_v11 = vld [vmem:[%s11540_s0 + $0x850] sm:$0xff]  ;;  %v481_v12 = vld [vmem:[%s11540_s0 + $0x848] sm:$0xff]  ;;  %1181 = vst [vmem:[#allocation2 + $0x3e0] sm:$0xff] %v1012_v0 }
  0xa2   : > { %v1015_v13 = vpack.c.bf16 %v807_v2, %v805_v1  ;;  %v811_v14 = vmax.f32 %v475_v61, 0.0  ;;  %v812_v15 = vmax.f32 %v476_v62, 0.0  ;;  %v814_v16 = vmax.f32 %v478_v63, 0.0  ;;  %v483_v17 = vld [vmem:[%s11540_s0 + $0x858] sm:$0xff]  ;;  %v484_v18 = vld [vmem:[%s11540_s0 + $0x860] sm:$0xff]  ;;  %v486_v19 = vld [vmem:[%s11540_s0 + $0x870] sm:$0xff] }
  0xa3   : > { %1182 = vst.msk [vmem:[#allocation2 + $0x3e8] sm:$0xff] %vm1057_vm0, %v1013_v7  ;;  %1183 = vst [vmem:[#allocation2 + $0x3f0] sm:$0xff] %v1014_v8  ;;  %v1016_v20 = vpack.c.bf16 %v810_v9, %v808_v3  ;;  %v813_v21 = vmax.f32 %v477_v4, 0.0  ;;  %v815_v22 = vmax.f32 %v479_v5, 0.0  ;;  %v816_v23 = vmax.f32 %v480_v6, 0.0  ;;  %v485_v24 = vld [vmem:[%s11540_s0 + $0x868] sm:$0xff] }
  0xa4   : > { %v487_v25 = vld [vmem:[%s11540_s0 + $0x878] sm:$0xff]  ;;  %v488_v26 = vld [vmem:[%s11540_s0 + $0x880] sm:$0xff]  ;;  %1184 = vst.msk [vmem:[#allocation2 + $0x3f8] sm:$0xff] %vm1057_vm0, %v1015_v13  ;;  %v1017_v27 = vpack.c.bf16 %v811_v14, %v809_v10  ;;  %v1018_v28 = vpack.c.bf16 %v814_v16, %v812_v15  ;;  %v818_v29 = vmax.f32 %v482_v11, 0.0  ;;  %v817_v30 = vmax.f32 %v481_v12, 0.0  ;;  %v490_v31 = vld [vmem:[%s11540_s0 + $0x890] sm:$0xff] }
  0xa5   : > { %v489_v32 = vld [vmem:[%s11540_s0 + $0x888] sm:$0xff]  ;;  %1185 = vst [vmem:[#allocation2 + $0x400] sm:$0xff] %v1016_v20  ;;  %v1019_v33 = vpack.c.bf16 %v815_v22, %v813_v21  ;;  %v819_v34 = vmax.f32 %v483_v17, 0.0  ;;  %v820_v35 = vmax.f32 %v484_v18, 0.0  ;;  %v822_v36 = vmax.f32 %v486_v19, 0.0  ;;  %v491_v37 = vld [vmem:[%s11540_s0 + $0x898] sm:$0xff] }
  0xa6   : > { %v492_v38 = vld [vmem:[%s11540_s0 + $0x8a0] sm:$0xff]  ;;  %v494_v39 = vld [vmem:[%s11540_s0 + $0x8b0] sm:$0xff]  ;;  %1186 = vst.msk [vmem:[#allocation2 + $0x408] sm:$0xff] %vm1057_vm0, %v1017_v27  ;;  %1187 = vst [vmem:[#allocation2 + $0x410] sm:$0xff] %v1018_v28  ;;  %v1020_v40 = vpack.c.bf16 %v818_v29, %v816_v23  ;;  %v821_v41 = vmax.f32 %v485_v24, 0.0  ;;  %v823_v42 = vmax.f32 %v487_v25, 0.0 }
  0xa7   : > { %v824_v43 = vmax.f32 %v488_v26, 0.0  ;;  %v493_v44 = vld [vmem:[%s11540_s0 + $0x8a8] sm:$0xff]  ;;  %v495_v45 = vld [vmem:[%s11540_s0 + $0x8b8] sm:$0xff]  ;;  %v496_v46 = vld [vmem:[%s11540_s0 + $0x8c0] sm:$0xff]  ;;  %1188 = vst.msk [vmem:[#allocation2 + $0x418] sm:$0xff] %vm1057_vm0, %v1019_v33  ;;  %v1021_v47 = vpack.c.bf16 %v819_v34, %v817_v30  ;;  %v1022_v48 = vpack.c.bf16 %v822_v36, %v820_v35  ;;  %v826_v49 = vmax.f32 %v490_v31, 0.0 }
  0xa8   : > { %v825_v50 = vmax.f32 %v489_v32, 0.0  ;;  %v498_v51 = vld [vmem:[%s11540_s0 + $0x8d0] sm:$0xff]  ;;  %v497_v52 = vld [vmem:[%s11540_s0 + $0x8c8] sm:$0xff]  ;;  %1189 = vst [vmem:[#allocation2 + $0x420] sm:$0xff] %v1020_v40  ;;  %v1023_v53 = vpack.c.bf16 %v823_v42, %v821_v41  ;;  %v827_v54 = vmax.f32 %v491_v37, 0.0  ;;  %v828_v55 = vmax.f32 %v492_v38, 0.0 }
  0xa9   : > { %v830_v56 = vmax.f32 %v494_v39, 0.0  ;;  %v499_v57 = vld [vmem:[%s11540_s0 + $0x8d8] sm:$0xff]  ;;  %v500_v58 = vld [vmem:[%s11540_s0 + $0x8e0] sm:$0xff]  ;;  %v502_v59 = vld [vmem:[%s11540_s0 + $0x8f0] sm:$0xff]  ;;  %1190 = vst.msk [vmem:[#allocation2 + $0x428] sm:$0xff] %vm1057_vm0, %v1021_v47  ;;  %v1024_v60 = vpack.c.bf16 %v826_v49, %v824_v43  ;;  %v829_v61 = vmax.f32 %v493_v44, 0.0 }
  0xaa   : > { %1191 = vst [vmem:[#allocation2 + $0x430] sm:$0xff] %v1022_v48  ;;  %v831_v62 = vmax.f32 %v495_v45, 0.0  ;;  %v832_v63 = vmax.f32 %v496_v46, 0.0  ;;  %v501_v0 = vld [vmem:[%s11540_s0 + $0x8e8] sm:$0xff]  ;;  %v503_v1 = vld [vmem:[%s11540_s0 + $0x8f8] sm:$0xff]  ;;  %v504_v2 = vld [vmem:[%s11540_s0 + $0x900] sm:$0xff]  ;;  %v1025_v3 = vpack.c.bf16 %v827_v54, %v825_v50 }
  0xab   : > { %1192 = vst.msk [vmem:[#allocation2 + $0x438] sm:$0xff] %vm1057_vm0, %v1023_v53  ;;  %v1026_v4 = vpack.c.bf16 %v830_v56, %v828_v55  ;;  %v834_v5 = vmax.f32 %v498_v51, 0.0  ;;  %v833_v6 = vmax.f32 %v497_v52, 0.0  ;;  %v506_v7 = vld [vmem:[%s11540_s0 + $0x910] sm:$0xff]  ;;  %v505_v8 = vld [vmem:[%s11540_s0 + $0x908] sm:$0xff]  ;;  %1193 = vst [vmem:[#allocation2 + $0x440] sm:$0xff] %v1024_v60 }
  0xac   : > { %v1027_v9 = vpack.c.bf16 %v831_v62, %v829_v61  ;;  %v835_v10 = vmax.f32 %v499_v57, 0.0  ;;  %v836_v11 = vmax.f32 %v500_v58, 0.0  ;;  %v838_v12 = vmax.f32 %v502_v59, 0.0  ;;  %v507_v13 = vld [vmem:[%s11540_s0 + $0x918] sm:$0xff]  ;;  %v508_v14 = vld [vmem:[%s11540_s0 + $0x920] sm:$0xff]  ;;  %v510_v15 = vld [vmem:[%s11540_s0 + $0x930] sm:$0xff] }
  0xad   : > { %1194 = vst.msk [vmem:[#allocation2 + $0x448] sm:$0xff] %vm1057_vm0, %v1025_v3  ;;  %1195 = vst [vmem:[#allocation2 + $0x450] sm:$0xff] %v1026_v4  ;;  %v1028_v16 = vpack.c.bf16 %v834_v5, %v832_v63  ;;  %v837_v17 = vmax.f32 %v501_v0, 0.0  ;;  %v839_v18 = vmax.f32 %v503_v1, 0.0  ;;  %v840_v19 = vmax.f32 %v504_v2, 0.0  ;;  %v509_v20 = vld [vmem:[%s11540_s0 + $0x928] sm:$0xff] }
  0xae   : > { %v511_v21 = vld [vmem:[%s11540_s0 + $0x938] sm:$0xff]  ;;  %v512_v22 = vld [vmem:[%s11540_s0 + $0x940] sm:$0xff]  ;;  %1196 = vst.msk [vmem:[#allocation2 + $0x458] sm:$0xff] %vm1057_vm0, %v1027_v9  ;;  %v1029_v23 = vpack.c.bf16 %v835_v10, %v833_v6  ;;  %v1030_v24 = vpack.c.bf16 %v838_v12, %v836_v11  ;;  %v842_v25 = vmax.f32 %v506_v7, 0.0  ;;  %v841_v26 = vmax.f32 %v505_v8, 0.0  ;;  %v514_v27 = vld [vmem:[%s11540_s0 + $0x950] sm:$0xff] }
  0xaf   : > { %v513_v28 = vld [vmem:[%s11540_s0 + $0x948] sm:$0xff]  ;;  %1197 = vst [vmem:[#allocation2 + $0x460] sm:$0xff] %v1028_v16  ;;  %v1031_v29 = vpack.c.bf16 %v839_v18, %v837_v17  ;;  %v843_v30 = vmax.f32 %v507_v13, 0.0  ;;  %v844_v31 = vmax.f32 %v508_v14, 0.0  ;;  %v846_v32 = vmax.f32 %v510_v15, 0.0  ;;  %v515_v33 = vld [vmem:[%s11540_s0 + $0x958] sm:$0xff] }
  0xb0   : > { %v516_v34 = vld [vmem:[%s11540_s0 + $0x960] sm:$0xff]  ;;  %v518_v35 = vld [vmem:[%s11540_s0 + $0x970] sm:$0xff]  ;;  %1198 = vst.msk [vmem:[#allocation2 + $0x468] sm:$0xff] %vm1057_vm0, %v1029_v23  ;;  %1199 = vst [vmem:[#allocation2 + $0x470] sm:$0xff] %v1030_v24  ;;  %v1032_v36 = vpack.c.bf16 %v842_v25, %v840_v19  ;;  %v845_v37 = vmax.f32 %v509_v20, 0.0  ;;  %v847_v38 = vmax.f32 %v511_v21, 0.0 }
  0xb1   : > { %v848_v39 = vmax.f32 %v512_v22, 0.0  ;;  %v517_v40 = vld [vmem:[%s11540_s0 + $0x968] sm:$0xff]  ;;  %v519_v41 = vld [vmem:[%s11540_s0 + $0x978] sm:$0xff]  ;;  %v520_v42 = vld [vmem:[%s11540_s0 + $0x980] sm:$0xff]  ;;  %1200 = vst.msk [vmem:[#allocation2 + $0x478] sm:$0xff] %vm1057_vm0, %v1031_v29  ;;  %v1033_v43 = vpack.c.bf16 %v843_v30, %v841_v26  ;;  %v1034_v44 = vpack.c.bf16 %v846_v32, %v844_v31  ;;  %v850_v45 = vmax.f32 %v514_v27, 0.0 }
  0xb2   : > { %v849_v46 = vmax.f32 %v513_v28, 0.0  ;;  %v522_v47 = vld [vmem:[%s11540_s0 + $0x990] sm:$0xff]  ;;  %v521_v48 = vld [vmem:[%s11540_s0 + $0x988] sm:$0xff]  ;;  %1201 = vst [vmem:[#allocation2 + $0x480] sm:$0xff] %v1032_v36  ;;  %v1035_v49 = vpack.c.bf16 %v847_v38, %v845_v37  ;;  %v851_v50 = vmax.f32 %v515_v33, 0.0  ;;  %v852_v51 = vmax.f32 %v516_v34, 0.0 }
  0xb3   : > { %v854_v52 = vmax.f32 %v518_v35, 0.0  ;;  %v523_v53 = vld [vmem:[%s11540_s0 + $0x998] sm:$0xff]  ;;  %v524_v54 = vld [vmem:[%s11540_s0 + $0x9a0] sm:$0xff]  ;;  %v526_v55 = vld [vmem:[%s11540_s0 + $0x9b0] sm:$0xff]  ;;  %1202 = vst.msk [vmem:[#allocation2 + $0x488] sm:$0xff] %vm1057_vm0, %v1033_v43  ;;  %v1036_v56 = vpack.c.bf16 %v850_v45, %v848_v39  ;;  %v853_v57 = vmax.f32 %v517_v40, 0.0 }
  0xb4   : > { %1203 = vst [vmem:[#allocation2 + $0x490] sm:$0xff] %v1034_v44  ;;  %v855_v58 = vmax.f32 %v519_v41, 0.0  ;;  %v856_v59 = vmax.f32 %v520_v42, 0.0  ;;  %v525_v60 = vld [vmem:[%s11540_s0 + $0x9a8] sm:$0xff]  ;;  %v527_v61 = vld [vmem:[%s11540_s0 + $0x9b8] sm:$0xff]  ;;  %v528_v62 = vld [vmem:[%s11540_s0 + $0x9c0] sm:$0xff]  ;;  %v1037_v63 = vpack.c.bf16 %v851_v50, %v849_v46 }
  0xb5   : > { %1204 = vst.msk [vmem:[#allocation2 + $0x498] sm:$0xff] %vm1057_vm0, %v1035_v49  ;;  %v1038_v0 = vpack.c.bf16 %v854_v52, %v852_v51  ;;  %v858_v1 = vmax.f32 %v522_v47, 0.0  ;;  %v857_v2 = vmax.f32 %v521_v48, 0.0  ;;  %v530_v3 = vld [vmem:[%s11540_s0 + $0x9d0] sm:$0xff]  ;;  %v529_v4 = vld [vmem:[%s11540_s0 + $0x9c8] sm:$0xff]  ;;  %1205 = vst [vmem:[#allocation2 + $0x4a0] sm:$0xff] %v1036_v56 }
  0xb6   : > { %v1039_v5 = vpack.c.bf16 %v855_v58, %v853_v57  ;;  %v859_v6 = vmax.f32 %v523_v53, 0.0  ;;  %v860_v7 = vmax.f32 %v524_v54, 0.0  ;;  %v862_v8 = vmax.f32 %v526_v55, 0.0  ;;  %v531_v9 = vld [vmem:[%s11540_s0 + $0x9d8] sm:$0xff]  ;;  %v532_v10 = vld [vmem:[%s11540_s0 + $0x9e0] sm:$0xff]  ;;  %v534_v11 = vld [vmem:[%s11540_s0 + $0x9f0] sm:$0xff] }
  0xb7   : > { %1206 = vst.msk [vmem:[#allocation2 + $0x4a8] sm:$0xff] %vm1057_vm0, %v1037_v63  ;;  %1207 = vst [vmem:[#allocation2 + $0x4b0] sm:$0xff] %v1038_v0  ;;  %v1040_v12 = vpack.c.bf16 %v858_v1, %v856_v59  ;;  %v861_v13 = vmax.f32 %v525_v60, 0.0  ;;  %v863_v14 = vmax.f32 %v527_v61, 0.0  ;;  %v864_v15 = vmax.f32 %v528_v62, 0.0  ;;  %v533_v16 = vld [vmem:[%s11540_s0 + $0x9e8] sm:$0xff] }
  0xb8   : > { %v535_v17 = vld [vmem:[%s11540_s0 + $0x9f8] sm:$0xff]  ;;  %v536_v18 = vld [vmem:[%s11540_s0 + $0xa00] sm:$0xff]  ;;  %1208 = vst.msk [vmem:[#allocation2 + $0x4b8] sm:$0xff] %vm1057_vm0, %v1039_v5  ;;  %v1041_v19 = vpack.c.bf16 %v859_v6, %v857_v2  ;;  %v1042_v20 = vpack.c.bf16 %v862_v8, %v860_v7  ;;  %v866_v21 = vmax.f32 %v530_v3, 0.0  ;;  %v865_v22 = vmax.f32 %v529_v4, 0.0  ;;  %v538_v23 = vld [vmem:[%s11540_s0 + $0xa10] sm:$0xff] }
  0xb9   : > { %v537_v24 = vld [vmem:[%s11540_s0 + $0xa08] sm:$0xff]  ;;  %1209 = vst [vmem:[#allocation2 + $0x4c0] sm:$0xff] %v1040_v12  ;;  %v1043_v25 = vpack.c.bf16 %v863_v14, %v861_v13  ;;  %v867_v26 = vmax.f32 %v531_v9, 0.0  ;;  %v868_v27 = vmax.f32 %v532_v10, 0.0  ;;  %v870_v28 = vmax.f32 %v534_v11, 0.0  ;;  %v539_v29 = vld [vmem:[%s11540_s0 + $0xa18] sm:$0xff] }
  0xba   : > { %v540_v30 = vld [vmem:[%s11540_s0 + $0xa20] sm:$0xff]  ;;  %v542_v31 = vld [vmem:[%s11540_s0 + $0xa30] sm:$0xff]  ;;  %1210 = vst.msk [vmem:[#allocation2 + $0x4c8] sm:$0xff] %vm1057_vm0, %v1041_v19  ;;  %1211 = vst [vmem:[#allocation2 + $0x4d0] sm:$0xff] %v1042_v20  ;;  %v1044_v32 = vpack.c.bf16 %v866_v21, %v864_v15  ;;  %v869_v33 = vmax.f32 %v533_v16, 0.0  ;;  %v871_v34 = vmax.f32 %v535_v17, 0.0 }
  0xbb   : > { %v872_v35 = vmax.f32 %v536_v18, 0.0  ;;  %v541_v36 = vld [vmem:[%s11540_s0 + $0xa28] sm:$0xff]  ;;  %v543_v37 = vld [vmem:[%s11540_s0 + $0xa38] sm:$0xff]  ;;  %v544_v38 = vld [vmem:[%s11540_s0 + $0xa40] sm:$0xff]  ;;  %1212 = vst.msk [vmem:[#allocation2 + $0x4d8] sm:$0xff] %vm1057_vm0, %v1043_v25  ;;  %v1045_v39 = vpack.c.bf16 %v867_v26, %v865_v22  ;;  %v1046_v40 = vpack.c.bf16 %v870_v28, %v868_v27  ;;  %v874_v41 = vmax.f32 %v538_v23, 0.0 }
  0xbc   : > { %v873_v42 = vmax.f32 %v537_v24, 0.0  ;;  %v546_v43 = vld [vmem:[%s11540_s0 + $0xa50] sm:$0xff]  ;;  %v545_v44 = vld [vmem:[%s11540_s0 + $0xa48] sm:$0xff]  ;;  %1213 = vst [vmem:[#allocation2 + $0x4e0] sm:$0xff] %v1044_v32  ;;  %v1047_v45 = vpack.c.bf16 %v871_v34, %v869_v33  ;;  %v875_v46 = vmax.f32 %v539_v29, 0.0  ;;  %v876_v47 = vmax.f32 %v540_v30, 0.0 }
  0xbd   : > { %v878_v48 = vmax.f32 %v542_v31, 0.0  ;;  %v547_v49 = vld [vmem:[%s11540_s0 + $0xa58] sm:$0xff]  ;;  %v548_v50 = vld [vmem:[%s11540_s0 + $0xa60] sm:$0xff]  ;;  %v550_v51 = vld [vmem:[%s11540_s0 + $0xa70] sm:$0xff]  ;;  %1214 = vst.msk [vmem:[#allocation2 + $0x4e8] sm:$0xff] %vm1057_vm0, %v1045_v39  ;;  %v1048_v52 = vpack.c.bf16 %v874_v41, %v872_v35  ;;  %v877_v53 = vmax.f32 %v541_v36, 0.0 }
  0xbe   : > { %1215 = vst [vmem:[#allocation2 + $0x4f0] sm:$0xff] %v1046_v40  ;;  %v879_v54 = vmax.f32 %v543_v37, 0.0  ;;  %v880_v55 = vmax.f32 %v544_v38, 0.0  ;;  %v549_v56 = vld [vmem:[%s11540_s0 + $0xa68] sm:$0xff]  ;;  %v551_v57 = vld [vmem:[%s11540_s0 + $0xa78] sm:$0xff]  ;;  %1216 = vst.msk [vmem:[#allocation2 + $0x4f8] sm:$0xff] %vm1057_vm0, %v1047_v45  ;;  %v1049_v58 = vpack.c.bf16 %v875_v46, %v873_v42 }
  0xbf   : > { %v1050_v59 = vpack.c.bf16 %v878_v48, %v876_v47  ;;  %v882_v60 = vmax.f32 %v546_v43, 0.0  ;;  %v881_v61 = vmax.f32 %v545_v44, 0.0  ;;  %1217 = vst [vmem:[#allocation2 + $0x500] sm:$0xff] %v1048_v52  ;;  %v883_v63 = vmax.f32 %v547_v49, 0.0 }
  0xc0   : > { %v1051_v62 = vpack.c.bf16 %v879_v54, %v877_v53  ;;  %v884_v0 = vmax.f32 %v548_v50, 0.0  ;;  %v886_v1 = vmax.f32 %v550_v51, 0.0  ;;  %1218 = vst.msk [vmem:[#allocation2 + $0x508] sm:$0xff] %vm1057_vm0, %v1049_v58  ;;  %v885_v3 = vmax.f32 %v549_v56, 0.0 }
  0xc1   : > { %1219 = vst [vmem:[#allocation2 + $0x510] sm:$0xff] %v1050_v59  ;;  %v1052_v2 = vpack.c.bf16 %v882_v60, %v880_v55  ;;  %v887_v4 = vmax.f32 %v551_v57, 0.0  ;;  %v1053_v5 = vpack.c.bf16 %v883_v63, %v881_v61 }
  0xc2   : > { %1220 = vst.msk [vmem:[#allocation2 + $0x518] sm:$0xff] %vm1057_vm0, %v1051_v62  ;;  %v1054_v6 = vpack.c.bf16 %v886_v1, %v884_v0 }
  0xc3   : > { %1221 = vst [vmem:[#allocation2 + $0x520] sm:$0xff] %v1052_v2  ;;  %v1055_v7 = vpack.c.bf16 %v887_v4, %v885_v3  ;;  %1222 = vst.msk [vmem:[#allocation2 + $0x528] sm:$0xff] %vm1057_vm0, %v1053_v5 }
  0xc4   : > { %1223 = vst [vmem:[#allocation2 + $0x530] sm:$0xff] %v1054_v6 }
  0xc5   : > { %1224 = vst.msk [vmem:[#allocation2 + $0x538] sm:$0xff] %vm1057_vm0, %v1055_v7 }
  0xc6 PF: > { %v1826_v9 = vld [vmem:[#allocation2 + $0x308] sm:$0xff]  ;;  %v1825_v11 = vld [vmem:[#allocation2 + $0x300] sm:$0xff]  ;;  %v1828_v13 = vld [vmem:[#allocation2 + $0x318] sm:$0xff]  ;;  %vm4207_vm1 = vcmask 523264   ;;  %vm7053_vm2 = vcmask 556032  }
  0xc7   : > { %5693 = vmatprep.subr.bf16.mxu0 %v1826_v9  ;;  %v1827_v15 = vld [vmem:[#allocation2 + $0x310] sm:$0xff]  ;;  %v1734_v16 = vld [vmem:[#allocation2 + $0x28] sm:$0xff]  ;;  %v1733_v18 = vld [vmem:[#allocation2 + $0x20] sm:$0xff] }
  0xc8   : > { %5694 = vmatpush1.bf16.msra.mxu0 %v1825_v11  ;;  %v1830_v17 = vld [vmem:[#allocation2 + $0x328] sm:$0xff]  ;;  %v1829_v19 = vld [vmem:[#allocation2 + $0x320] sm:$0xff]  ;;  %v1736_v20 = vld [vmem:[#allocation2 + $0x38] sm:$0xff] }
  0xc9   : > { %5695 = vmatprep.subr.bf16.mxu0 %v1828_v13  ;;  %v1832_v21 = vld [vmem:[#allocation2 + $0x338] sm:$0xff]  ;;  %v1735_v22 = vld [vmem:[#allocation2 + $0x30] sm:$0xff]  ;;  %v1738_v24 = vld [vmem:[#allocation2 + $0x48] sm:$0xff] }
  0xca   : > { %v1729_v10 = vld [vmem:[#allocation2] sm:$0xff]  ;;  %v1831_v23 = vld [vmem:[#allocation2 + $0x330] sm:$0xff]  ;;  %v1834_v25 = vld [vmem:[#allocation2 + $0x348] sm:$0xff] }
  0xcb   : > { %v1737_v26 = vld [vmem:[#allocation2 + $0x40] sm:$0xff]  ;;  %v1740_v28 = vld [vmem:[#allocation2 + $0x58] sm:$0xff]  ;;  %v1739_v30 = vld [vmem:[#allocation2 + $0x50] sm:$0xff] }
  0xcc   : > { %v1730_v8 = vld [vmem:[#allocation2 + $0x8] sm:$0xff]  ;;  %v1731_v14 = vld [vmem:[#allocation2 + $0x10] sm:$0xff]  ;;  %5696 = vmatpush1.bf16.msra.mxu0 %v1827_v15  ;;  %v1833_v27 = vld [vmem:[#allocation2 + $0x340] sm:$0xff] }
  0xcd   : > { %4334 = vmatprep.subr.bf16.mxu1 %v1730_v8  ;;  %v1732_v12 = vld [vmem:[#allocation2 + $0x18] sm:$0xff]  ;;  %5697 = vmatprep.subr.bf16.mxu0 %v1830_v17  ;;  %v1835_v31 = vld [vmem:[#allocation2 + $0x350] sm:$0xff]  ;;  %v1742_v32 = vld [vmem:[#allocation2 + $0x68] sm:$0xff] }
  0xce   : > { %4335 = vmatpush1.bf16.msra.mxu1 %v1729_v10  ;;  %v1836_v29 = vld [vmem:[#allocation2 + $0x358] sm:$0xff]  ;;  %v1838_v33 = vld [vmem:[#allocation2 + $0x368] sm:$0xff]  ;;  %v1741_v34 = vld [vmem:[#allocation2 + $0x60] sm:$0xff] }
  0xcf   : > { %4336 = vmatprep.subr.bf16.mxu1 %v1732_v12  ;;  %v8755_v35 = vld [vmem:[%s9619_s28 + $0x4] ss:$44 sps:$4 sm:$0xff]   ;;  %v8758_v37 = vld [vmem:[%s9619_s28 + $0x1c] ss:$44 sps:$4 sm:$0xff]   ;;  %v8753_v10 = vld [vmem:[%s9619_s28] ss:$44 sps:$4 sm:$0xff]  }
  0xd0   : > { %5698 = vmatpush1.bf16.msra.mxu0 %v1829_v19  ;;  %v1837_v36 = vld [vmem:[#allocation2 + $0x360] sm:$0xff]  ;;  %v1744_v38 = vld [vmem:[#allocation2 + $0x78] sm:$0xff]  ;;  %4366 = vmatprep.mubr.bf16.mxu1 %v8755_v35  ;;  %v1743_v40 = vld [vmem:[#allocation2 + $0x70] sm:$0xff] }
  0xd1   : > { %5699 = vmatprep.subr.bf16.mxu0 %v1832_v21  ;;  %v1840_v39 = vld [vmem:[#allocation2 + $0x378] sm:$0xff]  ;;  %5725 = vmatprep.mubr.bf16.mxu0 %v8758_v37  ;;  %v1839_v41 = vld [vmem:[#allocation2 + $0x370] sm:$0xff]  ;;  %v1746_v42 = vld [vmem:[#allocation2 + $0x88] sm:$0xff] }
  0xd2   : > { %4337 = vmatpush1.bf16.msra.mxu1 %v1731_v14  ;;  %v1842_v43 = vld [vmem:[#allocation2 + $0x388] sm:$0xff]  ;;  %v1745_v44 = vld [vmem:[#allocation2 + $0x80] sm:$0xff]  ;;  %v1748_v46 = vld [vmem:[#allocation2 + $0x98] sm:$0xff] }
  0xd3   : > { %4338 = vmatprep.subr.bf16.mxu1 %v1734_v16  ;;  %v1841_v45 = vld [vmem:[#allocation2 + $0x380] sm:$0xff]  ;;  %v1844_v47 = vld [vmem:[#allocation2 + $0x398] sm:$0xff]  ;;  %v1747_v48 = vld [vmem:[#allocation2 + $0x90] sm:$0xff] }
  0xd4   : > { %5700 = vmatpush1.bf16.msra.mxu0 %v1831_v23  ;;  %v1843_v49 = vld [vmem:[#allocation2 + $0x390] sm:$0xff]  ;;  %v1750_v50 = vld [vmem:[#allocation2 + $0xa8] sm:$0xff]  ;;  %v1749_v52 = vld [vmem:[#allocation2 + $0xa0] sm:$0xff] }
  0xd5   : > { %5701 = vmatprep.subr.bf16.mxu0 %v1834_v25  ;;  %v1846_v51 = vld [vmem:[#allocation2 + $0x3a8] sm:$0xff]  ;;  %v1845_v53 = vld [vmem:[#allocation2 + $0x3a0] sm:$0xff]  ;;  %v1752_v54 = vld [vmem:[#allocation2 + $0xb8] sm:$0xff] }
  0xd6   : > { %4339 = vmatpush1.bf16.msra.mxu1 %v1733_v18  ;;  %v1848_v55 = vld [vmem:[#allocation2 + $0x3b8] sm:$0xff]  ;;  %v1751_v56 = vld [vmem:[#allocation2 + $0xb0] sm:$0xff]  ;;  %v1754_v58 = vld [vmem:[#allocation2 + $0xc8] sm:$0xff] }
  0xd7   : > { %4340 = vmatprep.subr.bf16.mxu1 %v1736_v20  ;;  %v1847_v57 = vld [vmem:[#allocation2 + $0x3b0] sm:$0xff]  ;;  %v1850_v59 = vld [vmem:[#allocation2 + $0x3c8] sm:$0xff]  ;;  %v1753_v60 = vld [vmem:[#allocation2 + $0xc0] sm:$0xff] }
  0xd8   : > { %5702 = vmatpush1.bf16.msra.mxu0 %v1833_v27  ;;  %v1849_v61 = vld [vmem:[#allocation2 + $0x3c0] sm:$0xff]  ;;  %v1756_v62 = vld [vmem:[#allocation2 + $0xd8] sm:$0xff]  ;;  %v1755_v0 = vld [vmem:[#allocation2 + $0xd0] sm:$0xff] }
  0xd9   : > { %5703 = vmatprep.subr.bf16.mxu0 %v1836_v29  ;;  %v1852_v63 = vld [vmem:[#allocation2 + $0x3d8] sm:$0xff]  ;;  %v1851_v1 = vld [vmem:[#allocation2 + $0x3d0] sm:$0xff]  ;;  %v1758_v2 = vld [vmem:[#allocation2 + $0xe8] sm:$0xff] }
  0xda   : > { %4341 = vmatpush1.bf16.msra.mxu1 %v1735_v22  ;;  %v1854_v3 = vld [vmem:[#allocation2 + $0x3e8] sm:$0xff]  ;;  %v1757_v4 = vld [vmem:[#allocation2 + $0xe0] sm:$0xff]  ;;  %v1760_v6 = vld [vmem:[#allocation2 + $0xf8] sm:$0xff] }
  0xdb   : > { %4342 = vmatprep.subr.bf16.mxu1 %v1738_v24  ;;  %v1853_v5 = vld [vmem:[#allocation2 + $0x3e0] sm:$0xff]  ;;  %v1856_v7 = vld [vmem:[#allocation2 + $0x3f8] sm:$0xff]  ;;  %v1759_v8 = vld [vmem:[#allocation2 + $0xf0] sm:$0xff] }
  0xdc   : > { %5704 = vmatpush1.bf16.msra.mxu0 %v1835_v31  ;;  %v1855_v9 = vld [vmem:[#allocation2 + $0x3f0] sm:$0xff]  ;;  %v1762_v12 = vld [vmem:[#allocation2 + $0x108] sm:$0xff]  ;;  %v1761_v14 = vld [vmem:[#allocation2 + $0x100] sm:$0xff] }
  0xdd   : > { %5705 = vmatprep.subr.bf16.mxu0 %v1838_v33  ;;  %v8756_v11 = vld [vmem:[%s9619_s28 + $0x18] ss:$44 sps:$4 sm:$0xff]   ;;  %v8759_v16 = vld [vmem:[%s9619_s28 + $0x5c] ss:$44 sps:$4 sm:$0xff]   ;;  %v8761_v17 = vld [vmem:[%s9619_s28 + $0x74] ss:$44 sps:$4 sm:$0xff]  }
  0xde   : > { %4343 = vmatpush1.bf16.msra.mxu1 %v1737_v26  ;;  %v1858_v13 = vld [vmem:[#allocation2 + $0x408] sm:$0xff]  ;;  %v1857_v15 = vld [vmem:[#allocation2 + $0x400] sm:$0xff]  ;;  %v1764_v18 = vld [vmem:[#allocation2 + $0x118] sm:$0xff] }
  0xdf   : > { %4344 = vmatprep.subr.bf16.mxu1 %v1740_v28  ;;  %v1860_v19 = vld [vmem:[#allocation2 + $0x418] sm:$0xff]  ;;  %v1763_v20 = vld [vmem:[#allocation2 + $0x110] sm:$0xff]  ;;  %v1766_v24 = vld [vmem:[#allocation2 + $0x128] sm:$0xff] }
  0xe0   : > { %5706 = vmatpush1.bf16.msra.mxu0 %v1837_v36  ;;  %v8763_v21 = vld [vmem:[%s9619_s28 + $0x58] ss:$44 sps:$4 sm:$0xff]   ;;  %v8764_v22 = vld [vmem:[%s9619_s28 + $0x70] ss:$44 sps:$4 sm:$0xff]   ;;  %v8765_v26 = vld [vmem:[%s9619_s28 + $0xb4] ss:$44 sps:$4 sm:$0xff]  }
  0xe1   : > { %5707 = vmatprep.subr.bf16.mxu0 %v1840_v39  ;;  %v1859_v23 = vld [vmem:[#allocation2 + $0x410] sm:$0xff]  ;;  %v1862_v25 = vld [vmem:[#allocation2 + $0x428] sm:$0xff]  ;;  %v1765_v28 = vld [vmem:[#allocation2 + $0x120] sm:$0xff] }
  0xe2   : > { %4345 = vmatpush1.bf16.msra.mxu1 %v1739_v30  ;;  %v8767_v27 = vld [vmem:[%s9619_s28 + $0xcc] ss:$44 sps:$4 sm:$0xff]   ;;  %v1861_v29 = vld [vmem:[#allocation2 + $0x420] sm:$0xff]  ;;  %v1863_v35 = vld [vmem:[#allocation2 + $0x430] sm:$0xff] }
  0xe3   : > { %4346 = vmatprep.subr.bf16.mxu1 %v1742_v32  ;;  %v1768_v30 = vld [vmem:[#allocation2 + $0x138] sm:$0xff]  ;;  %v1770_v36 = vld [vmem:[#allocation2 + $0x148] sm:$0xff]  ;;  %v8773_v39 = vld [vmem:[%s9619_s28 + $0x124] ss:$44 sps:$4 sm:$0xff]  }
  0xe4   : > { %5708 = vmatpush1.bf16.msra.mxu0 %v1839_v41  ;;  %v1864_v31 = vld [vmem:[#allocation2 + $0x438] sm:$0xff]  ;;  %v1866_v37 = vld [vmem:[#allocation2 + $0x448] sm:$0xff]  ;;  %v1865_v41 = vld [vmem:[#allocation2 + $0x440] sm:$0xff] }
  0xe5   : > { %5709 = vmatprep.subr.bf16.mxu0 %v1842_v43  ;;  %v8769_v32 = vld [vmem:[%s9619_s28 + $0xb0] ss:$44 sps:$4 sm:$0xff]   ;;  %v8770_v33 = vld [vmem:[%s9619_s28 + $0xc8] ss:$44 sps:$4 sm:$0xff]  }
  0xe6   : > { %4347 = vmatpush1.bf16.msra.mxu1 %v1741_v34  ;;  %v1767_v34 = vld [vmem:[#allocation2 + $0x130] sm:$0xff]  ;;  %v1868_v43 = vld [vmem:[#allocation2 + $0x458] sm:$0xff] }
  0xe7   : > { %4348 = vmatprep.subr.bf16.mxu1 %v1744_v38  ;;  %v8771_v38 = vld [vmem:[%s9619_s28 + $0x10c] ss:$44 sps:$4 sm:$0xff]  }
  0xe8   : > { %5710 = vmatpush1.bf16.msra.mxu0 %v1841_v45  ;;  %v8775_v45 = vld [vmem:[%s9619_s28 + $0x108] ss:$44 sps:$4 sm:$0xff]  }
  0xe9   : > { %5711 = vmatprep.subr.bf16.mxu0 %v1844_v47  ;;  %v1867_v47 = vld [vmem:[#allocation2 + $0x450] sm:$0xff] }
  0xea   : > { %4349 = vmatpush1.bf16.msra.mxu1 %v1743_v40  ;;  %v1769_v40 = vld [vmem:[#allocation2 + $0x140] sm:$0xff] }
  0xeb   : > { %4350 = vmatprep.subr.bf16.mxu1 %v1746_v42  ;;  %v1772_v42 = vld [vmem:[#allocation2 + $0x158] sm:$0xff] }
  0xec   : > { %5712 = vmatpush1.bf16.msra.mxu0 %v1843_v49  ;;  %v8779_v49 = vld [vmem:[%s9619_s28 + $0x17c] ss:$44 sps:$4 sm:$0xff]  }
  0xed   : > { %5713 = vmatprep.subr.bf16.mxu0 %v1846_v51  ;;  %v1870_v51 = vld [vmem:[#allocation2 + $0x468] sm:$0xff] }
  0xee   : > { %4351 = vmatpush1.bf16.msra.mxu1 %v1745_v44  ;;  %v1771_v44 = vld [vmem:[#allocation2 + $0x150] sm:$0xff] }
  0xef   : > { %4352 = vmatprep.subr.bf16.mxu1 %v1748_v46  ;;  %v8776_v46 = vld [vmem:[%s9619_s28 + $0x120] ss:$44 sps:$4 sm:$0xff]  }
  0xf0   : > { %5714 = vmatpush1.bf16.msra.mxu0 %v1845_v53  ;;  %v1869_v53 = vld [vmem:[#allocation2 + $0x460] sm:$0xff] }
  0xf1   : > { %5715 = vmatprep.subr.bf16.mxu0 %v1848_v55  ;;  %v1872_v55 = vld [vmem:[#allocation2 + $0x478] sm:$0xff] }
  0xf2   : > { %4353 = vmatpush1.bf16.msra.mxu1 %v1747_v48  ;;  %v8777_v48 = vld [vmem:[%s9619_s28 + $0x164] ss:$44 sps:$4 sm:$0xff]  }
  0xf3   : > { %4354 = vmatprep.subr.bf16.mxu1 %v1750_v50  ;;  %v1774_v50 = vld [vmem:[#allocation2 + $0x168] sm:$0xff] }
  0xf4   : > { %5716 = vmatpush1.bf16.msra.mxu0 %v1847_v57  ;;  %v1871_v57 = vld [vmem:[#allocation2 + $0x470] sm:$0xff] }
  0xf5   : > { %5717 = vmatprep.subr.bf16.mxu0 %v1850_v59  ;;  %v8782_v59 = vld [vmem:[%s9619_s28 + $0x178] ss:$44 sps:$4 sm:$0xff]  }
  0xf6   : > { %4355 = vmatpush1.bf16.msra.mxu1 %v1749_v52  ;;  %v1773_v52 = vld [vmem:[#allocation2 + $0x160] sm:$0xff] }
  0xf7   : > { %4356 = vmatprep.subr.bf16.mxu1 %v1752_v54  ;;  %v1776_v54 = vld [vmem:[#allocation2 + $0x178] sm:$0xff] }
  0xf8   : > { %5718 = vmatpush1.bf16.msra.mxu0 %v1849_v61  ;;  %v8785_v61 = vld [vmem:[%s9619_s28 + $0x1d4] ss:$44 sps:$4 sm:$0xff]  }
  0xf9   : > { %5719 = vmatprep.subr.bf16.mxu0 %v1852_v63  ;;  %v8788_v63 = vld [vmem:[%s9619_s28 + $0x1d0] ss:$44 sps:$4 sm:$0xff]  }
  0xfa   : > { %4357 = vmatpush1.bf16.msra.mxu1 %v1751_v56  ;;  %v1775_v56 = vld [vmem:[#allocation2 + $0x170] sm:$0xff] }
  0xfb   : > { %4358 = vmatprep.subr.bf16.mxu1 %v1754_v58  ;;  %v8781_v58 = vld [vmem:[%s9619_s28 + $0x160] ss:$44 sps:$4 sm:$0xff]  }
  0xfc   : > { %5720 = vmatpush1.bf16.msra.mxu0 %v1851_v1  ;;  %v8791_v1 = vld [vmem:[%s9619_s28 + $0x22c] ss:$44 sps:$4 sm:$0xff]  }
  0xfd   : > { %5721 = vmatprep.subr.bf16.mxu0 %v1854_v3  ;;  %v1874_v3 = vld [vmem:[#allocation2 + $0x488] sm:$0xff] }
  0xfe   : > { %4359 = vmatpush1.bf16.msra.mxu1 %v1753_v60  ;;  %v8783_v60 = vld [vmem:[%s9619_s28 + $0x1bc] ss:$44 sps:$4 sm:$0xff]  }
  0xff   : > { %4360 = vmatprep.subr.bf16.mxu1 %v1756_v62  ;;  %v8787_v62 = vld [vmem:[%s9619_s28 + $0x1b8] ss:$44 sps:$4 sm:$0xff]  }
 0x100   : > { %5722 = vmatpush1.bf16.msra.mxu0 %v1853_v5  ;;  %v1873_v5 = vld [vmem:[#allocation2 + $0x480] sm:$0xff] }
 0x101   : > { %5723 = vmatprep.subr.bf16.mxu0 %v1856_v7  ;;  %v8794_v7 = vld [vmem:[%s9619_s28 + $0x228] ss:$44 sps:$4 sm:$0xff]  }
 0x102   : > { %4361 = vmatpush1.bf16.msra.mxu1 %v1755_v0  ;;  %v8789_v0 = vld [vmem:[%s9619_s28 + $0x214] ss:$44 sps:$4 sm:$0xff]  }
 0x103   : > { %4362 = vmatprep.subr.bf16.mxu1 %v1758_v2  ;;  %v1778_v2 = vld [vmem:[#allocation2 + $0x188] sm:$0xff] }
 0x104   : > { %5724 = vmatpush1.bf16.msra.mxu0 %v1855_v9  ;;  %v8797_v9 = vld [vmem:[%s9619_s28 + $0x284] ss:$44 sps:$4 sm:$0xff]  }
 0x105   : > { %6146 = vmatprep.subr.bf16.mxu0 %v1858_v13  ;;  %v8803_v13 = vld [vmem:[%s9619_s28 + $0x2dc] ss:$44 sps:$4 sm:$0xff]  }
 0x106   : > { %4363 = vmatpush1.bf16.msra.mxu1 %v1757_v4  ;;  %v1777_v4 = vld [vmem:[#allocation2 + $0x180] sm:$0xff] }
 0x107   : > { %4364 = vmatprep.subr.bf16.mxu1 %v1760_v6  ;;  %5726 = vmatmul.mubr.bf16.vlgmr.msra.gmra.mrb[0].mxu0 %v8756_v11  ;;  %v8793_v6 = vld [vmem:[%s9619_s28 + $0x210] ss:$44 sps:$4 sm:$0xff]   ;;  %v8800_v11 = vld [vmem:[%s9619_s28 + $0x280] ss:$44 sps:$4 sm:$0xff]  }
 0x108   : > { %6147 = vmatpush1.bf16.msra.mxu0 %v1857_v15  ;;  %5735 = vmatprep.mubr.bf16.mxu0 %v8761_v17  ;;  %v1876_v15 = vld [vmem:[#allocation2 + $0x498] sm:$0xff]  ;;  %v1875_v17 = vld [vmem:[#allocation2 + $0x490] sm:$0xff] }
 0x109   : > { %6148 = vmatprep.subr.bf16.mxu0 %v1860_v19  ;;  %v8806_v19 = vld [vmem:[%s9619_s28 + $0x2d8] ss:$44 sps:$4 sm:$0xff]  }
 0x10a   : > { %4365 = vmatpush1.bf16.msra.mxu1 %v1759_v8  ;;  %v8795_v8 = vld [vmem:[%s9619_s28 + $0x26c] ss:$44 sps:$4 sm:$0xff]  }
 0x10b   : > { %4787 = vmatprep.subr.bf16.mxu1 %v1762_v12  ;;  %v8801_v12 = vld [vmem:[%s9619_s28 + $0x2c4] ss:$44 sps:$4 sm:$0xff]  }
 0x10c   : > { %6149 = vmatpush1.bf16.msra.mxu0 %v1859_v23  ;;  %v8812_v23 = vld [vmem:[%s9619_s28 + $0x330] ss:$44 sps:$4 sm:$0xff]  }
 0x10d   : > { %4367 = vmatmul.mubr.bf16.vlgmr.msra.gmra.mrb[0].mxu1 %v8753_v10  ;;  %6150 = vmatprep.subr.bf16.mxu0 %v1862_v25  ;;  %v8799_v10 = vld [vmem:[%s9619_s28 + $0x268] ss:$44 sps:$4 sm:$0xff]   ;;  %v8815_v25 = vld [vmem:[%s9619_s28 + $0x38c] ss:$44 sps:$4 sm:$0xff]  }
 0x10e   : > { %4788 = vmatpush1.bf16.msra.mxu1 %v1761_v14  ;;  %4376 = vmatprep.mubr.bf16.mxu1 %v8759_v16  ;;  %v1780_v14 = vld [vmem:[#allocation2 + $0x198] sm:$0xff]  ;;  %v1779_v16 = vld [vmem:[#allocation2 + $0x190] sm:$0xff] }
 0x10f   : > { %4789 = vmatprep.subr.bf16.mxu1 %v1764_v18  ;;  %5736 = vmatmul.mubr.bf16.gmra.mrb[4].mxu0 %v8764_v22  ;;  %v8805_v18 = vld [vmem:[%s9619_s28 + $0x2c0] ss:$44 sps:$4 sm:$0xff]   ;;  %v8811_v22 = vld [vmem:[%s9619_s28 + $0x318] ss:$44 sps:$4 sm:$0xff]  }
 0x110   : > { %5745 = vmatprep.mubr.bf16.mxu0 %v8767_v27  ;;  %6151 = vmatpush1.bf16.msra.mxu0 %v1861_v29  ;;  %v8818_v27 = vld [vmem:[%s9619_s28 + $0x388] ss:$44 sps:$4 sm:$0xff]   ;;  %v8821_v29 = vld [vmem:[%s9619_s28 + $0x3e4] ss:$44 sps:$4 sm:$0xff]  }
 0x111   : > { %6152 = vmatprep.subr.bf16.mxu0 %v1864_v31  ;;  %v1878_v31 = vld [vmem:[#allocation2 + $0x4a8] sm:$0xff] }
 0x112   : > { %4790 = vmatpush1.bf16.msra.mxu1 %v1763_v20  ;;  %v8807_v20 = vld [vmem:[%s9619_s28 + $0x31c] ss:$44 sps:$4 sm:$0xff]  }
 0x113   : > { %4791 = vmatprep.subr.bf16.mxu1 %v1766_v24  ;;  %v8813_v24 = vld [vmem:[%s9619_s28 + $0x374] ss:$44 sps:$4 sm:$0xff]  }
 0x114   : > { %6153 = vmatpush1.bf16.msra.mxu0 %v1863_v35  ;;  %v8824_v35 = vld [vmem:[%s9619_s28 + $0x3e0] ss:$44 sps:$4 sm:$0xff]  }
 0x115   : > { %4377 = vmatmul.mubr.bf16.gmra.mrb[4].mxu1 %v8763_v21  ;;  %6154 = vmatprep.subr.bf16.mxu0 %v1866_v37  ;;  %v8809_v21 = vld [vmem:[%s9619_s28 + $0x334] ss:$44 sps:$4 sm:$0xff]   ;;  %v8827_v37 = vld [vmem:[%s9619_s28 + $0x43c] ss:$44 sps:$4 sm:$0xff]  }
 0x116   : > { %4386 = vmatprep.mubr.bf16.mxu1 %v8765_v26  ;;  %4792 = vmatpush1.bf16.msra.mxu1 %v1765_v28  ;;  %v8817_v26 = vld [vmem:[%s9619_s28 + $0x370] ss:$44 sps:$4 sm:$0xff]   ;;  %v8819_v28 = vld [vmem:[%s9619_s28 + $0x3cc] ss:$44 sps:$4 sm:$0xff]  }
 0x117   : > { %4793 = vmatprep.subr.bf16.mxu1 %v1768_v30  ;;  %5746 = vmatmul.mubr.bf16.gmra.mrb[8].mxu0 %v8770_v33  ;;  %v1782_v30 = vld [vmem:[#allocation2 + $0x1a8] sm:$0xff]  ;;  %v1877_v33 = vld [vmem:[#allocation2 + $0x4a0] sm:$0xff] }
 0x118   : > { %5755 = vmatprep.mubr.bf16.mxu0 %v8773_v39  ;;  %6155 = vmatpush1.bf16.msra.mxu0 %v1865_v41  ;;  %v8830_v39 = vld [vmem:[%s9619_s28 + $0x438] ss:$44 sps:$4 sm:$0xff]   ;;  %v8833_v41 = vld [vmem:[%s9619_s28 + $0x494] ss:$44 sps:$4 sm:$0xff]  }
 0x119   : > { %6156 = vmatprep.subr.bf16.mxu0 %v1868_v43  ;;  %v1880_v43 = vld [vmem:[#allocation2 + $0x4b8] sm:$0xff] }
 0x11a   : > { %4794 = vmatpush1.bf16.msra.mxu1 %v1767_v34  ;;  %v8823_v34 = vld [vmem:[%s9619_s28 + $0x3c8] ss:$44 sps:$4 sm:$0xff]  }
 0x11b   : > { %4795 = vmatprep.subr.bf16.mxu1 %v1770_v36  ;;  %v8825_v36 = vld [vmem:[%s9619_s28 + $0x424] ss:$44 sps:$4 sm:$0xff]  }
 0x11c   : > { %6157 = vmatpush1.bf16.msra.mxu0 %v1867_v47  ;;  %v8839_v47 = vld [vmem:[%s9619_s28 + $0x4ec] ss:$44 sps:$4 sm:$0xff]  }
 0x11d   : > { %4387 = vmatmul.mubr.bf16.gmra.mrb[8].mxu1 %v8769_v32  ;;  %6158 = vmatprep.subr.bf16.mxu0 %v1870_v51  ;;  %v1781_v32 = vld [vmem:[#allocation2 + $0x1a0] sm:$0xff] }
 0x11e   : > { %4396 = vmatprep.mubr.bf16.mxu1 %v8771_v38  ;;  %4796 = vmatpush1.bf16.msra.mxu1 %v1769_v40  ;;  %v8829_v38 = vld [vmem:[%s9619_s28 + $0x420] ss:$44 sps:$4 sm:$0xff]   ;;  %v8831_v40 = vld [vmem:[%s9619_s28 + $0x47c] ss:$44 sps:$4 sm:$0xff]  }
 0x11f   : > { %4797 = vmatprep.subr.bf16.mxu1 %v1772_v42  ;;  %5756 = vmatmul.mubr.bf16.gmra.mrb[12].mxu0 %v8776_v46  ;;  %v1784_v42 = vld [vmem:[#allocation2 + $0x1b8] sm:$0xff]  ;;  %v8837_v46 = vld [vmem:[%s9619_s28 + $0x4d4] ss:$44 sps:$4 sm:$0xff]  }
 0x120   : > { %5765 = vmatprep.mubr.bf16.mxu0 %v8779_v49  ;;  %6159 = vmatpush1.bf16.msra.mxu0 %v1869_v53  ;;  %v1879_v49 = vld [vmem:[#allocation2 + $0x4b0] sm:$0xff] }
 0x121   : > { %6160 = vmatprep.subr.bf16.mxu0 %v1872_v55  ;;  %v8842_v51 = vld [vmem:[%s9619_s28 + $0x4e8] ss:$44 sps:$4 sm:$0xff]   ;;  %v8845_v53 = vld [vmem:[%s9619_s28 + $0x544] ss:$44 sps:$4 sm:$0xff]   ;;  %v8848_v55 = vld [vmem:[%s9619_s28 + $0x540] ss:$44 sps:$4 sm:$0xff]  }
 0x122   : > { %4798 = vmatpush1.bf16.msra.mxu1 %v1771_v44  ;;  %v8835_v44 = vld [vmem:[%s9619_s28 + $0x478] ss:$44 sps:$4 sm:$0xff]  }
 0x123   : > { %4799 = vmatprep.subr.bf16.mxu1 %v1774_v50  ;;  %v8841_v50 = vld [vmem:[%s9619_s28 + $0x4d0] ss:$44 sps:$4 sm:$0xff]  }
 0x124   : > { %6161 = vmatpush1.bf16.msra.mxu0 %v1871_v57  ;;  %v8851_v57 = vld [vmem:[%s9619_s28 + $0x59c] ss:$44 sps:$4 sm:$0xff]  }
 0x125   : > { %4397 = vmatmul.mubr.bf16.gmra.mrb[12].mxu1 %v8775_v45  ;;  %6162 = vmatprep.subr.bf16.mxu0 %v1874_v3  ;;  %v8836_v45 = vld [vmem:[%s9619_s28 + $0x490] ss:$44 sps:$4 sm:$0xff]  }
 0x126   : > { %4406 = vmatprep.mubr.bf16.mxu1 %v8777_v48  ;;  %4800 = vmatpush1.bf16.msra.mxu1 %v1773_v52  ;;  %v1783_v48 = vld [vmem:[#allocation2 + $0x1b0] sm:$0xff]  ;;  %v8843_v52 = vld [vmem:[%s9619_s28 + $0x52c] ss:$44 sps:$4 sm:$0xff]  }
 0x127   : > { %4801 = vmatprep.subr.bf16.mxu1 %v1776_v54  ;;  %5766 = vmatmul.mubr.bf16.gmra.mrb[16].mxu0 %v8782_v59  ;;  %v8847_v54 = vld [vmem:[%s9619_s28 + $0x528] ss:$44 sps:$4 sm:$0xff]   ;;  %v8860_v3 = vld [vmem:[%s9619_s28 + $0x5f0] ss:$44 sps:$4 sm:$0xff]  }
 0x128   : > { %5775 = vmatprep.mubr.bf16.mxu0 %v8785_v61  ;;  %6163 = vmatpush1.bf16.msra.mxu0 %v1873_v5  ;;  %v1882_v59 = vld [vmem:[#allocation2 + $0x4c8] sm:$0xff]  ;;  %v1881_v61 = vld [vmem:[#allocation2 + $0x4c0] sm:$0xff] }
 0x129   : > { %6164 = vmatprep.subr.bf16.mxu0 %v1876_v15  ;;  %v8863_v5 = vld [vmem:[%s9619_s28 + $0x64c] ss:$44 sps:$4 sm:$0xff]  }
 0x12a   : > { %4802 = vmatpush1.bf16.msra.mxu1 %v1775_v56  ;;  %v8849_v56 = vld [vmem:[%s9619_s28 + $0x584] ss:$44 sps:$4 sm:$0xff]   ;;  %v8872_v15 = vld [vmem:[%s9619_s28 + $0x6a0] ss:$44 sps:$4 sm:$0xff]  }
 0x12b   : > { %4803 = vmatprep.subr.bf16.mxu1 %v1778_v2  ;;  %v8859_v2 = vld [vmem:[%s9619_s28 + $0x5d8] ss:$44 sps:$4 sm:$0xff]  }
 0x12c   : > { %6165 = vmatpush1.bf16.msra.mxu0 %v1875_v17  ;;  %v8875_v17 = vld [vmem:[%s9619_s28 + $0x6fc] ss:$44 sps:$4 sm:$0xff]  }
 0x12d   : > { %4407 = vmatmul.mubr.bf16.gmra.mrb[16].mxu1 %v8781_v58  ;;  %6166 = vmatprep.subr.bf16.mxu0 %v1878_v31  ;;  %v1786_v58 = vld [vmem:[#allocation2 + $0x1c8] sm:$0xff] }
 0x12e   : > { %4416 = vmatprep.mubr.bf16.mxu1 %v8783_v60  ;;  %4804 = vmatpush1.bf16.msra.mxu1 %v1777_v4  ;;  %v1785_v60 = vld [vmem:[#allocation2 + $0x1c0] sm:$0xff] }
 0x12f   : > { %5776 = vmatmul.mubr.bf16.gmra.mrb[20].mxu0 %v8788_v63  ;;  %4805 = vmatprep.subr.bf16.mxu1 %v1780_v14  ;;  %v8854_v63 = vld [vmem:[%s9619_s28 + $0x598] ss:$44 sps:$4 sm:$0xff]   ;;  %v8861_v4 = vld [vmem:[%s9619_s28 + $0x634] ss:$44 sps:$4 sm:$0xff]  }
 0x130   : > { %5785 = vmatprep.mubr.bf16.mxu0 %v8791_v1  ;;  %6167 = vmatpush1.bf16.msra.mxu0 %v1877_v33  ;;  %v8857_v1 = vld [vmem:[%s9619_s28 + $0x5f4] ss:$44 sps:$4 sm:$0xff]   ;;  %v8893_v33 = vld [vmem:[%s9619_s28 + $0x804] ss:$44 sps:$4 sm:$0xff]  }
 0x131   : > { %6168 = vmatprep.subr.bf16.mxu0 %v1880_v43  ;;  %v8871_v14 = vld [vmem:[%s9619_s28 + $0x688] ss:$44 sps:$4 sm:$0xff]   ;;  %v8902_v43 = vld [vmem:[%s9619_s28 + $0x858] ss:$44 sps:$4 sm:$0xff]  }
 0x132   : > { %4806 = vmatpush1.bf16.msra.mxu1 %v1779_v16  ;;  %v8873_v16 = vld [vmem:[%s9619_s28 + $0x6e4] ss:$44 sps:$4 sm:$0xff]   ;;  %v8890_v31 = vld [vmem:[%s9619_s28 + $0x7a8] ss:$44 sps:$4 sm:$0xff]  }
 0x133   : > { %4807 = vmatprep.subr.bf16.mxu1 %v1782_v30  ;;  %v8889_v30 = vld [vmem:[%s9619_s28 + $0x790] ss:$44 sps:$4 sm:$0xff]  }
 0x134   : > { %6169 = vmatpush1.bf16.msra.mxu0 %v1879_v49  ;;  %v8911_v49 = vld [vmem:[%s9619_s28 + $0x90c] ss:$44 sps:$4 sm:$0xff]  }
 0x135   : > { %4417 = vmatmul.mubr.bf16.gmra.mrb[20].mxu1 %v8787_v62  ;;  %v8853_v62 = vld [vmem:[%s9619_s28 + $0x580] ss:$44 sps:$4 sm:$0xff]   ;;  %6170 = vmatprep.subr.bf16.mxu0 %v1882_v59  ;;  %v8923_v59 = vld [vmem:[%s9619_s28 + $0x9bc] ss:$44 sps:$4 sm:$0xff]  }
 0x136   : > { %4426 = vmatprep.mubr.bf16.mxu1 %v8789_v0  ;;  %4808 = vmatpush1.bf16.msra.mxu1 %v1781_v32  ;;  %v8855_v0 = vld [vmem:[%s9619_s28 + $0x5dc] ss:$44 sps:$4 sm:$0xff]   ;;  %v8891_v32 = vld [vmem:[%s9619_s28 + $0x7ec] ss:$44 sps:$4 sm:$0xff]  }
 0x137   : > { %5786 = vmatmul.mubr.bf16.gmra.mrb[24].mxu0 %v8794_v7  ;;  %4809 = vmatprep.subr.bf16.mxu1 %v1784_v42  ;;  %v8866_v7 = vld [vmem:[%s9619_s28 + $0x648] ss:$44 sps:$4 sm:$0xff]   ;;  %v8901_v42 = vld [vmem:[%s9619_s28 + $0x840] ss:$44 sps:$4 sm:$0xff]  }
 0x138   : > { %5795 = vmatprep.mubr.bf16.mxu0 %v8797_v9  ;;  %6171 = vmatpush1.bf16.msra.mxu0 %v1881_v61  ;;  %v8869_v9 = vld [vmem:[%s9619_s28 + $0x6a4] ss:$44 sps:$4 sm:$0xff]  }
 0x139   : > { %v8926_v61 = vld [vmem:[%s9619_s28 + $0x9b8] ss:$44 sps:$4 sm:$0xff]  }
 0x13a   : > { %4810 = vmatpush1.bf16.msra.mxu1 %v1783_v48  ;;  %v8909_v48 = vld [vmem:[%s9619_s28 + $0x8f4] ss:$44 sps:$4 sm:$0xff]  }
 0x13b   : > { %4811 = vmatprep.subr.bf16.mxu1 %v1786_v58  ;;  %v8921_v58 = vld [vmem:[%s9619_s28 + $0x9a4] ss:$44 sps:$4 sm:$0xff]  }
 0x13d   : > { %4427 = vmatmul.mubr.bf16.gmra.mrb[24].mxu1 %v8793_v6  ;;  %v8865_v6 = vld [vmem:[%s9619_s28 + $0x630] ss:$44 sps:$4 sm:$0xff]  }
 0x13e   : > { %4436 = vmatprep.mubr.bf16.mxu1 %v8795_v8  ;;  %4812 = vmatpush1.bf16.msra.mxu1 %v1785_v60  ;;  %v8867_v8 = vld [vmem:[%s9619_s28 + $0x68c] ss:$44 sps:$4 sm:$0xff]  }
 0x13f   : > { %5796 = vmatmul.mubr.bf16.gmra.mrb[28].mxu0 %v8800_v11  ;;  %v1884_v11 = vld [vmem:[#allocation2 + $0x4d8] sm:$0xff] }
 0x140   : > { %5805 = vmatprep.mubr.bf16.mxu0 %v8803_v13  ;;  %v1883_v13 = vld [vmem:[#allocation2 + $0x4d0] sm:$0xff]  ;;  %6172 = vmatprep.subr.bf16.mxu0 %v1884_v11  ;;  %v8947_v11 = vld [vmem:[%s9619_s28 + $0xb1c] ss:$44 sps:$4 sm:$0xff]  }
 0x141   : > { %6173 = vmatpush1.bf16.msra.mxu0 %v1883_v13  ;;  %v8925_v60 = vld [vmem:[%s9619_s28 + $0x9a0] ss:$44 sps:$4 sm:$0xff]   ;;  %v8950_v13 = vld [vmem:[%s9619_s28 + $0xb18] ss:$44 sps:$4 sm:$0xff]  }
 0x145   : > { %4437 = vmatmul.mubr.bf16.gmra.mrb[28].mxu1 %v8799_v10  ;;  %v1788_v10 = vld [vmem:[#allocation2 + $0x1d8] sm:$0xff] }
 0x146   : > { %4446 = vmatprep.mubr.bf16.mxu1 %v8801_v12  ;;  %v1787_v12 = vld [vmem:[#allocation2 + $0x1d0] sm:$0xff]  ;;  %4813 = vmatprep.subr.bf16.mxu1 %v1788_v10 }
 0x147   : > { %5806 = vmatmul.mubr.bf16.gmra.mrb[32].mxu0 %v8806_v19  ;;  %4814 = vmatpush1.bf16.msra.mxu1 %v1787_v12  ;;  %v8878_v19 = vld [vmem:[%s9619_s28 + $0x6f8] ss:$44 sps:$4 sm:$0xff]   ;;  %v8949_v12 = vld [vmem:[%s9619_s28 + $0xb00] ss:$44 sps:$4 sm:$0xff]  }
 0x148   : > { %5815 = vmatprep.mubr.bf16.mxu0 %v8809_v21  ;;  %v8881_v21 = vld [vmem:[%s9619_s28 + $0x754] ss:$44 sps:$4 sm:$0xff]   ;;  %v8945_v10 = vld [vmem:[%s9619_s28 + $0xb04] ss:$44 sps:$4 sm:$0xff]  }
 0x14d   : > { %4447 = vmatmul.mubr.bf16.gmra.mrb[32].mxu1 %v8805_v18  ;;  %v8877_v18 = vld [vmem:[%s9619_s28 + $0x6e0] ss:$44 sps:$4 sm:$0xff]  }
 0x14e   : > { %4456 = vmatprep.mubr.bf16.mxu1 %v8807_v20  ;;  %v8879_v20 = vld [vmem:[%s9619_s28 + $0x73c] ss:$44 sps:$4 sm:$0xff]  }
 0x14f   : > { %5816 = vmatmul.mubr.bf16.gmra.mrb[36].mxu0 %v8812_v23  ;;  %v1886_v23 = vld [vmem:[#allocation2 + $0x4e8] sm:$0xff] }
 0x150   : > { %5825 = vmatprep.mubr.bf16.mxu0 %v8815_v25  ;;  %v1885_v25 = vld [vmem:[#allocation2 + $0x4e0] sm:$0xff]  ;;  %6174 = vmatprep.subr.bf16.mxu0 %v1886_v23 }
 0x151   : > { %6175 = vmatpush1.bf16.msra.mxu0 %v1885_v25  ;;  %v8965_v23 = vld [vmem:[%s9619_s28 + $0xc24] ss:$44 sps:$4 sm:$0xff]   ;;  %v8968_v25 = vld [vmem:[%s9619_s28 + $0xc20] ss:$44 sps:$4 sm:$0xff]  }
 0x155   : > { %4457 = vmatmul.mubr.bf16.gmra.mrb[36].mxu1 %v8811_v22  ;;  %v1790_v22 = vld [vmem:[#allocation2 + $0x1e8] sm:$0xff] }
 0x156   : > { %4466 = vmatprep.mubr.bf16.mxu1 %v8813_v24  ;;  %v1789_v24 = vld [vmem:[#allocation2 + $0x1e0] sm:$0xff]  ;;  %4815 = vmatprep.subr.bf16.mxu1 %v1790_v22  ;;  %v8963_v22 = vld [vmem:[%s9619_s28 + $0xc0c] ss:$44 sps:$4 sm:$0xff]  }
 0x157   : > { %5826 = vmatmul.mubr.bf16.gmra.mrb[40].mxu0 %v8818_v27  ;;  %v8884_v27 = vld [vmem:[%s9619_s28 + $0x750] ss:$44 sps:$4 sm:$0xff]   ;;  %4816 = vmatpush1.bf16.msra.mxu1 %v1789_v24  ;;  %v8967_v24 = vld [vmem:[%s9619_s28 + $0xc08] ss:$44 sps:$4 sm:$0xff]  }
 0x158   : > { %5835 = vmatprep.mubr.bf16.mxu0 %v8821_v29  ;;  %v8887_v29 = vld [vmem:[%s9619_s28 + $0x7ac] ss:$44 sps:$4 sm:$0xff]  }
 0x15d   : > { %4467 = vmatmul.mubr.bf16.gmra.mrb[40].mxu1 %v8817_v26  ;;  %v8883_v26 = vld [vmem:[%s9619_s28 + $0x738] ss:$44 sps:$4 sm:$0xff]  }
 0x15e   : > { %4476 = vmatprep.mubr.bf16.mxu1 %v8819_v28  ;;  %v8885_v28 = vld [vmem:[%s9619_s28 + $0x794] ss:$44 sps:$4 sm:$0xff]  }
 0x15f   : > { %5836 = vmatmul.mubr.bf16.gmra.mrb[44].mxu0 %v8824_v35  ;;  %v8896_v35 = vld [vmem:[%s9619_s28 + $0x800] ss:$44 sps:$4 sm:$0xff]  }
 0x160   : > { %5845 = vmatprep.mubr.bf16.mxu0 %v8827_v37  ;;  %v8899_v37 = vld [vmem:[%s9619_s28 + $0x85c] ss:$44 sps:$4 sm:$0xff]  }
 0x165   : > { %4477 = vmatmul.mubr.bf16.gmra.mrb[44].mxu1 %v8823_v34  ;;  %v8895_v34 = vld [vmem:[%s9619_s28 + $0x7e8] ss:$44 sps:$4 sm:$0xff]  }
 0x166   : > { %4486 = vmatprep.mubr.bf16.mxu1 %v8825_v36  ;;  %v8897_v36 = vld [vmem:[%s9619_s28 + $0x844] ss:$44 sps:$4 sm:$0xff]  }
 0x167   : > { %5846 = vmatmul.mubr.bf16.gmra.mrb[48].mxu0 %v8830_v39  ;;  %v1888_v39 = vld [vmem:[#allocation2 + $0x4f8] sm:$0xff] }
 0x168   : > { %5855 = vmatprep.mubr.bf16.mxu0 %v8833_v41  ;;  %v1887_v41 = vld [vmem:[#allocation2 + $0x4f0] sm:$0xff]  ;;  %6176 = vmatprep.subr.bf16.mxu0 %v1888_v39 }
 0x169   : > { %6177 = vmatpush1.bf16.msra.mxu0 %v1887_v41  ;;  %v8989_v39 = vld [vmem:[%s9619_s28 + $0xd84] ss:$44 sps:$4 sm:$0xff]   ;;  %v8992_v41 = vld [vmem:[%s9619_s28 + $0xd80] ss:$44 sps:$4 sm:$0xff]  }
 0x16d   : > { %4487 = vmatmul.mubr.bf16.gmra.mrb[48].mxu1 %v8829_v38  ;;  %v1792_v38 = vld [vmem:[#allocation2 + $0x1f8] sm:$0xff] }
 0x16e   : > { %4496 = vmatprep.mubr.bf16.mxu1 %v8831_v40  ;;  %v1791_v40 = vld [vmem:[#allocation2 + $0x1f0] sm:$0xff]  ;;  %4817 = vmatprep.subr.bf16.mxu1 %v1792_v38  ;;  %v8987_v38 = vld [vmem:[%s9619_s28 + $0xd6c] ss:$44 sps:$4 sm:$0xff]  }
 0x16f   : > { %5856 = vmatmul.mubr.bf16.gmra.mrb[52].mxu0 %v8836_v45  ;;  %v8905_v45 = vld [vmem:[%s9619_s28 + $0x8b4] ss:$44 sps:$4 sm:$0xff]   ;;  %4818 = vmatpush1.bf16.msra.mxu1 %v1791_v40 }
 0x170   : > { %5865 = vmatprep.mubr.bf16.mxu0 %v8839_v47  ;;  %v8908_v47 = vld [vmem:[%s9619_s28 + $0x8b0] ss:$44 sps:$4 sm:$0xff]   ;;  %v8991_v40 = vld [vmem:[%s9619_s28 + $0xd68] ss:$44 sps:$4 sm:$0xff]  }
 0x175   : > { %4497 = vmatmul.mubr.bf16.gmra.mrb[52].mxu1 %v8835_v44  ;;  %v8903_v44 = vld [vmem:[%s9619_s28 + $0x89c] ss:$44 sps:$4 sm:$0xff]  }
 0x176   : > { %4506 = vmatprep.mubr.bf16.mxu1 %v8837_v46  ;;  %v8907_v46 = vld [vmem:[%s9619_s28 + $0x898] ss:$44 sps:$4 sm:$0xff]  }
 0x177   : > { %5866 = vmatmul.mubr.bf16.gmra.mrb[56].mxu0 %v8842_v51  ;;  %v8914_v51 = vld [vmem:[%s9619_s28 + $0x908] ss:$44 sps:$4 sm:$0xff]  }
 0x178   : > { %5875 = vmatprep.mubr.bf16.mxu0 %v8845_v53  ;;  %v8917_v53 = vld [vmem:[%s9619_s28 + $0x964] ss:$44 sps:$4 sm:$0xff]  }
 0x17d   : > { %4507 = vmatmul.mubr.bf16.gmra.mrb[56].mxu1 %v8841_v50  ;;  %v8913_v50 = vld [vmem:[%s9619_s28 + $0x8f0] ss:$44 sps:$4 sm:$0xff]  }
 0x17e   : > { %4516 = vmatprep.mubr.bf16.mxu1 %v8843_v52  ;;  %v8915_v52 = vld [vmem:[%s9619_s28 + $0x94c] ss:$44 sps:$4 sm:$0xff]  }
 0x17f   : > { %5876 = vmatmul.mubr.bf16.gmra.mrb[60].mxu0 %v8848_v55  ;;  %v1890_v55 = vld [vmem:[#allocation2 + $0x508] sm:$0xff] }
 0x180   : > { %5885 = vmatprep.mubr.bf16.mxu0 %v8851_v57  ;;  %6599 = vmatprep.subr.bf16.mxu0 %v1890_v55  ;;  %v8920_v57 = vld [vmem:[%s9619_s28 + $0x960] ss:$44 sps:$4 sm:$0xff]  }
 0x181   : > { %v1889_v55 = vld [vmem:[#allocation2 + $0x500] sm:$0xff] }
 0x185   : > { %4517 = vmatmul.mubr.bf16.gmra.mrb[60].mxu1 %v8847_v54  ;;  %v1794_v54 = vld [vmem:[#allocation2 + $0x208] sm:$0xff] }
 0x186   : > { %4526 = vmatprep.mubr.bf16.mxu1 %v8849_v56  ;;  %5240 = vmatprep.subr.bf16.mxu1 %v1794_v54  ;;  %v8919_v56 = vld [vmem:[%s9619_s28 + $0x948] ss:$44 sps:$4 sm:$0xff]  }
 0x187   : > { %5886 = vmatmul.mubr.bf16.gmra.mrb[64].mxu0 %v8854_v63  ;;  %v8929_v63 = vld [vmem:[%s9619_s28 + $0xa14] ss:$44 sps:$4 sm:$0xff]  }
 0x188   : > { %5895 = vmatprep.mubr.bf16.mxu0 %v8857_v1  ;;  %v8932_v1 = vld [vmem:[%s9619_s28 + $0xa10] ss:$44 sps:$4 sm:$0xff]  }
 0x189   : > { %v1793_v54 = vld [vmem:[#allocation2 + $0x200] sm:$0xff] }
 0x18d   : > { %4527 = vmatmul.mubr.bf16.gmra.mrb[64].mxu1 %v8853_v62  ;;  %v8927_v62 = vld [vmem:[%s9619_s28 + $0x9fc] ss:$44 sps:$4 sm:$0xff]  }
 0x18e   : > { %4536 = vmatprep.mubr.bf16.mxu1 %v8855_v0  ;;  %v8931_v0 = vld [vmem:[%s9619_s28 + $0x9f8] ss:$44 sps:$4 sm:$0xff]  }
 0x18f   : > { %5896 = vmatmul.mubr.bf16.gmra.mrb[68].mxu0 %v8860_v3  ;;  %v8935_v3 = vld [vmem:[%s9619_s28 + $0xa6c] ss:$44 sps:$4 sm:$0xff]  }
 0x190   : > { %5905 = vmatprep.mubr.bf16.mxu0 %v8863_v5  ;;  %v8938_v5 = vld [vmem:[%s9619_s28 + $0xa68] ss:$44 sps:$4 sm:$0xff]  }
 0x195   : > { %4537 = vmatmul.mubr.bf16.gmra.mrb[68].mxu1 %v8859_v2  ;;  %v8933_v2 = vld [vmem:[%s9619_s28 + $0xa54] ss:$44 sps:$4 sm:$0xff]  }
 0x196   : > { %4546 = vmatprep.mubr.bf16.mxu1 %v8861_v4  ;;  %v8937_v4 = vld [vmem:[%s9619_s28 + $0xa50] ss:$44 sps:$4 sm:$0xff]  }
 0x197   : > { %5906 = vmatmul.mubr.bf16.gmra.mrb[72].mxu0 %v8866_v7  ;;  %v8941_v7 = vld [vmem:[%s9619_s28 + $0xac4] ss:$44 sps:$4 sm:$0xff]  }
 0x198   : > { %5915 = vmatprep.mubr.bf16.mxu0 %v8869_v9  ;;  %v8944_v9 = vld [vmem:[%s9619_s28 + $0xac0] ss:$44 sps:$4 sm:$0xff]  }
 0x19d   : > { %4547 = vmatmul.mubr.bf16.gmra.mrb[72].mxu1 %v8865_v6  ;;  %v8939_v6 = vld [vmem:[%s9619_s28 + $0xaac] ss:$44 sps:$4 sm:$0xff]  }
 0x19e   : > { %4556 = vmatprep.mubr.bf16.mxu1 %v8867_v8  ;;  %v8943_v8 = vld [vmem:[%s9619_s28 + $0xaa8] ss:$44 sps:$4 sm:$0xff]  }
 0x19f   : > { %5916 = vmatmul.mubr.bf16.gmra.mrb[76].mxu0 %v8872_v15  ;;  %v8953_v15 = vld [vmem:[%s9619_s28 + $0xb74] ss:$44 sps:$4 sm:$0xff]  }
 0x1a0   : > { %5925 = vmatprep.mubr.bf16.mxu0 %v8875_v17  ;;  %v8956_v17 = vld [vmem:[%s9619_s28 + $0xb70] ss:$44 sps:$4 sm:$0xff]  }
 0x1a5   : > { %4557 = vmatmul.mubr.bf16.gmra.mrb[76].mxu1 %v8871_v14  ;;  %v8951_v14 = vld [vmem:[%s9619_s28 + $0xb5c] ss:$44 sps:$4 sm:$0xff]  }
 0x1a6   : > { %4566 = vmatprep.mubr.bf16.mxu1 %v8873_v16  ;;  %v8955_v16 = vld [vmem:[%s9619_s28 + $0xb58] ss:$44 sps:$4 sm:$0xff]  }
 0x1a7   : > { %5926 = vmatmul.mubr.bf16.gmra.mrb[80].mxu0 %v8878_v19  ;;  %v8959_v19 = vld [vmem:[%s9619_s28 + $0xbcc] ss:$44 sps:$4 sm:$0xff]  }
 0x1a8   : > { %5935 = vmatprep.mubr.bf16.mxu0 %v8881_v21  ;;  %v8962_v21 = vld [vmem:[%s9619_s28 + $0xbc8] ss:$44 sps:$4 sm:$0xff]  }
 0x1ad   : > { %4567 = vmatmul.mubr.bf16.gmra.mrb[80].mxu1 %v8877_v18  ;;  %v8957_v18 = vld [vmem:[%s9619_s28 + $0xbb4] ss:$44 sps:$4 sm:$0xff]  }
 0x1ae   : > { %4576 = vmatprep.mubr.bf16.mxu1 %v8879_v20  ;;  %v8961_v20 = vld [vmem:[%s9619_s28 + $0xbb0] ss:$44 sps:$4 sm:$0xff]  }
 0x1af   : > { %5936 = vmatmul.mubr.bf16.gmra.mrb[84].mxu0 %v8884_v27  ;;  %v8971_v27 = vld [vmem:[%s9619_s28 + $0xc7c] ss:$44 sps:$4 sm:$0xff]  }
 0x1b0   : > { %5945 = vmatprep.mubr.bf16.mxu0 %v8887_v29  ;;  %v8974_v29 = vld [vmem:[%s9619_s28 + $0xc78] ss:$44 sps:$4 sm:$0xff]  }
 0x1b5   : > { %4577 = vmatmul.mubr.bf16.gmra.mrb[84].mxu1 %v8883_v26  ;;  %v8969_v26 = vld [vmem:[%s9619_s28 + $0xc64] ss:$44 sps:$4 sm:$0xff]  }
 0x1b6   : > { %4586 = vmatprep.mubr.bf16.mxu1 %v8885_v28  ;;  %v8973_v28 = vld [vmem:[%s9619_s28 + $0xc60] ss:$44 sps:$4 sm:$0xff]  }
 0x1b7   : > { %5946 = vmatmul.mubr.bf16.gmra.mrb[88].mxu0 %v8890_v31  ;;  %v8977_v31 = vld [vmem:[%s9619_s28 + $0xcd4] ss:$44 sps:$4 sm:$0xff]  }
 0x1b8   : > { %5955 = vmatprep.mubr.bf16.mxu0 %v8893_v33  ;;  %v8980_v33 = vld [vmem:[%s9619_s28 + $0xcd0] ss:$44 sps:$4 sm:$0xff]  }
 0x1bd   : > { %4587 = vmatmul.mubr.bf16.gmra.mrb[88].mxu1 %v8889_v30  ;;  %v8975_v30 = vld [vmem:[%s9619_s28 + $0xcbc] ss:$44 sps:$4 sm:$0xff]  }
 0x1be   : > { %4596 = vmatprep.mubr.bf16.mxu1 %v8891_v32  ;;  %v8979_v32 = vld [vmem:[%s9619_s28 + $0xcb8] ss:$44 sps:$4 sm:$0xff]  }
 0x1bf   : > { %5956 = vmatmul.mubr.bf16.gmra.mrb[92].mxu0 %v8896_v35  ;;  %v8983_v35 = vld [vmem:[%s9619_s28 + $0xd2c] ss:$44 sps:$4 sm:$0xff]  }
 0x1c0   : > { %5965 = vmatprep.mubr.bf16.mxu0 %v8899_v37  ;;  %v8986_v37 = vld [vmem:[%s9619_s28 + $0xd28] ss:$44 sps:$4 sm:$0xff]  }
 0x1c5   : > { %4597 = vmatmul.mubr.bf16.gmra.mrb[92].mxu1 %v8895_v34  ;;  %v8981_v34 = vld [vmem:[%s9619_s28 + $0xd14] ss:$44 sps:$4 sm:$0xff]  }
 0x1c6   : > { %4606 = vmatprep.mubr.bf16.mxu1 %v8897_v36  ;;  %v8985_v36 = vld [vmem:[%s9619_s28 + $0xd10] ss:$44 sps:$4 sm:$0xff]  }
 0x1c7   : > { %5966 = vmatmul.mubr.bf16.gmra.mrb[96].mxu0 %v8902_v43  ;;  %v8995_v43 = vld [vmem:[%s9619_s28 + $0xddc] ss:$44 sps:$4 sm:$0xff]  }
 0x1c8   : > { %5975 = vmatprep.mubr.bf16.mxu0 %v8905_v45  ;;  %v8998_v45 = vld [vmem:[%s9619_s28 + $0xdd8] ss:$44 sps:$4 sm:$0xff]  }
 0x1cd   : > { %4607 = vmatmul.mubr.bf16.gmra.mrb[96].mxu1 %v8901_v42  ;;  %v8993_v42 = vld [vmem:[%s9619_s28 + $0xdc4] ss:$44 sps:$4 sm:$0xff]  }
 0x1ce   : > { %4616 = vmatprep.mubr.bf16.mxu1 %v8903_v44  ;;  %v8997_v44 = vld [vmem:[%s9619_s28 + $0xdc0] ss:$44 sps:$4 sm:$0xff]  }
 0x1cf   : > { %5976 = vmatmul.mubr.bf16.gmra.mrb[100].mxu0 %v8908_v47  ;;  %v9001_v47 = vld [vmem:[%s9619_s28 + $0xe34] ss:$44 sps:$4 sm:$0xff]  }
 0x1d0   : > { %5985 = vmatprep.mubr.bf16.mxu0 %v8911_v49  ;;  %v9004_v49 = vld [vmem:[%s9619_s28 + $0xe30] ss:$44 sps:$4 sm:$0xff]  }
 0x1d5   : > { %4617 = vmatmul.mubr.bf16.gmra.mrb[100].mxu1 %v8907_v46  ;;  %v8999_v46 = vld [vmem:[%s9619_s28 + $0xe1c] ss:$44 sps:$4 sm:$0xff]  }
 0x1d6   : > { %4626 = vmatprep.mubr.bf16.mxu1 %v8909_v48  ;;  %v9003_v48 = vld [vmem:[%s9619_s28 + $0xe18] ss:$44 sps:$4 sm:$0xff]  }
 0x1d7   : > { %5986 = vmatmul.mubr.bf16.gmra.mrb[104].mxu0 %v8914_v51  ;;  %v9010_v51 = vld [vmem:[%s9619_s28 + $0x24] ss:$44 sps:$4 sm:$0xff]  }
 0x1d8   : > { %5995 = vmatprep.mubr.bf16.mxu0 %v8917_v53  ;;  %v9008_v53 = vld [vmem:[%s9619_s28 + $0x20] ss:$44 sps:$4 sm:$0xff]  }
 0x1dd   : > { %4627 = vmatmul.mubr.bf16.gmra.mrb[104].mxu1 %v8913_v50  ;;  %v9007_v50 = vld [vmem:[%s9619_s28 + $0xc] ss:$44 sps:$4 sm:$0xff]  }
 0x1de   : > { %4636 = vmatprep.mubr.bf16.mxu1 %v8915_v52  ;;  %v9005_v52 = vld [vmem:[%s9619_s28 + $0x8] ss:$44 sps:$4 sm:$0xff]  }
 0x1df   : > { %5996 = vmatmul.mubr.bf16.gmra.mrb[108].mxu0 %v8920_v57  ;;  %v9013_v57 = vld [vmem:[%s9619_s28 + $0x7c] ss:$44 sps:$4 sm:$0xff]  }
 0x1e0   : > { %6005 = vmatprep.mubr.bf16.mxu0 %v8923_v59  ;;  %v1892_v59 = vld [vmem:[#allocation2 + $0x518] sm:$0xff] }
 0x1e5   : > { %4637 = vmatmul.mubr.bf16.gmra.mrb[108].mxu1 %v8919_v56  ;;  %v9011_v56 = vld [vmem:[%s9619_s28 + $0x64] ss:$44 sps:$4 sm:$0xff]  }
 0x1e6   : > { %4646 = vmatprep.mubr.bf16.mxu1 %v8921_v58  ;;  %v1796_v58 = vld [vmem:[#allocation2 + $0x218] sm:$0xff] }
 0x1e7   : > { %6006 = vmatmul.mubr.bf16.gmra.mrb[112].mxu0 %v8926_v61  ;;  %v1891_v61 = vld [vmem:[#allocation2 + $0x510] sm:$0xff] }
 0x1e8   : > { %6015 = vmatprep.mubr.bf16.mxu0 %v8929_v63  ;;  %v9015_v63 = vld [vmem:[%s9619_s28 + $0x60] ss:$44 sps:$4 sm:$0xff]  }
 0x1ed   : > { %4647 = vmatmul.mubr.bf16.gmra.mrb[112].mxu1 %v8925_v60  ;;  %v1795_v60 = vld [vmem:[#allocation2 + $0x210] sm:$0xff] }
 0x1ee   : > { %4656 = vmatprep.mubr.bf16.mxu1 %v8927_v62  ;;  %v1798_v62 = vld [vmem:[#allocation2 + $0x228] sm:$0xff] }
 0x1ef   : > { %6016 = vmatmul.mubr.bf16.gmra.mrb[116].mxu0 %v8932_v1  ;;  %v9017_v1 = vld [vmem:[%s9619_s28 + $0xbc] ss:$44 sps:$4 sm:$0xff]  }
 0x1f0   : > { %6025 = vmatprep.mubr.bf16.mxu0 %v8935_v3  ;;  %v1797_v3 = vld [vmem:[#allocation2 + $0x220] sm:$0xff] }
 0x1f5   : > { %4657 = vmatmul.mubr.bf16.gmra.mrb[116].mxu1 %v8931_v0  ;;  %v9016_v0 = vld [vmem:[%s9619_s28 + $0x78] ss:$44 sps:$4 sm:$0xff]  }
 0x1f6   : > { %4666 = vmatprep.mubr.bf16.mxu1 %v8933_v2  ;;  %v9019_v2 = vld [vmem:[%s9619_s28 + $0xd4] ss:$44 sps:$4 sm:$0xff]  }
 0x1f7   : > { %6026 = vmatmul.mubr.bf16.gmra.mrb[120].mxu0 %v8938_v5  ;;  %v1799_v5 = vld [vmem:[#allocation2 + $0x230] sm:$0xff] }
 0x1f8   : > { %6035 = vmatprep.mubr.bf16.mxu0 %v8941_v7  ;;  %v9022_v7 = vld [vmem:[%s9619_s28 + $0xd0] ss:$44 sps:$4 sm:$0xff]  }
 0x1fd   : > { %4667 = vmatmul.mubr.bf16.gmra.mrb[120].mxu1 %v8937_v4  ;;  %v1800_v4 = vld [vmem:[#allocation2 + $0x238] sm:$0xff] }
 0x1fe   : > { %4676 = vmatprep.mubr.bf16.mxu1 %v8939_v6  ;;  %v9021_v6 = vld [vmem:[%s9619_s28 + $0xb8] ss:$44 sps:$4 sm:$0xff]  }
 0x1ff   : > { %6036 = vmatmul.mubr.bf16.gmra.mrb[124].mxu0 %v8944_v9  ;;  %v9023_v9 = vld [vmem:[%s9619_s28 + $0x114] ss:$44 sps:$4 sm:$0xff]  }
 0x200   : > { %6045 = vmatprep.mubr.bf16.mxu0 %v8947_v11  ;;  %v1801_v11 = vld [vmem:[#allocation2 + $0x240] sm:$0xff] }
 0x205   : > { %4677 = vmatmul.mubr.bf16.gmra.mrb[124].mxu1 %v8943_v8  ;;  %v1802_v8 = vld [vmem:[#allocation2 + $0x248] sm:$0xff] }
 0x206   : > { %4686 = vmatprep.mubr.bf16.mxu1 %v8945_v10  ;;  %v9025_v10 = vld [vmem:[%s9619_s28 + $0x12c] ss:$44 sps:$4 sm:$0xff]  }
 0x207   : > { %6046 = vmatmul.mubr.bf16.gmra.mrb[128].mxu0 %v8950_v13  ;;  %v1803_v13 = vld [vmem:[#allocation2 + $0x250] sm:$0xff] }
 0x208   : > { %6055 = vmatprep.mubr.bf16.mxu0 %v8953_v15  ;;  %v9028_v15 = vld [vmem:[%s9619_s28 + $0x128] ss:$44 sps:$4 sm:$0xff]  }
 0x20d   : > { %4687 = vmatmul.mubr.bf16.gmra.mrb[128].mxu1 %v8949_v12  ;;  %v1804_v12 = vld [vmem:[#allocation2 + $0x258] sm:$0xff] }
 0x20e   : > { %4696 = vmatprep.mubr.bf16.mxu1 %v8951_v14  ;;  %v9027_v14 = vld [vmem:[%s9619_s28 + $0x110] ss:$44 sps:$4 sm:$0xff]  }
 0x20f   : > { %6056 = vmatmul.mubr.bf16.gmra.mrb[132].mxu0 %v8956_v17  ;;  %v9029_v17 = vld [vmem:[%s9619_s28 + $0x16c] ss:$44 sps:$4 sm:$0xff]  }
 0x210   : > { %6065 = vmatprep.mubr.bf16.mxu0 %v8959_v19  ;;  %v1805_v19 = vld [vmem:[#allocation2 + $0x260] sm:$0xff] }
 0x215   : > { %4697 = vmatmul.mubr.bf16.gmra.mrb[132].mxu1 %v8955_v16  ;;  %v1806_v16 = vld [vmem:[#allocation2 + $0x268] sm:$0xff] }
 0x216   : > { %4706 = vmatprep.mubr.bf16.mxu1 %v8957_v18  ;;  %v9031_v18 = vld [vmem:[%s9619_s28 + $0x184] ss:$44 sps:$4 sm:$0xff]  }
 0x217   : > { %6066 = vmatmul.mubr.bf16.gmra.mrb[136].mxu0 %v8962_v21  ;;  %v1807_v21 = vld [vmem:[#allocation2 + $0x270] sm:$0xff] }
 0x218   : > { %6075 = vmatprep.mubr.bf16.mxu0 %v8965_v23  ;;  %v9034_v23 = vld [vmem:[%s9619_s28 + $0x180] ss:$44 sps:$4 sm:$0xff]  }
 0x21d   : > { %4707 = vmatmul.mubr.bf16.gmra.mrb[136].mxu1 %v8961_v20  ;;  %v1808_v20 = vld [vmem:[#allocation2 + $0x278] sm:$0xff] }
 0x21e   : > { %4716 = vmatprep.mubr.bf16.mxu1 %v8963_v22  ;;  %v9033_v22 = vld [vmem:[%s9619_s28 + $0x168] ss:$44 sps:$4 sm:$0xff]  }
 0x21f   : > { %6076 = vmatmul.mubr.bf16.gmra.mrb[140].mxu0 %v8968_v25  ;;  %v9037_v25 = vld [vmem:[%s9619_s28 + $0x1dc] ss:$44 sps:$4 sm:$0xff]  }
 0x220   : > { %6085 = vmatprep.mubr.bf16.mxu0 %v8971_v27  ;;  %v9040_v27 = vld [vmem:[%s9619_s28 + $0x1d8] ss:$44 sps:$4 sm:$0xff]  }
 0x225   : > { %4717 = vmatmul.mubr.bf16.gmra.mrb[140].mxu1 %v8967_v24  ;;  %v9035_v24 = vld [vmem:[%s9619_s28 + $0x1c4] ss:$44 sps:$4 sm:$0xff]  }
 0x226   : > { %4726 = vmatprep.mubr.bf16.mxu1 %v8969_v26  ;;  %v9039_v26 = vld [vmem:[%s9619_s28 + $0x1c0] ss:$44 sps:$4 sm:$0xff]  }
 0x227   : > { %6086 = vmatmul.mubr.bf16.gmra.mrb[144].mxu0 %v8974_v29  ;;  %v9043_v29 = vld [vmem:[%s9619_s28 + $0x234] ss:$44 sps:$4 sm:$0xff]  }
 0x228   : > { %6095 = vmatprep.mubr.bf16.mxu0 %v8977_v31  ;;  %v1894_v31 = vld [vmem:[#allocation2 + $0x528] sm:$0xff] }
 0x22d   : > { %4727 = vmatmul.mubr.bf16.gmra.mrb[144].mxu1 %v8973_v28  ;;  %v9041_v28 = vld [vmem:[%s9619_s28 + $0x21c] ss:$44 sps:$4 sm:$0xff]  }
 0x22e   : > { %4736 = vmatprep.mubr.bf16.mxu1 %v8975_v30  ;;  %v1810_v30 = vld [vmem:[#allocation2 + $0x288] sm:$0xff] }
 0x22f   : > { %6096 = vmatmul.mubr.bf16.gmra.mrb[148].mxu0 %v8980_v33  ;;  %v1893_v33 = vld [vmem:[#allocation2 + $0x520] sm:$0xff] }
 0x230   : > { %6105 = vmatprep.mubr.bf16.mxu0 %v8983_v35  ;;  %v9046_v35 = vld [vmem:[%s9619_s28 + $0x230] ss:$44 sps:$4 sm:$0xff]  }
 0x235   : > { %4737 = vmatmul.mubr.bf16.gmra.mrb[148].mxu1 %v8979_v32  ;;  %v1809_v32 = vld [vmem:[#allocation2 + $0x280] sm:$0xff] }
 0x236   : > { %4746 = vmatprep.mubr.bf16.mxu1 %v8981_v34  ;;  %v9045_v34 = vld [vmem:[%s9619_s28 + $0x218] ss:$44 sps:$4 sm:$0xff]  }
 0x237   : > { %6106 = vmatmul.mubr.bf16.gmra.mrb[152].mxu0 %v8986_v37  ;;  %v9049_v37 = vld [vmem:[%s9619_s28 + $0x28c] ss:$44 sps:$4 sm:$0xff]  }
 0x238   : > { %6115 = vmatprep.mubr.bf16.mxu0 %v8989_v39  ;;  %v9052_v39 = vld [vmem:[%s9619_s28 + $0x288] ss:$44 sps:$4 sm:$0xff]  }
 0x23d   : > { %4747 = vmatmul.mubr.bf16.gmra.mrb[152].mxu1 %v8985_v36  ;;  %v9047_v36 = vld [vmem:[%s9619_s28 + $0x274] ss:$44 sps:$4 sm:$0xff]  }
 0x23e   : > { %4756 = vmatprep.mubr.bf16.mxu1 %v8987_v38  ;;  %v9051_v38 = vld [vmem:[%s9619_s28 + $0x270] ss:$44 sps:$4 sm:$0xff]  }
 0x23f   : > { %6116 = vmatmul.mubr.bf16.gmra.mrb[156].mxu0 %v8992_v41  ;;  %v9055_v41 = vld [vmem:[%s9619_s28 + $0x2e4] ss:$44 sps:$4 sm:$0xff]  }
 0x240   : > { %6125 = vmatprep.mubr.bf16.mxu0 %v8995_v43  ;;  %v1811_v43 = vld [vmem:[#allocation2 + $0x290] sm:$0xff] }
 0x245   : > { %4757 = vmatmul.mubr.bf16.gmra.mrb[156].mxu1 %v8991_v40  ;;  %v9053_v40 = vld [vmem:[%s9619_s28 + $0x2cc] ss:$44 sps:$4 sm:$0xff]  }
 0x246   : > { %4766 = vmatprep.mubr.bf16.mxu1 %v8993_v42  ;;  %v1812_v42 = vld [vmem:[#allocation2 + $0x298] sm:$0xff] }
 0x247   : > { %6126 = vmatmul.mubr.bf16.gmra.mrb[160].mxu0 %v8998_v45  ;;  %v9058_v45 = vld [vmem:[%s9619_s28 + $0x2e0] ss:$44 sps:$4 sm:$0xff]  }
 0x248   : > { %6135 = vmatprep.mubr.bf16.mxu0 %v9001_v47  ;;  %v9061_v47 = vld [vmem:[%s9619_s28 + $0x33c] ss:$44 sps:$4 sm:$0xff]  }
 0x24d   : > { %4767 = vmatmul.mubr.bf16.gmra.mrb[160].mxu1 %v8997_v44  ;;  %v9057_v44 = vld [vmem:[%s9619_s28 + $0x2c8] ss:$44 sps:$4 sm:$0xff]  }
 0x24e   : > { %4776 = vmatprep.mubr.bf16.mxu1 %v8999_v46  ;;  %v9059_v46 = vld [vmem:[%s9619_s28 + $0x324] ss:$44 sps:$4 sm:$0xff]  }
 0x24f   : > { %6136 = vmatmul.mubr.bf16.gmra.mrb[164].mxu0 %v9004_v49  ;;  %v9064_v49 = vld [vmem:[%s9619_s28 + $0x338] ss:$44 sps:$4 sm:$0xff]  }
 0x250   : > { %6178 = vmatprep.mubr.bf16.mxu0 %v9010_v51  ;;  %v9067_v51 = vld [vmem:[%s9619_s28 + $0x394] ss:$44 sps:$4 sm:$0xff]  }
 0x255   : > { %4777 = vmatmul.mubr.bf16.gmra.mrb[164].mxu1 %v9003_v48  ;;  %v9063_v48 = vld [vmem:[%s9619_s28 + $0x320] ss:$44 sps:$4 sm:$0xff]  }
 0x256   : > { %4819 = vmatprep.mubr.bf16.mxu1 %v9007_v50  ;;  %v9065_v50 = vld [vmem:[%s9619_s28 + $0x37c] ss:$44 sps:$4 sm:$0xff]  }
 0x257   : > { %6179 = vmatmul.mubr.bf16.vlgmr.msra.gmra.mrb[0].mxu0 %v9008_v53  ;;  %v9070_v53 = vld [vmem:[%s9619_s28 + $0x390] ss:$44 sps:$4 sm:$0xff]  }
 0x258   : > { %6600 = vmatpush1.bf16.msra.mxu0 %v1889_v55  ;;  %6188 = vmatprep.mubr.bf16.mxu0 %v9013_v57  ;;  %v9073_v55 = vld [vmem:[%s9619_s28 + $0x3ec] ss:$44 sps:$4 sm:$0xff]   ;;  %v1813_v57 = vld [vmem:[#allocation2 + $0x2a0] sm:$0xff] }
 0x259   : > { %6601 = vmatprep.subr.bf16.mxu0 %v1892_v59  ;;  %v9076_v59 = vld [vmem:[%s9619_s28 + $0x3e8] ss:$44 sps:$4 sm:$0xff]  }
 0x25c   : > { %6602 = vmatpush1.bf16.msra.mxu0 %v1891_v61  ;;  %v9079_v61 = vld [vmem:[%s9619_s28 + $0x444] ss:$44 sps:$4 sm:$0xff]  }
 0x25d   : > { %4820 = vmatmul.mubr.bf16.vlgmr.msra.gmra.mrb[0].mxu1 %v9005_v52  ;;  %6603 = vmatprep.subr.bf16.mxu0 %v1894_v31  ;;  %v9069_v52 = vld [vmem:[%s9619_s28 + $0x378] ss:$44 sps:$4 sm:$0xff]  }
 0x25e   : > { %5241 = vmatpush1.bf16.msra.mxu1 %v1793_v54  ;;  %4829 = vmatprep.mubr.bf16.mxu1 %v9011_v56  ;;  %v9071_v54 = vld [vmem:[%s9619_s28 + $0x3d4] ss:$44 sps:$4 sm:$0xff]   ;;  %v1814_v56 = vld [vmem:[#allocation2 + $0x2a8] sm:$0xff] }
 0x25f   : > { %5242 = vmatprep.subr.bf16.mxu1 %v1796_v58  ;;  %6189 = vmatmul.mubr.bf16.gmra.mrb[4].mxu0 %v9016_v0  ;;  %v9075_v58 = vld [vmem:[%s9619_s28 + $0x3d0] ss:$44 sps:$4 sm:$0xff]   ;;  %v9121_v31 = vld [vmem:[%s9619_s28 + $0x6ac] ss:$44 sps:$4 sm:$0xff]  }
 0x260   : > { %6198 = vmatprep.mubr.bf16.mxu0 %v9019_v2  ;;  %6604 = vmatpush1.bf16.msra.mxu0 %v1893_v33  ;;  %v9083_v0 = vld [vmem:[%s9619_s28 + $0x484] ss:$44 sps:$4 sm:$0xff]   ;;  %v1816_v2 = vld [vmem:[#allocation2 + $0x2b8] sm:$0xff] }
 0x261   : > { %v1819_v33 = vld [vmem:[#allocation2 + $0x2d0] sm:$0xff] }
 0x262   : > { %5243 = vmatpush1.bf16.msra.mxu1 %v1795_v60  ;;  %v9077_v60 = vld [vmem:[%s9619_s28 + $0x42c] ss:$44 sps:$4 sm:$0xff]  }
 0x263   : > { %5244 = vmatprep.subr.bf16.mxu1 %v1798_v62  ;;  %v9081_v62 = vld [vmem:[%s9619_s28 + $0x428] ss:$44 sps:$4 sm:$0xff]  }
 0x265   : > { %4830 = vmatmul.mubr.bf16.gmra.mrb[4].mxu1 %v9015_v63  ;;  %v9082_v63 = vld [vmem:[%s9619_s28 + $0x440] ss:$44 sps:$4 sm:$0xff]  }
 0x266   : > { %4839 = vmatprep.mubr.bf16.mxu1 %v9017_v1  ;;  %5245 = vmatpush1.bf16.msra.mxu1 %v1797_v3  ;;  %v9085_v1 = vld [vmem:[%s9619_s28 + $0x49c] ss:$44 sps:$4 sm:$0xff]   ;;  %v9087_v3 = vld [vmem:[%s9619_s28 + $0x480] ss:$44 sps:$4 sm:$0xff]  }
 0x267   : > { %5246 = vmatprep.subr.bf16.mxu1 %v1800_v4  ;;  %6199 = vmatmul.mubr.bf16.gmra.mrb[8].mxu0 %v9022_v7  ;;  %v9088_v4 = vld [vmem:[%s9619_s28 + $0x498] ss:$44 sps:$4 sm:$0xff]  }
 0x268   : > { %6208 = vmatprep.mubr.bf16.mxu0 %v9025_v10  ;;  %v1815_v7 = vld [vmem:[#allocation2 + $0x2b0] sm:$0xff] }
 0x269   : > { %v9095_v10 = vld [vmem:[%s9619_s28 + $0x534] ss:$44 sps:$4 sm:$0xff]  }
 0x26a   : > { %5247 = vmatpush1.bf16.msra.mxu1 %v1799_v5  ;;  %v9089_v5 = vld [vmem:[%s9619_s28 + $0x4dc] ss:$44 sps:$4 sm:$0xff]  }
 0x26b   : > { %5248 = vmatprep.subr.bf16.mxu1 %v1802_v8  ;;  %v9093_v8 = vld [vmem:[%s9619_s28 + $0x4d8] ss:$44 sps:$4 sm:$0xff]  }
 0x26d   : > { %4840 = vmatmul.mubr.bf16.gmra.mrb[8].mxu1 %v9021_v6  ;;  %v9091_v6 = vld [vmem:[%s9619_s28 + $0x4f4] ss:$44 sps:$4 sm:$0xff]  }
 0x26e   : > { %4849 = vmatprep.mubr.bf16.mxu1 %v9023_v9  ;;  %5249 = vmatpush1.bf16.msra.mxu1 %v1801_v11  ;;  %v9094_v9 = vld [vmem:[%s9619_s28 + $0x4f0] ss:$44 sps:$4 sm:$0xff]   ;;  %v9097_v11 = vld [vmem:[%s9619_s28 + $0x54c] ss:$44 sps:$4 sm:$0xff]  }
 0x26f   : > { %5250 = vmatprep.subr.bf16.mxu1 %v1804_v12  ;;  %6209 = vmatmul.mubr.bf16.gmra.mrb[12].mxu0 %v9028_v15  ;;  %v9099_v12 = vld [vmem:[%s9619_s28 + $0x530] ss:$44 sps:$4 sm:$0xff]  }
 0x270   : > { %6218 = vmatprep.mubr.bf16.mxu0 %v9031_v18  ;;  %v9103_v15 = vld [vmem:[%s9619_s28 + $0x5a4] ss:$44 sps:$4 sm:$0xff]  }
 0x271   : > { %v1817_v18 = vld [vmem:[#allocation2 + $0x2c0] sm:$0xff] }
 0x272   : > { %5251 = vmatpush1.bf16.msra.mxu1 %v1803_v13  ;;  %v9100_v13 = vld [vmem:[%s9619_s28 + $0x548] ss:$44 sps:$4 sm:$0xff]  }
 0x273   : > { %5252 = vmatprep.subr.bf16.mxu1 %v1806_v16  ;;  %v1818_v16 = vld [vmem:[#allocation2 + $0x2c8] sm:$0xff] }
 0x275   : > { %4850 = vmatmul.mubr.bf16.gmra.mrb[12].mxu1 %v9027_v14  ;;  %v9101_v14 = vld [vmem:[%s9619_s28 + $0x58c] ss:$44 sps:$4 sm:$0xff]  }
 0x276   : > { %4859 = vmatprep.mubr.bf16.mxu1 %v9029_v17  ;;  %5253 = vmatpush1.bf16.msra.mxu1 %v1805_v19  ;;  %v1896_v17 = vld [vmem:[#allocation2 + $0x538] sm:$0xff]  ;;  %v1895_v19 = vld [vmem:[#allocation2 + $0x530] sm:$0xff] }
 0x277   : > { %5254 = vmatprep.subr.bf16.mxu1 %v1808_v20  ;;  %6219 = vmatmul.mubr.bf16.gmra.mrb[16].mxu0 %v9034_v23  ;;  %v9105_v20 = vld [vmem:[%s9619_s28 + $0x588] ss:$44 sps:$4 sm:$0xff]  }
 0x278   : > { %6228 = vmatprep.mubr.bf16.mxu0 %v9037_v25  ;;  %6605 = vmatprep.subr.bf16.mxu0 %v1896_v17  ;;  %v9109_v23 = vld [vmem:[%s9619_s28 + $0x5fc] ss:$44 sps:$4 sm:$0xff]   ;;  %v9112_v25 = vld [vmem:[%s9619_s28 + $0x5f8] ss:$44 sps:$4 sm:$0xff]   ;;  %v9187_v17 = vld [vmem:[%s9619_s28 + $0xa74] ss:$44 sps:$4 sm:$0xff]  }
 0x279   : > { %6606 = vmatpush1.bf16.msra.mxu0 %v1895_v19  ;;  %v9190_v19 = vld [vmem:[%s9619_s28 + $0xa70] ss:$44 sps:$4 sm:$0xff]  }
 0x27a   : > { %5255 = vmatpush1.bf16.msra.mxu1 %v1807_v21  ;;  %v9106_v21 = vld [vmem:[%s9619_s28 + $0x5a0] ss:$44 sps:$4 sm:$0xff]  }
 0x27b   : > { %5256 = vmatprep.subr.bf16.mxu1 %v1810_v30  ;;  %v9119_v30 = vld [vmem:[%s9619_s28 + $0x694] ss:$44 sps:$4 sm:$0xff]  }
 0x27d   : > { %4860 = vmatmul.mubr.bf16.gmra.mrb[16].mxu1 %v9033_v22  ;;  %v9107_v22 = vld [vmem:[%s9619_s28 + $0x5e4] ss:$44 sps:$4 sm:$0xff]  }
 0x27e   : > { %4869 = vmatprep.mubr.bf16.mxu1 %v9035_v24  ;;  %5257 = vmatpush1.bf16.msra.mxu1 %v1809_v32  ;;  %v9111_v24 = vld [vmem:[%s9619_s28 + $0x5e0] ss:$44 sps:$4 sm:$0xff]  }
 0x27f   : > { %6229 = vmatmul.mubr.bf16.gmra.mrb[20].mxu0 %v9040_v27  ;;  %5258 = vmatprep.subr.bf16.mxu1 %v1812_v42  ;;  %v9115_v27 = vld [vmem:[%s9619_s28 + $0x654] ss:$44 sps:$4 sm:$0xff]   ;;  %v1820_v32 = vld [vmem:[#allocation2 + $0x2d8] sm:$0xff]  ;;  %v1822_v42 = vld [vmem:[#allocation2 + $0x2e8] sm:$0xff] }
 0x280   : > { %6238 = vmatprep.mubr.bf16.mxu0 %v9043_v29  ;;  %v9118_v29 = vld [vmem:[%s9619_s28 + $0x650] ss:$44 sps:$4 sm:$0xff]  }
 0x282   : > { %5259 = vmatpush1.bf16.msra.mxu1 %v1811_v43  ;;  %v1821_v43 = vld [vmem:[#allocation2 + $0x2e0] sm:$0xff] }
 0x283   : > { %5260 = vmatprep.subr.bf16.mxu1 %v1814_v56  ;;  %v1824_v56 = vld [vmem:[#allocation2 + $0x2f8] sm:$0xff] }
 0x285   : > { %4870 = vmatmul.mubr.bf16.gmra.mrb[20].mxu1 %v9039_v26  ;;  %v9113_v26 = vld [vmem:[%s9619_s28 + $0x63c] ss:$44 sps:$4 sm:$0xff]  }
 0x286   : > { %4879 = vmatprep.mubr.bf16.mxu1 %v9041_v28  ;;  %5261 = vmatpush1.bf16.msra.mxu1 %v1813_v57  ;;  %v9117_v28 = vld [vmem:[%s9619_s28 + $0x638] ss:$44 sps:$4 sm:$0xff]  }
 0x287   : > { %6239 = vmatmul.mubr.bf16.gmra.mrb[24].mxu0 %v9046_v35  ;;  %5262 = vmatprep.subr.bf16.mxu1 %v1816_v2  ;;  %v9124_v35 = vld [vmem:[%s9619_s28 + $0x6a8] ss:$44 sps:$4 sm:$0xff]   ;;  %v9165_v2 = vld [vmem:[%s9619_s28 + $0x8f8] ss:$44 sps:$4 sm:$0xff]  }
 0x288   : > { %6248 = vmatprep.mubr.bf16.mxu0 %v9049_v37  ;;  %v9127_v37 = vld [vmem:[%s9619_s28 + $0x704] ss:$44 sps:$4 sm:$0xff]  }
 0x289   : > { %v1823_v57 = vld [vmem:[#allocation2 + $0x2f0] sm:$0xff] }
 0x28a   : > { %5263 = vmatpush1.bf16.msra.mxu1 %v1815_v7  ;;  %v9172_v7 = vld [vmem:[%s9619_s28 + $0x968] ss:$44 sps:$4 sm:$0xff]  }
 0x28b   : > { %5264 = vmatprep.subr.bf16.mxu1 %v1818_v16  ;;  %v9185_v16 = vld [vmem:[%s9619_s28 + $0xa5c] ss:$44 sps:$4 sm:$0xff]  }
 0x28d   : > { %4880 = vmatmul.mubr.bf16.gmra.mrb[24].mxu1 %v9045_v34  ;;  %v9123_v34 = vld [vmem:[%s9619_s28 + $0x690] ss:$44 sps:$4 sm:$0xff]  }
 0x28e   : > { %4889 = vmatprep.mubr.bf16.mxu1 %v9047_v36  ;;  %5265 = vmatpush1.bf16.msra.mxu1 %v1817_v18  ;;  %v9125_v36 = vld [vmem:[%s9619_s28 + $0x6ec] ss:$44 sps:$4 sm:$0xff]  }
 0x28f   : > { %6249 = vmatmul.mubr.bf16.gmra.mrb[28].mxu0 %v9052_v39  ;;  %5266 = vmatprep.subr.bf16.mxu1 %v1820_v32  ;;  %v9130_v39 = vld [vmem:[%s9619_s28 + $0x700] ss:$44 sps:$4 sm:$0xff]   ;;  %v9189_v18 = vld [vmem:[%s9619_s28 + $0xa58] ss:$44 sps:$4 sm:$0xff]   ;;  %v9209_v32 = vld [vmem:[%s9619_s28 + $0xbbc] ss:$44 sps:$4 sm:$0xff]  }
 0x290   : > { %6258 = vmatprep.mubr.bf16.mxu0 %v9055_v41  ;;  %v9133_v41 = vld [vmem:[%s9619_s28 + $0x75c] ss:$44 sps:$4 sm:$0xff]  }
 0x292   : > { %5267 = vmatpush1.bf16.msra.mxu1 %v1819_v33  ;;  %v9211_v33 = vld [vmem:[%s9619_s28 + $0xbd4] ss:$44 sps:$4 sm:$0xff]  }
 0x293   : > { %5268 = vmatprep.subr.bf16.mxu1 %v1822_v42  ;;  %v9225_v42 = vld [vmem:[%s9619_s28 + $0xc68] ss:$44 sps:$4 sm:$0xff]  }
 0x295   : > { %4890 = vmatmul.mubr.bf16.gmra.mrb[28].mxu1 %v9051_v38  ;;  %v9129_v38 = vld [vmem:[%s9619_s28 + $0x6e8] ss:$44 sps:$4 sm:$0xff]  }
 0x296   : > { %4899 = vmatprep.mubr.bf16.mxu1 %v9053_v40  ;;  %v9131_v40 = vld [vmem:[%s9619_s28 + $0x744] ss:$44 sps:$4 sm:$0xff]   ;;  %5269 = vmatpush1.bf16.msra.mxu1 %v1821_v43  ;;  %v9226_v43 = vld [vmem:[%s9619_s28 + $0xc80] ss:$44 sps:$4 sm:$0xff]  }
 0x297   : > { %6259 = vmatmul.mubr.bf16.gmra.mrb[32].mxu0 %v9058_v45  ;;  %v9136_v45 = vld [vmem:[%s9619_s28 + $0x758] ss:$44 sps:$4 sm:$0xff]   ;;  %5270 = vmatprep.subr.bf16.mxu1 %v1824_v56 }
 0x298   : > { %6268 = vmatprep.mubr.bf16.mxu0 %v9061_v47  ;;  %v9139_v47 = vld [vmem:[%s9619_s28 + $0x7b4] ss:$44 sps:$4 sm:$0xff]   ;;  %v9245_v56 = vld [vmem:[%s9619_s28 + $0xdcc] ss:$44 sps:$4 sm:$0xff]  }
 0x29a   : > { %5271 = vmatpush1.bf16.msra.mxu1 %v1823_v57  ;;  %v9247_v57 = vld [vmem:[%s9619_s28 + $0xde4] ss:$44 sps:$4 sm:$0xff]  }
 0x29d   : > { %4900 = vmatmul.mubr.bf16.gmra.mrb[32].mxu1 %v9057_v44  ;;  %v9135_v44 = vld [vmem:[%s9619_s28 + $0x740] ss:$44 sps:$4 sm:$0xff]  }
 0x29e   : > { %4909 = vmatprep.mubr.bf16.mxu1 %v9059_v46  ;;  %v9137_v46 = vld [vmem:[%s9619_s28 + $0x79c] ss:$44 sps:$4 sm:$0xff]  }
 0x29f   : > { %6269 = vmatmul.mubr.bf16.gmra.mrb[36].mxu0 %v9064_v49  ;;  %v9142_v49 = vld [vmem:[%s9619_s28 + $0x7b0] ss:$44 sps:$4 sm:$0xff]  }
 0x2a0   : > { %6278 = vmatprep.mubr.bf16.mxu0 %v9067_v51  ;;  %v9145_v51 = vld [vmem:[%s9619_s28 + $0x80c] ss:$44 sps:$4 sm:$0xff]  }
 0x2a5   : > { %4910 = vmatmul.mubr.bf16.gmra.mrb[36].mxu1 %v9063_v48  ;;  %v9141_v48 = vld [vmem:[%s9619_s28 + $0x798] ss:$44 sps:$4 sm:$0xff]  }
 0x2a6   : > { %4919 = vmatprep.mubr.bf16.mxu1 %v9065_v50  ;;  %v9143_v50 = vld [vmem:[%s9619_s28 + $0x7f4] ss:$44 sps:$4 sm:$0xff]  }
 0x2a7   : > { %6279 = vmatmul.mubr.bf16.gmra.mrb[40].mxu0 %v9070_v53  ;;  %v9148_v53 = vld [vmem:[%s9619_s28 + $0x808] ss:$44 sps:$4 sm:$0xff]  }
 0x2a8   : > { %6288 = vmatprep.mubr.bf16.mxu0 %v9073_v55  ;;  %v9151_v55 = vld [vmem:[%s9619_s28 + $0x864] ss:$44 sps:$4 sm:$0xff]  }
 0x2ad   : > { %4920 = vmatmul.mubr.bf16.gmra.mrb[40].mxu1 %v9069_v52  ;;  %v9147_v52 = vld [vmem:[%s9619_s28 + $0x7f0] ss:$44 sps:$4 sm:$0xff]  }
 0x2ae   : > { %4929 = vmatprep.mubr.bf16.mxu1 %v9071_v54  ;;  %v9149_v54 = vld [vmem:[%s9619_s28 + $0x84c] ss:$44 sps:$4 sm:$0xff]  }
 0x2af   : > { %6289 = vmatmul.mubr.bf16.gmra.mrb[44].mxu0 %v9076_v59  ;;  %v9154_v59 = vld [vmem:[%s9619_s28 + $0x860] ss:$44 sps:$4 sm:$0xff]  }
 0x2b0   : > { %6298 = vmatprep.mubr.bf16.mxu0 %v9079_v61  ;;  %v9157_v61 = vld [vmem:[%s9619_s28 + $0x8bc] ss:$44 sps:$4 sm:$0xff]  }
 0x2b5   : > { %4930 = vmatmul.mubr.bf16.gmra.mrb[44].mxu1 %v9075_v58  ;;  %v9153_v58 = vld [vmem:[%s9619_s28 + $0x848] ss:$44 sps:$4 sm:$0xff]  }
 0x2b6   : > { %4939 = vmatprep.mubr.bf16.mxu1 %v9077_v60  ;;  %v9155_v60 = vld [vmem:[%s9619_s28 + $0x8a4] ss:$44 sps:$4 sm:$0xff]  }
 0x2b7   : > { %6299 = vmatmul.mubr.bf16.gmra.mrb[48].mxu0 %v9082_v63  ;;  %v9160_v63 = vld [vmem:[%s9619_s28 + $0x8b8] ss:$44 sps:$4 sm:$0xff]  }
 0x2b8   : > { %6308 = vmatprep.mubr.bf16.mxu0 %v9085_v1  ;;  %v9163_v1 = vld [vmem:[%s9619_s28 + $0x914] ss:$44 sps:$4 sm:$0xff]  }
 0x2bd   : > { %4940 = vmatmul.mubr.bf16.gmra.mrb[48].mxu1 %v9081_v62  ;;  %v9159_v62 = vld [vmem:[%s9619_s28 + $0x8a0] ss:$44 sps:$4 sm:$0xff]  }
 0x2be   : > { %4949 = vmatprep.mubr.bf16.mxu1 %v9083_v0  ;;  %v9161_v0 = vld [vmem:[%s9619_s28 + $0x8fc] ss:$44 sps:$4 sm:$0xff]  }
 0x2bf   : > { %6309 = vmatmul.mubr.bf16.gmra.mrb[52].mxu0 %v9088_v4  ;;  %v9167_v4 = vld [vmem:[%s9619_s28 + $0x954] ss:$44 sps:$4 sm:$0xff]  }
 0x2c0   : > { %6318 = vmatprep.mubr.bf16.mxu0 %v9091_v6  ;;  %v9171_v6 = vld [vmem:[%s9619_s28 + $0x950] ss:$44 sps:$4 sm:$0xff]  }
 0x2c5   : > { %4950 = vmatmul.mubr.bf16.gmra.mrb[52].mxu1 %v9087_v3  ;;  %v9166_v3 = vld [vmem:[%s9619_s28 + $0x910] ss:$44 sps:$4 sm:$0xff]  }
 0x2c6   : > { %4959 = vmatprep.mubr.bf16.mxu1 %v9089_v5  ;;  %v9169_v5 = vld [vmem:[%s9619_s28 + $0x96c] ss:$44 sps:$4 sm:$0xff]  }
 0x2c7   : > { %6319 = vmatmul.mubr.bf16.gmra.mrb[56].mxu0 %v9094_v9  ;;  %v9175_v9 = vld [vmem:[%s9619_s28 + $0x9c4] ss:$44 sps:$4 sm:$0xff]  }
 0x2c8   : > { %6328 = vmatprep.mubr.bf16.mxu0 %v9097_v11  ;;  %v9178_v11 = vld [vmem:[%s9619_s28 + $0x9c0] ss:$44 sps:$4 sm:$0xff]  }
 0x2cd   : > { %4960 = vmatmul.mubr.bf16.gmra.mrb[56].mxu1 %v9093_v8  ;;  %v9173_v8 = vld [vmem:[%s9619_s28 + $0x9ac] ss:$44 sps:$4 sm:$0xff]  }
 0x2ce   : > { %4969 = vmatprep.mubr.bf16.mxu1 %v9095_v10  ;;  %v9177_v10 = vld [vmem:[%s9619_s28 + $0x9a8] ss:$44 sps:$4 sm:$0xff]  }
 0x2cf   : > { %6329 = vmatmul.mubr.bf16.gmra.mrb[60].mxu0 %v9100_v13  ;;  %v9181_v13 = vld [vmem:[%s9619_s28 + $0xa1c] ss:$44 sps:$4 sm:$0xff]  }
 0x2d0   : > { %6338 = vmatprep.mubr.bf16.mxu0 %v9103_v15  ;;  %v9184_v15 = vld [vmem:[%s9619_s28 + $0xa18] ss:$44 sps:$4 sm:$0xff]  }
 0x2d5   : > { %4970 = vmatmul.mubr.bf16.gmra.mrb[60].mxu1 %v9099_v12  ;;  %v9179_v12 = vld [vmem:[%s9619_s28 + $0xa04] ss:$44 sps:$4 sm:$0xff]  }
 0x2d6   : > { %4979 = vmatprep.mubr.bf16.mxu1 %v9101_v14  ;;  %v9183_v14 = vld [vmem:[%s9619_s28 + $0xa00] ss:$44 sps:$4 sm:$0xff]  }
 0x2d7   : > { %6339 = vmatmul.mubr.bf16.gmra.mrb[64].mxu0 %v9106_v21  ;;  %v9193_v21 = vld [vmem:[%s9619_s28 + $0xacc] ss:$44 sps:$4 sm:$0xff]  }
 0x2d8   : > { %6348 = vmatprep.mubr.bf16.mxu0 %v9109_v23  ;;  %v9196_v23 = vld [vmem:[%s9619_s28 + $0xac8] ss:$44 sps:$4 sm:$0xff]  }
 0x2dd   : > { %4980 = vmatmul.mubr.bf16.gmra.mrb[64].mxu1 %v9105_v20  ;;  %v9191_v20 = vld [vmem:[%s9619_s28 + $0xab4] ss:$44 sps:$4 sm:$0xff]  }
 0x2de   : > { %4989 = vmatprep.mubr.bf16.mxu1 %v9107_v22  ;;  %v9195_v22 = vld [vmem:[%s9619_s28 + $0xab0] ss:$44 sps:$4 sm:$0xff]  }
 0x2df   : > { %6349 = vmatmul.mubr.bf16.gmra.mrb[68].mxu0 %v9112_v25  ;;  %v9199_v25 = vld [vmem:[%s9619_s28 + $0xb24] ss:$44 sps:$4 sm:$0xff]  }
 0x2e0   : > { %6358 = vmatprep.mubr.bf16.mxu0 %v9115_v27  ;;  %v9202_v27 = vld [vmem:[%s9619_s28 + $0xb20] ss:$44 sps:$4 sm:$0xff]  }
 0x2e5   : > { %4990 = vmatmul.mubr.bf16.gmra.mrb[68].mxu1 %v9111_v24  ;;  %v9197_v24 = vld [vmem:[%s9619_s28 + $0xb0c] ss:$44 sps:$4 sm:$0xff]  }
 0x2e6   : > { %4999 = vmatprep.mubr.bf16.mxu1 %v9113_v26  ;;  %v9201_v26 = vld [vmem:[%s9619_s28 + $0xb08] ss:$44 sps:$4 sm:$0xff]  }
 0x2e7   : > { %6359 = vmatmul.mubr.bf16.gmra.mrb[72].mxu0 %v9118_v29  ;;  %v9205_v29 = vld [vmem:[%s9619_s28 + $0xb7c] ss:$44 sps:$4 sm:$0xff]  }
 0x2e8   : > { %6368 = vmatprep.mubr.bf16.mxu0 %v9121_v31  ;;  %v9208_v31 = vld [vmem:[%s9619_s28 + $0xb78] ss:$44 sps:$4 sm:$0xff]  }
 0x2ed   : > { %5000 = vmatmul.mubr.bf16.gmra.mrb[72].mxu1 %v9117_v28  ;;  %v9203_v28 = vld [vmem:[%s9619_s28 + $0xb64] ss:$44 sps:$4 sm:$0xff]  }
 0x2ee   : > { %5009 = vmatprep.mubr.bf16.mxu1 %v9119_v30  ;;  %v9207_v30 = vld [vmem:[%s9619_s28 + $0xb60] ss:$44 sps:$4 sm:$0xff]  }
 0x2ef   : > { %6369 = vmatmul.mubr.bf16.gmra.mrb[76].mxu0 %v9124_v35  ;;  %v9214_v35 = vld [vmem:[%s9619_s28 + $0xbd0] ss:$44 sps:$4 sm:$0xff]  }
 0x2f0   : > { %6378 = vmatprep.mubr.bf16.mxu0 %v9127_v37  ;;  %v9217_v37 = vld [vmem:[%s9619_s28 + $0xc2c] ss:$44 sps:$4 sm:$0xff]  }
 0x2f5   : > { %5010 = vmatmul.mubr.bf16.gmra.mrb[76].mxu1 %v9123_v34  ;;  %v9213_v34 = vld [vmem:[%s9619_s28 + $0xbb8] ss:$44 sps:$4 sm:$0xff]  }
 0x2f6   : > { %5019 = vmatprep.mubr.bf16.mxu1 %v9125_v36  ;;  %v9215_v36 = vld [vmem:[%s9619_s28 + $0xc14] ss:$44 sps:$4 sm:$0xff]  }
 0x2f7   : > { %6379 = vmatmul.mubr.bf16.gmra.mrb[80].mxu0 %v9130_v39  ;;  %v9220_v39 = vld [vmem:[%s9619_s28 + $0xc28] ss:$44 sps:$4 sm:$0xff]  }
 0x2f8   : > { %6388 = vmatprep.mubr.bf16.mxu0 %v9133_v41  ;;  %v9223_v41 = vld [vmem:[%s9619_s28 + $0xc84] ss:$44 sps:$4 sm:$0xff]  }
 0x2fd   : > { %5020 = vmatmul.mubr.bf16.gmra.mrb[80].mxu1 %v9129_v38  ;;  %v9219_v38 = vld [vmem:[%s9619_s28 + $0xc10] ss:$44 sps:$4 sm:$0xff]  }
 0x2fe   : > { %5029 = vmatprep.mubr.bf16.mxu1 %v9131_v40  ;;  %v9221_v40 = vld [vmem:[%s9619_s28 + $0xc6c] ss:$44 sps:$4 sm:$0xff]  }
 0x2ff   : > { %6389 = vmatmul.mubr.bf16.gmra.mrb[84].mxu0 %v9136_v45  ;;  %v9229_v45 = vld [vmem:[%s9619_s28 + $0xcdc] ss:$44 sps:$4 sm:$0xff]  }
 0x300   : > { %6398 = vmatprep.mubr.bf16.mxu0 %v9139_v47  ;;  %v9232_v47 = vld [vmem:[%s9619_s28 + $0xcd8] ss:$44 sps:$4 sm:$0xff]  }
 0x305   : > { %5030 = vmatmul.mubr.bf16.gmra.mrb[84].mxu1 %v9135_v44  ;;  %v9227_v44 = vld [vmem:[%s9619_s28 + $0xcc4] ss:$44 sps:$4 sm:$0xff]  }
 0x306   : > { %5039 = vmatprep.mubr.bf16.mxu1 %v9137_v46  ;;  %v9231_v46 = vld [vmem:[%s9619_s28 + $0xcc0] ss:$44 sps:$4 sm:$0xff]  }
 0x307   : > { %6399 = vmatmul.mubr.bf16.gmra.mrb[88].mxu0 %v9142_v49  ;;  %v9235_v49 = vld [vmem:[%s9619_s28 + $0xd34] ss:$44 sps:$4 sm:$0xff]  }
 0x308   : > { %6408 = vmatprep.mubr.bf16.mxu0 %v9145_v51  ;;  %v9238_v51 = vld [vmem:[%s9619_s28 + $0xd30] ss:$44 sps:$4 sm:$0xff]  }
 0x30d   : > { %5040 = vmatmul.mubr.bf16.gmra.mrb[88].mxu1 %v9141_v48  ;;  %v9233_v48 = vld [vmem:[%s9619_s28 + $0xd1c] ss:$44 sps:$4 sm:$0xff]  }
 0x30e   : > { %5049 = vmatprep.mubr.bf16.mxu1 %v9143_v50  ;;  %v9237_v50 = vld [vmem:[%s9619_s28 + $0xd18] ss:$44 sps:$4 sm:$0xff]  }
 0x30f   : > { %6409 = vmatmul.mubr.bf16.gmra.mrb[92].mxu0 %v9148_v53  ;;  %v9241_v53 = vld [vmem:[%s9619_s28 + $0xd8c] ss:$44 sps:$4 sm:$0xff]  }
 0x310   : > { %6418 = vmatprep.mubr.bf16.mxu0 %v9151_v55  ;;  %v9244_v55 = vld [vmem:[%s9619_s28 + $0xd88] ss:$44 sps:$4 sm:$0xff]  }
 0x315   : > { %5050 = vmatmul.mubr.bf16.gmra.mrb[92].mxu1 %v9147_v52  ;;  %v9239_v52 = vld [vmem:[%s9619_s28 + $0xd74] ss:$44 sps:$4 sm:$0xff]  }
 0x316   : > { %5059 = vmatprep.mubr.bf16.mxu1 %v9149_v54  ;;  %v9243_v54 = vld [vmem:[%s9619_s28 + $0xd70] ss:$44 sps:$4 sm:$0xff]  }
 0x317   : > { %6419 = vmatmul.mubr.bf16.gmra.mrb[96].mxu0 %v9154_v59  ;;  %v9250_v59 = vld [vmem:[%s9619_s28 + $0xde0] ss:$44 sps:$4 sm:$0xff]  }
 0x318   : > { %6428 = vmatprep.mubr.bf16.mxu0 %v9157_v61  ;;  %v9253_v61 = vld [vmem:[%s9619_s28 + $0xe3c] ss:$44 sps:$4 sm:$0xff]  }
 0x31d   : > { %5060 = vmatmul.mubr.bf16.gmra.mrb[96].mxu1 %v9153_v58  ;;  %v9249_v58 = vld [vmem:[%s9619_s28 + $0xdc8] ss:$44 sps:$4 sm:$0xff]  }
 0x31e   : > { %5069 = vmatprep.mubr.bf16.mxu1 %v9155_v60  ;;  %v9251_v60 = vld [vmem:[%s9619_s28 + $0xe24] ss:$44 sps:$4 sm:$0xff]  }
 0x31f   : > { %6429 = vmatmul.mubr.bf16.gmra.mrb[100].mxu0 %v9160_v63  ;;  %v9256_v63 = vld [vmem:[%s9619_s28 + $0xe38] ss:$44 sps:$4 sm:$0xff]  }
 0x320   : > { %6438 = vmatprep.mubr.bf16.mxu0 %v9163_v1  ;;  %v9510_v1 = vmov 0  }
 0x325   : > { %5070 = vmatmul.mubr.bf16.gmra.mrb[100].mxu1 %v9159_v62  ;;  %v9255_v62 = vld [vmem:[%s9619_s28 + $0xe20] ss:$44 sps:$4 sm:$0xff]  }
 0x326   : > { %5079 = vmatprep.mubr.bf16.mxu1 %v9161_v0  ;;  %v9259_v0 = vld [vmem:[%s9619_s28 + $0x14] ss:$44 sps:$4 sm:$0xff]  }
 0x327   : > { %6439 = vmatmul.mubr.bf16.gmra.mrb[104].mxu0 %v9166_v3  ;;  %v9260_v3 = vld [vmem:[%s9619_s28 + $0x28] ss:$44 sps:$4 sm:$0xff]  }
 0x328   : > { %6448 = vmatprep.mubr.bf16.mxu0 %v9169_v5  ;;  %v9263_v5 = vld [vmem:[%s9619_s28 + $0x68] ss:$44 sps:$4 sm:$0xff]  }
 0x32d   : > { %5080 = vmatmul.mubr.bf16.gmra.mrb[104].mxu1 %v9165_v2  ;;  %v9257_v2 = vld [vmem:[%s9619_s28 + $0x10] ss:$44 sps:$4 sm:$0xff]  }
 0x32e   : > { %5089 = vmatprep.mubr.bf16.mxu1 %v9167_v4  ;;  %v9261_v4 = vld [vmem:[%s9619_s28 + $0x6c] ss:$44 sps:$4 sm:$0xff]  }
 0x32f   : > { %6449 = vmatmul.mubr.bf16.gmra.mrb[108].mxu0 %v9172_v7  ;;  %v9265_v7 = vld [vmem:[%s9619_s28 + $0xc4] ss:$44 sps:$4 sm:$0xff]  }
 0x330   : > { %6458 = vmatprep.mubr.bf16.mxu0 %v9175_v9  ;;  %v9268_v9 = vld [vmem:[%s9619_s28 + $0xd8] ss:$44 sps:$4 sm:$0xff]  }
 0x335   : > { %5090 = vmatmul.mubr.bf16.gmra.mrb[108].mxu1 %v9171_v6  ;;  %v9264_v6 = vld [vmem:[%s9619_s28 + $0x80] ss:$44 sps:$4 sm:$0xff]  }
 0x336   : > { %5099 = vmatprep.mubr.bf16.mxu1 %v9173_v8  ;;  %v9267_v8 = vld [vmem:[%s9619_s28 + $0xc0] ss:$44 sps:$4 sm:$0xff]  }
 0x337   : > { %6459 = vmatmul.mubr.bf16.gmra.mrb[112].mxu0 %v9178_v11  ;;  %v9271_v11 = vld [vmem:[%s9619_s28 + $0x118] ss:$44 sps:$4 sm:$0xff]  }
 0x338   : > { %6468 = vmatprep.mubr.bf16.mxu0 %v9181_v13  ;;  %v9273_v13 = vld [vmem:[%s9619_s28 + $0x174] ss:$44 sps:$4 sm:$0xff]  }
 0x33d   : > { %5100 = vmatmul.mubr.bf16.gmra.mrb[112].mxu1 %v9177_v10  ;;  %v9269_v10 = vld [vmem:[%s9619_s28 + $0x11c] ss:$44 sps:$4 sm:$0xff]  }
 0x33e   : > { %5109 = vmatprep.mubr.bf16.mxu1 %v9179_v12  ;;  %v9272_v12 = vld [vmem:[%s9619_s28 + $0x130] ss:$44 sps:$4 sm:$0xff]  }
 0x33f   : > { %6469 = vmatmul.mubr.bf16.gmra.mrb[116].mxu0 %v9184_v15  ;;  %v9276_v15 = vld [vmem:[%s9619_s28 + $0x188] ss:$44 sps:$4 sm:$0xff]  }
 0x340   : > { %6478 = vmatprep.mubr.bf16.mxu0 %v9187_v17  ;;  %v9279_v17 = vld [vmem:[%s9619_s28 + $0x1c8] ss:$44 sps:$4 sm:$0xff]  }
 0x345   : > { %5110 = vmatmul.mubr.bf16.gmra.mrb[116].mxu1 %v9183_v14  ;;  %v9275_v14 = vld [vmem:[%s9619_s28 + $0x170] ss:$44 sps:$4 sm:$0xff]  }
 0x346   : > { %5119 = vmatprep.mubr.bf16.mxu1 %v9185_v16  ;;  %v9277_v16 = vld [vmem:[%s9619_s28 + $0x1cc] ss:$44 sps:$4 sm:$0xff]  }
 0x347   : > { %6479 = vmatmul.mubr.bf16.gmra.mrb[120].mxu0 %v9190_v19  ;;  %v9281_v19 = vld [vmem:[%s9619_s28 + $0x224] ss:$44 sps:$4 sm:$0xff]  }
 0x348   : > { %6488 = vmatprep.mubr.bf16.mxu0 %v9193_v21  ;;  %v9284_v21 = vld [vmem:[%s9619_s28 + $0x238] ss:$44 sps:$4 sm:$0xff]  }
 0x34d   : > { %5120 = vmatmul.mubr.bf16.gmra.mrb[120].mxu1 %v9189_v18  ;;  %v9280_v18 = vld [vmem:[%s9619_s28 + $0x1e0] ss:$44 sps:$4 sm:$0xff]  }
 0x34e   : > { %5129 = vmatprep.mubr.bf16.mxu1 %v9191_v20  ;;  %v9283_v20 = vld [vmem:[%s9619_s28 + $0x220] ss:$44 sps:$4 sm:$0xff]  }
 0x34f   : > { %6489 = vmatmul.mubr.bf16.gmra.mrb[124].mxu0 %v9196_v23  ;;  %v9287_v23 = vld [vmem:[%s9619_s28 + $0x278] ss:$44 sps:$4 sm:$0xff]  }
 0x350   : > { %6498 = vmatprep.mubr.bf16.mxu0 %v9199_v25  ;;  %v9289_v25 = vld [vmem:[%s9619_s28 + $0x2d4] ss:$44 sps:$4 sm:$0xff]  }
 0x355   : > { %5130 = vmatmul.mubr.bf16.gmra.mrb[124].mxu1 %v9195_v22  ;;  %v9285_v22 = vld [vmem:[%s9619_s28 + $0x27c] ss:$44 sps:$4 sm:$0xff]  }
 0x356   : > { %5139 = vmatprep.mubr.bf16.mxu1 %v9197_v24  ;;  %v9288_v24 = vld [vmem:[%s9619_s28 + $0x290] ss:$44 sps:$4 sm:$0xff]  }
 0x357   : > { %6499 = vmatmul.mubr.bf16.gmra.mrb[128].mxu0 %v9202_v27  ;;  %v9292_v27 = vld [vmem:[%s9619_s28 + $0x2e8] ss:$44 sps:$4 sm:$0xff]  }
 0x358   : > { %6508 = vmatprep.mubr.bf16.mxu0 %v9205_v29  ;;  %v9295_v29 = vld [vmem:[%s9619_s28 + $0x328] ss:$44 sps:$4 sm:$0xff]  }
 0x35d   : > { %5140 = vmatmul.mubr.bf16.gmra.mrb[128].mxu1 %v9201_v26  ;;  %v9291_v26 = vld [vmem:[%s9619_s28 + $0x2d0] ss:$44 sps:$4 sm:$0xff]  }
 0x35e   : > { %5149 = vmatprep.mubr.bf16.mxu1 %v9203_v28  ;;  %v9293_v28 = vld [vmem:[%s9619_s28 + $0x32c] ss:$44 sps:$4 sm:$0xff]  }
 0x35f   : > { %6509 = vmatmul.mubr.bf16.gmra.mrb[132].mxu0 %v9208_v31  ;;  %v9297_v31 = vld [vmem:[%s9619_s28 + $0x384] ss:$44 sps:$4 sm:$0xff]  }
 0x360   : > { %6518 = vmatprep.mubr.bf16.mxu0 %v9211_v33  ;;  %v9300_v33 = vld [vmem:[%s9619_s28 + $0x398] ss:$44 sps:$4 sm:$0xff]  }
 0x365   : > { %5150 = vmatmul.mubr.bf16.gmra.mrb[132].mxu1 %v9207_v30  ;;  %v9296_v30 = vld [vmem:[%s9619_s28 + $0x340] ss:$44 sps:$4 sm:$0xff]  }
 0x366   : > { %5159 = vmatprep.mubr.bf16.mxu1 %v9209_v32  ;;  %v9299_v32 = vld [vmem:[%s9619_s28 + $0x380] ss:$44 sps:$4 sm:$0xff]  }
 0x367   : > { %6519 = vmatmul.mubr.bf16.gmra.mrb[136].mxu0 %v9214_v35  ;;  %v9303_v35 = vld [vmem:[%s9619_s28 + $0x3d8] ss:$44 sps:$4 sm:$0xff]  }
 0x368   : > { %6528 = vmatprep.mubr.bf16.mxu0 %v9217_v37  ;;  %v9305_v37 = vld [vmem:[%s9619_s28 + $0x434] ss:$44 sps:$4 sm:$0xff]  }
 0x36d   : > { %5160 = vmatmul.mubr.bf16.gmra.mrb[136].mxu1 %v9213_v34  ;;  %v9301_v34 = vld [vmem:[%s9619_s28 + $0x3dc] ss:$44 sps:$4 sm:$0xff]  }
 0x36e   : > { %5169 = vmatprep.mubr.bf16.mxu1 %v9215_v36  ;;  %v9304_v36 = vld [vmem:[%s9619_s28 + $0x3f0] ss:$44 sps:$4 sm:$0xff]  }
 0x36f   : > { %6529 = vmatmul.mubr.bf16.gmra.mrb[140].mxu0 %v9220_v39  ;;  %v9308_v39 = vld [vmem:[%s9619_s28 + $0x448] ss:$44 sps:$4 sm:$0xff]  }
 0x370   : > { %6538 = vmatprep.mubr.bf16.mxu0 %v9223_v41  ;;  %v9311_v41 = vld [vmem:[%s9619_s28 + $0x488] ss:$44 sps:$4 sm:$0xff]  }
 0x375   : > { %5170 = vmatmul.mubr.bf16.gmra.mrb[140].mxu1 %v9219_v38  ;;  %v9307_v38 = vld [vmem:[%s9619_s28 + $0x430] ss:$44 sps:$4 sm:$0xff]  }
 0x376   : > { %5179 = vmatprep.mubr.bf16.mxu1 %v9221_v40  ;;  %v9309_v40 = vld [vmem:[%s9619_s28 + $0x48c] ss:$44 sps:$4 sm:$0xff]  }
 0x377   : > { %6539 = vmatmul.mubr.bf16.gmra.mrb[144].mxu0 %v9226_v43  ;;  %v9313_v43 = vld [vmem:[%s9619_s28 + $0x4e4] ss:$44 sps:$4 sm:$0xff]  }
 0x378   : > { %6548 = vmatprep.mubr.bf16.mxu0 %v9229_v45  ;;  %v9316_v45 = vld [vmem:[%s9619_s28 + $0x4f8] ss:$44 sps:$4 sm:$0xff]  }
 0x37d   : > { %5180 = vmatmul.mubr.bf16.gmra.mrb[144].mxu1 %v9225_v42  ;;  %v9312_v42 = vld [vmem:[%s9619_s28 + $0x4a0] ss:$44 sps:$4 sm:$0xff]  }
 0x37e   : > { %5189 = vmatprep.mubr.bf16.mxu1 %v9227_v44  ;;  %v9315_v44 = vld [vmem:[%s9619_s28 + $0x4e0] ss:$44 sps:$4 sm:$0xff]  }
 0x37f   : > { %6549 = vmatmul.mubr.bf16.gmra.mrb[148].mxu0 %v9232_v47  ;;  %v9319_v47 = vld [vmem:[%s9619_s28 + $0x538] ss:$44 sps:$4 sm:$0xff]  }
 0x380   : > { %6558 = vmatprep.mubr.bf16.mxu0 %v9235_v49  ;;  %v9321_v49 = vld [vmem:[%s9619_s28 + $0x594] ss:$44 sps:$4 sm:$0xff]  }
 0x385   : > { %5190 = vmatmul.mubr.bf16.gmra.mrb[148].mxu1 %v9231_v46  ;;  %v9317_v46 = vld [vmem:[%s9619_s28 + $0x53c] ss:$44 sps:$4 sm:$0xff]  }
 0x386   : > { %5199 = vmatprep.mubr.bf16.mxu1 %v9233_v48  ;;  %v9320_v48 = vld [vmem:[%s9619_s28 + $0x550] ss:$44 sps:$4 sm:$0xff]  }
 0x387   : > { %6559 = vmatmul.mubr.bf16.gmra.mrb[152].mxu0 %v9238_v51  ;;  %v9324_v51 = vld [vmem:[%s9619_s28 + $0x5a8] ss:$44 sps:$4 sm:$0xff]  }
 0x388   : > { %6568 = vmatprep.mubr.bf16.mxu0 %v9241_v53  ;;  %v9327_v53 = vld [vmem:[%s9619_s28 + $0x5e8] ss:$44 sps:$4 sm:$0xff]  }
 0x38d   : > { %5200 = vmatmul.mubr.bf16.gmra.mrb[152].mxu1 %v9237_v50  ;;  %v9323_v50 = vld [vmem:[%s9619_s28 + $0x590] ss:$44 sps:$4 sm:$0xff]  }
 0x38e   : > { %5209 = vmatprep.mubr.bf16.mxu1 %v9239_v52  ;;  %v9325_v52 = vld [vmem:[%s9619_s28 + $0x5ec] ss:$44 sps:$4 sm:$0xff]  }
 0x38f   : > { %6569 = vmatmul.mubr.bf16.gmra.mrb[156].mxu0 %v9244_v55  ;;  %v9329_v55 = vld [vmem:[%s9619_s28 + $0x644] ss:$44 sps:$4 sm:$0xff]  }
 0x390   : > { %6578 = vmatprep.mubr.bf16.mxu0 %v9247_v57  ;;  %v9332_v57 = vld [vmem:[%s9619_s28 + $0x658] ss:$44 sps:$4 sm:$0xff]  }
 0x395   : > { %5210 = vmatmul.mubr.bf16.gmra.mrb[156].mxu1 %v9243_v54  ;;  %v9328_v54 = vld [vmem:[%s9619_s28 + $0x600] ss:$44 sps:$4 sm:$0xff]  }
 0x396   : > { %5219 = vmatprep.mubr.bf16.mxu1 %v9245_v56  ;;  %v9331_v56 = vld [vmem:[%s9619_s28 + $0x640] ss:$44 sps:$4 sm:$0xff]  }
 0x397   : > { %6579 = vmatmul.mubr.bf16.gmra.mrb[160].mxu0 %v9250_v59  ;;  %v9335_v59 = vld [vmem:[%s9619_s28 + $0x698] ss:$44 sps:$4 sm:$0xff]  }
 0x398   : > { %6588 = vmatprep.mubr.bf16.mxu0 %v9253_v61  ;;  %v9337_v61 = vld [vmem:[%s9619_s28 + $0x6f4] ss:$44 sps:$4 sm:$0xff]  }
 0x39d   : > { %5220 = vmatmul.mubr.bf16.gmra.mrb[160].mxu1 %v9249_v58  ;;  %v9333_v58 = vld [vmem:[%s9619_s28 + $0x69c] ss:$44 sps:$4 sm:$0xff]  }
 0x39e   : > { %5229 = vmatprep.mubr.bf16.mxu1 %v9251_v60  ;;  %v9336_v60 = vld [vmem:[%s9619_s28 + $0x6b0] ss:$44 sps:$4 sm:$0xff]  }
 0x39f   : > { %6589 = vmatmul.mubr.bf16.gmra.mrb[164].mxu0 %v9256_v63  ;;  %v9340_v63 = vld [vmem:[%s9619_s28 + $0x708] ss:$44 sps:$4 sm:$0xff]  }
 0x3a0   : > { %6631 = vmatprep.mubr.bf16.mxu0 %v9510_v1 }
 0x3a5   : > { %5230 = vmatmul.mubr.bf16.gmra.mrb[164].mxu1 %v9255_v62  ;;  %v9339_v62 = vld [vmem:[%s9619_s28 + $0x6f0] ss:$44 sps:$4 sm:$0xff]  }
 0x3a6   : > { %5272 = vmatprep.mubr.bf16.mxu1 %v9259_v0  ;;  %v9341_v0 = vld [vmem:[%s9619_s28 + $0x74c] ss:$44 sps:$4 sm:$0xff]  }
 0x3a7   : > { %7806 = vmatmul.mubr.msk.bf16.vlgmr.msra.gmra.mrb[0].mxu0 %vm4207_vm1, %v9260_v3  ;;  %v9344_v3 = vld [vmem:[%s9619_s28 + $0x760] ss:$44 sps:$4 sm:$0xff]  }
 0x3a8   : > { %6641 = vmatprep.mubr.bf16.mxu0 %v9510_v1 }
 0x3ad   : > { %5273 = vmatmul.mubr.bf16.vlgmr.msra.gmra.mrb[0].mxu1 %v9257_v2  ;;  %v9343_v2 = vld [vmem:[%s9619_s28 + $0x748] ss:$44 sps:$4 sm:$0xff]  }
 0x3ae   : > { %5282 = vmatprep.mubr.bf16.mxu1 %v9261_v4  ;;  %v9345_v4 = vld [vmem:[%s9619_s28 + $0x7a4] ss:$44 sps:$4 sm:$0xff]  }
 0x3af   : > { %7807 = vmatmul.mubr.msk.bf16.gmra.mrb[4].mxu0 %vm4207_vm1, %v9264_v6  ;;  %v9348_v6 = vld [vmem:[%s9619_s28 + $0x7b8] ss:$44 sps:$4 sm:$0xff]  }
 0x3b0   : > { %6651 = vmatprep.mubr.bf16.mxu0 %v9510_v1 }
 0x3b5   : > { %5283 = vmatmul.mubr.bf16.gmra.mrb[4].mxu1 %v9263_v5  ;;  %v9347_v5 = vld [vmem:[%s9619_s28 + $0x7a0] ss:$44 sps:$4 sm:$0xff]  }
 0x3b6   : > { %5292 = vmatprep.mubr.bf16.mxu1 %v9265_v7  ;;  %v9349_v7 = vld [vmem:[%s9619_s28 + $0x7fc] ss:$44 sps:$4 sm:$0xff]  }
 0x3b7   : > { %7808 = vmatmul.mubr.msk.bf16.gmra.mrb[8].mxu0 %vm4207_vm1, %v9268_v9  ;;  %v9352_v9 = vld [vmem:[%s9619_s28 + $0x810] ss:$44 sps:$4 sm:$0xff]  }
 0x3b8   : > { %6661 = vmatprep.mubr.bf16.mxu0 %v9510_v1 }
 0x3bd   : > { %5293 = vmatmul.mubr.bf16.gmra.mrb[8].mxu1 %v9267_v8  ;;  %v9351_v8 = vld [vmem:[%s9619_s28 + $0x7f8] ss:$44 sps:$4 sm:$0xff]  }
 0x3be   : > { %5302 = vmatprep.mubr.bf16.mxu1 %v9269_v10  ;;  %v9353_v10 = vld [vmem:[%s9619_s28 + $0x854] ss:$44 sps:$4 sm:$0xff]  }
 0x3bf   : > { %7809 = vmatmul.mubr.msk.bf16.gmra.mrb[12].mxu0 %vm4207_vm1, %v9272_v12  ;;  %v9356_v12 = vld [vmem:[%s9619_s28 + $0x868] ss:$44 sps:$4 sm:$0xff]  }
 0x3c0   : > { %6671 = vmatprep.mubr.bf16.mxu0 %v9510_v1 }
 0x3c5   : > { %5303 = vmatmul.mubr.bf16.gmra.mrb[12].mxu1 %v9271_v11  ;;  %v9355_v11 = vld [vmem:[%s9619_s28 + $0x850] ss:$44 sps:$4 sm:$0xff]  }
 0x3c6   : > { %5312 = vmatprep.mubr.bf16.mxu1 %v9273_v13  ;;  %v9357_v13 = vld [vmem:[%s9619_s28 + $0x8ac] ss:$44 sps:$4 sm:$0xff]  }
 0x3c7   : > { %7810 = vmatmul.mubr.msk.bf16.gmra.mrb[16].mxu0 %vm4207_vm1, %v9276_v15  ;;  %v9360_v15 = vld [vmem:[%s9619_s28 + $0x8c0] ss:$44 sps:$4 sm:$0xff]  }
 0x3c8   : > { %6681 = vmatprep.mubr.bf16.mxu0 %v9510_v1 }
 0x3cd   : > { %5313 = vmatmul.mubr.bf16.gmra.mrb[16].mxu1 %v9275_v14  ;;  %v9359_v14 = vld [vmem:[%s9619_s28 + $0x8a8] ss:$44 sps:$4 sm:$0xff]  }
 0x3ce   : > { %5322 = vmatprep.mubr.bf16.mxu1 %v9277_v16  ;;  %v9361_v16 = vld [vmem:[%s9619_s28 + $0x904] ss:$44 sps:$4 sm:$0xff]  }
 0x3cf   : > { %7811 = vmatmul.mubr.msk.bf16.gmra.mrb[20].mxu0 %vm4207_vm1, %v9280_v18  ;;  %v9364_v18 = vld [vmem:[%s9619_s28 + $0x918] ss:$44 sps:$4 sm:$0xff]  }
 0x3d0   : > { %6691 = vmatprep.mubr.bf16.mxu0 %v9510_v1 }
 0x3d5   : > { %5323 = vmatmul.mubr.bf16.gmra.mrb[20].mxu1 %v9279_v17  ;;  %v9363_v17 = vld [vmem:[%s9619_s28 + $0x900] ss:$44 sps:$4 sm:$0xff]  }
 0x3d6   : > { %5332 = vmatprep.mubr.bf16.mxu1 %v9281_v19  ;;  %v9365_v19 = vld [vmem:[%s9619_s28 + $0x95c] ss:$44 sps:$4 sm:$0xff]  }
 0x3d7   : > { %7812 = vmatmul.mubr.msk.bf16.gmra.mrb[24].mxu0 %vm4207_vm1, %v9284_v21 }
 0x3d8   : > { %6701 = vmatprep.mubr.bf16.mxu0 %v9510_v1 }
 0x3dd   : > { %5333 = vmatmul.mubr.bf16.gmra.mrb[24].mxu1 %v9283_v20 }
 0x3de   : > { %5342 = vmatprep.mubr.bf16.mxu1 %v9285_v22 }
 0x3df   : > { %7813 = vmatmul.mubr.msk.bf16.gmra.mrb[28].mxu0 %vm4207_vm1, %v9288_v24 }
 0x3e0   : > { %6711 = vmatprep.mubr.bf16.mxu0 %v9510_v1 }
 0x3e5   : > { %5343 = vmatmul.mubr.bf16.gmra.mrb[28].mxu1 %v9287_v23 }
 0x3e6   : > { %5352 = vmatprep.mubr.bf16.mxu1 %v9289_v25  ;;  %v9367_v25 = vld [vmem:[%s9619_s28 + $0x958] ss:$44 sps:$4 sm:$0xff]  }
 0x3e7   : > { %7814 = vmatmul.mubr.msk.bf16.gmra.mrb[32].mxu0 %vm4207_vm1, %v9292_v27 }
 0x3e8   : > { %6721 = vmatprep.mubr.bf16.mxu0 %v9510_v1 }
 0x3ed   : > { %5353 = vmatmul.mubr.bf16.gmra.mrb[32].mxu1 %v9291_v26  ;;  %v9368_v26 = vld [vmem:[%s9619_s28 + $0x970] ss:$44 sps:$4 sm:$0xff]  }
 0x3ee   : > { %5362 = vmatprep.mubr.bf16.mxu1 %v9293_v28 }
 0x3ef   : > { %7815 = vmatmul.mubr.msk.bf16.gmra.mrb[36].mxu0 %vm4207_vm1, %v9296_v30  ;;  %v9369_v30 = vld [vmem:[%s9619_s28 + $0x9b4] ss:$44 sps:$4 sm:$0xff]  }
 0x3f0   : > { %6731 = vmatprep.mubr.bf16.mxu0 %v9510_v1 }
 0x3f5   : > { %5363 = vmatmul.mubr.bf16.gmra.mrb[36].mxu1 %v9295_v29 }
 0x3f6   : > { %5372 = vmatprep.mubr.bf16.mxu1 %v9297_v31 }
 0x3f7   : > { %7816 = vmatmul.mubr.msk.bf16.gmra.mrb[40].mxu0 %vm4207_vm1, %v9300_v33 }
 0x3f8   : > { %6741 = vmatprep.mubr.bf16.mxu0 %v9510_v1 }
 0x3fd   : > { %5373 = vmatmul.mubr.bf16.gmra.mrb[40].mxu1 %v9299_v32 }
 0x3fe   : > { %5382 = vmatprep.mubr.bf16.mxu1 %v9301_v34 }
 0x3ff   : > { %7817 = vmatmul.mubr.msk.bf16.gmra.mrb[44].mxu0 %vm4207_vm1, %v9304_v36 }
 0x400   : > { %6751 = vmatprep.mubr.bf16.mxu0 %v9510_v1 }
 0x405   : > { %5383 = vmatmul.mubr.bf16.gmra.mrb[44].mxu1 %v9303_v35 }
 0x406   : > { %5392 = vmatprep.mubr.bf16.mxu1 %v9305_v37 }
 0x407   : > { %7818 = vmatmul.mubr.msk.bf16.gmra.mrb[48].mxu0 %vm4207_vm1, %v9308_v39 }
 0x408   : > { %6761 = vmatprep.mubr.bf16.mxu0 %v9510_v1 }
 0x40d   : > { %5393 = vmatmul.mubr.bf16.gmra.mrb[48].mxu1 %v9307_v38 }
 0x40e   : > { %5402 = vmatprep.mubr.bf16.mxu1 %v9309_v40  ;;  %v9371_v40 = vld [vmem:[%s9619_s28 + $0x9b0] ss:$44 sps:$4 sm:$0xff]  }
 0x40f   : > { %7819 = vmatmul.mubr.msk.bf16.gmra.mrb[52].mxu0 %vm4207_vm1, %v9312_v42 }
 0x410   : > { %6771 = vmatprep.mubr.bf16.mxu0 %v9510_v1 }
 0x415   : > { %5403 = vmatmul.mubr.bf16.gmra.mrb[52].mxu1 %v9311_v41  ;;  %v9372_v41 = vld [vmem:[%s9619_s28 + $0x9c8] ss:$44 sps:$4 sm:$0xff]  }
 0x416   : > { %5412 = vmatprep.mubr.bf16.mxu1 %v9313_v43 }
 0x417   : > { %7820 = vmatmul.mubr.msk.bf16.gmra.mrb[56].mxu0 %vm4207_vm1, %v9316_v45  ;;  %v9373_v45 = vld [vmem:[%s9619_s28 + $0xa0c] ss:$44 sps:$4 sm:$0xff]  }
 0x418   : > { %6781 = vmatprep.mubr.bf16.mxu0 %v9510_v1 }
 0x41d   : > { %5413 = vmatmul.mubr.bf16.gmra.mrb[56].mxu1 %v9315_v44 }
 0x41e   : > { %5422 = vmatprep.mubr.bf16.mxu1 %v9317_v46 }
 0x41f   : > { %7821 = vmatmul.mubr.msk.bf16.gmra.mrb[60].mxu0 %vm4207_vm1, %v9320_v48 }
 0x420   : > { %6791 = vmatprep.mubr.bf16.mxu0 %v9510_v1 }
 0x425   : > { %5423 = vmatmul.mubr.bf16.gmra.mrb[60].mxu1 %v9319_v47 }
 0x426   : > { %5432 = vmatprep.mubr.bf16.mxu1 %v9321_v49 }
 0x427   : > { %7822 = vmatmul.mubr.msk.bf16.gmra.mrb[64].mxu0 %vm4207_vm1, %v9324_v51 }
 0x428   : > { %6801 = vmatprep.mubr.bf16.mxu0 %v9510_v1 }
 0x42d   : > { %5433 = vmatmul.mubr.bf16.gmra.mrb[64].mxu1 %v9323_v50 }
 0x42e   : > { %5442 = vmatprep.mubr.bf16.mxu1 %v9325_v52 }
 0x42f   : > { %7823 = vmatmul.mubr.msk.bf16.gmra.mrb[68].mxu0 %vm4207_vm1, %v9328_v54 }
 0x430   : > { %6811 = vmatprep.mubr.bf16.mxu0 %v9510_v1 }
 0x435   : > { %5443 = vmatmul.mubr.bf16.gmra.mrb[68].mxu1 %v9327_v53 }
 0x436   : > { %5452 = vmatprep.mubr.bf16.mxu1 %v9329_v55  ;;  %v9375_v55 = vld [vmem:[%s9619_s28 + $0xa08] ss:$44 sps:$4 sm:$0xff]  }
 0x437   : > { %7824 = vmatmul.mubr.msk.bf16.gmra.mrb[72].mxu0 %vm4207_vm1, %v9332_v57 }
 0x438   : > { %6821 = vmatprep.mubr.bf16.mxu0 %v9510_v1 }
 0x43d   : > { %5453 = vmatmul.mubr.bf16.gmra.mrb[72].mxu1 %v9331_v56  ;;  %v9376_v56 = vld [vmem:[%s9619_s28 + $0xa20] ss:$44 sps:$4 sm:$0xff]  }
 0x43e   : > { %5462 = vmatprep.mubr.bf16.mxu1 %v9333_v58 }
 0x43f   : > { %7825 = vmatmul.mubr.msk.bf16.gmra.mrb[76].mxu0 %vm4207_vm1, %v9336_v60  ;;  %v9377_v60 = vld [vmem:[%s9619_s28 + $0xa64] ss:$44 sps:$4 sm:$0xff]  }
 0x440   : > { %6831 = vmatprep.mubr.bf16.mxu0 %v9510_v1 }
 0x445   : > { %5463 = vmatmul.mubr.bf16.gmra.mrb[76].mxu1 %v9335_v59 }
 0x446   : > { %5472 = vmatprep.mubr.bf16.mxu1 %v9337_v61 }
 0x447   : > { %7826 = vmatmul.mubr.msk.bf16.gmra.mrb[80].mxu0 %vm4207_vm1, %v9340_v63 }
 0x448   : > { %6841 = vmatprep.mubr.bf16.mxu0 %v9510_v1 }
 0x44d   : > { %5473 = vmatmul.mubr.bf16.gmra.mrb[80].mxu1 %v9339_v62 }
 0x44e   : > { %5482 = vmatprep.mubr.bf16.mxu1 %v9341_v0 }
 0x44f   : > { %7827 = vmatmul.mubr.msk.bf16.gmra.mrb[84].mxu0 %vm4207_vm1, %v9344_v3 }
 0x450   : > { %6851 = vmatprep.mubr.bf16.mxu0 %v9510_v1 }
 0x455   : > { %5483 = vmatmul.mubr.bf16.gmra.mrb[84].mxu1 %v9343_v2 }
 0x456   : > { %5492 = vmatprep.mubr.bf16.mxu1 %v9345_v4 }
 0x457   : > { %7828 = vmatmul.mubr.msk.bf16.gmra.mrb[88].mxu0 %vm4207_vm1, %v9348_v6 }
 0x458   : > { %6861 = vmatprep.mubr.bf16.mxu0 %v9510_v1 }
 0x45d   : > { %5493 = vmatmul.mubr.bf16.gmra.mrb[88].mxu1 %v9347_v5 }
 0x45e   : > { %5502 = vmatprep.mubr.bf16.mxu1 %v9349_v7  ;;  %v9379_v7 = vld [vmem:[%s9619_s28 + $0xa60] ss:$44 sps:$4 sm:$0xff]  }
 0x45f   : > { %7829 = vmatmul.mubr.msk.bf16.gmra.mrb[92].mxu0 %vm4207_vm1, %v9352_v9 }
 0x460   : > { %6871 = vmatprep.mubr.bf16.mxu0 %v9510_v1 }
 0x465   : > { %5503 = vmatmul.mubr.bf16.gmra.mrb[92].mxu1 %v9351_v8  ;;  %v9380_v8 = vld [vmem:[%s9619_s28 + $0xa78] ss:$44 sps:$4 sm:$0xff]  }
 0x466   : > { %5512 = vmatprep.mubr.bf16.mxu1 %v9353_v10 }
 0x467   : > { %7830 = vmatmul.mubr.msk.bf16.gmra.mrb[96].mxu0 %vm4207_vm1, %v9356_v12  ;;  %v9381_v12 = vld [vmem:[%s9619_s28 + $0xabc] ss:$44 sps:$4 sm:$0xff]  }
 0x468   : > { %6881 = vmatprep.mubr.bf16.mxu0 %v9510_v1 }
 0x46d   : > { %5513 = vmatmul.mubr.bf16.gmra.mrb[96].mxu1 %v9355_v11 }
 0x46e   : > { %5522 = vmatprep.mubr.bf16.mxu1 %v9357_v13 }
 0x46f   : > { %7831 = vmatmul.mubr.msk.bf16.gmra.mrb[100].mxu0 %vm4207_vm1, %v9360_v15 }
 0x470   : > { %6891 = vmatprep.mubr.bf16.mxu0 %v9510_v1 }
 0x475   : > { %5523 = vmatmul.mubr.bf16.gmra.mrb[100].mxu1 %v9359_v14 }
 0x476   : > { %5532 = vmatprep.mubr.bf16.mxu1 %v9361_v16 }
 0x477   : > { %7832 = vmatmul.mubr.msk.bf16.gmra.mrb[104].mxu0 %vm4207_vm1, %v9364_v18 }
 0x478   : > { %6901 = vmatprep.mubr.bf16.mxu0 %v9510_v1 }
 0x47a   : > { %v6633_v21 = vpop.f32.mrb[0].mxu0 }
 0x47b   : > { %v6635_v24 = vpop.f32.mrb[1].mxu0 }
 0x47c   : > { %v6637_v29 = vpop.f32.mrb[2].mxu0 }
 0x47d   : > { %5533 = vmatmul.mubr.bf16.gmra.mrb[104].mxu1 %v9363_v17  ;;  %v6639_v33 = vpop.f32.mrb[3].mxu0 }
 0x47e   : > { %5542 = vmatprep.mubr.bf16.mxu1 %v9365_v19 }
 0x47f   : > { %7833 = vmatmul.mubr.msk.bf16.gmra.mrb[108].mxu0 %vm4207_vm1, %v9368_v26 }
 0x480   : > { %v5274_v20 = vpop.f32.mrb[0].mxu1  ;;  %6911 = vmatprep.mubr.bf16.mxu0 %v9510_v1 }
 0x481   : > { %v7851_v22 = vadd.f32 %v6633_v21, %v5274_v20  ;;  %v5276_v23 = vpop.f32.mrb[1].mxu1 }
 0x482   : > { %v7852_v27 = vadd.f32 %v6635_v24, %v5276_v23  ;;  %v5278_v28 = vpop.f32.mrb[2].mxu1  ;;  %v6643_v36 = vpop.f32.mrb[4].mxu0  ;;  %v9384_v23 = vld [vmem:[%s9619_s28 + $0xad0] ss:$44 sps:$4 sm:$0xff]  }
 0x483   : > { %7052 = vst [vmem:[%s9629_s30] sm:$0xff] %v7851_v22  ;;  %v7853_v31 = vadd.f32 %v6637_v29, %v5278_v28  ;;  %v5280_v32 = vpop.f32.mrb[3].mxu1  ;;  %v6645_v39 = vpop.f32.mrb[5].mxu0  ;;  %v9383_v22 = vld [vmem:[%s9619_s28 + $0xab8] ss:$44 sps:$4 sm:$0xff]  }
 0x484   : > { %7054 = vst.msk [vmem:[%s9629_s30 + $0x8] sm:$0xff] %vm7053_vm2, %v7852_v27  ;;  %v7854_v34 = vadd.f32 %v6639_v33, %v5280_v32  ;;  %v6647_v44 = vpop.f32.mrb[6].mxu0  ;;  %v9385_v27 = vld [vmem:[%s9619_s28 + $0xb14] ss:$44 sps:$4 sm:$0xff]  }
 0x485   : > { %7055 = vst [vmem:[%s9629_s30 + $0x10] sm:$0xff] %v7853_v31  ;;  %5543 = vmatmul.mubr.bf16.gmra.mrb[108].mxu1 %v9367_v25  ;;  %v6649_v48 = vpop.f32.mrb[7].mxu0 }
 0x486   : > { %7056 = vst.msk [vmem:[%s9629_s30 + $0x18] sm:$0xff] %vm7053_vm2, %v7854_v34  ;;  %5552 = vmatprep.mubr.bf16.mxu1 %v9369_v30 }
 0x487   : > { %7834 = vmatmul.mubr.msk.bf16.gmra.mrb[112].mxu0 %vm4207_vm1, %v9372_v41 }
 0x488   : > { %v5284_v35 = vpop.f32.mrb[4].mxu1  ;;  %6921 = vmatprep.mubr.bf16.mxu0 %v9510_v1 }
 0x489   : > { %v7855_v37 = vadd.f32 %v6643_v36, %v5284_v35  ;;  %v5286_v38 = vpop.f32.mrb[5].mxu1 }
 0x48a   : > { %v7856_v42 = vadd.f32 %v6645_v39, %v5286_v38  ;;  %v5288_v43 = vpop.f32.mrb[6].mxu1  ;;  %v6653_v51 = vpop.f32.mrb[8].mxu0  ;;  %v9388_v38 = vld [vmem:[%s9619_s28 + $0xb28] ss:$44 sps:$4 sm:$0xff]  }
 0x48b   : > { %7057 = vst [vmem:[%s9629_s30 + $0x20] sm:$0xff] %v7855_v37  ;;  %v7857_v46 = vadd.f32 %v6647_v44, %v5288_v43  ;;  %v5290_v47 = vpop.f32.mrb[7].mxu1  ;;  %v6655_v54 = vpop.f32.mrb[9].mxu0  ;;  %v9387_v37 = vld [vmem:[%s9619_s28 + $0xb10] ss:$44 sps:$4 sm:$0xff]  }
 0x48c   : > { %7058 = vst.msk [vmem:[%s9629_s30 + $0x28] sm:$0xff] %vm7053_vm2, %v7856_v42  ;;  %v7858_v49 = vadd.f32 %v6649_v48, %v5290_v47  ;;  %v6657_v59 = vpop.f32.mrb[10].mxu0  ;;  %v9389_v42 = vld [vmem:[%s9619_s28 + $0xb6c] ss:$44 sps:$4 sm:$0xff]  }
 0x48d   : > { %7059 = vst [vmem:[%s9629_s30 + $0x30] sm:$0xff] %v7857_v46  ;;  %5553 = vmatmul.mubr.bf16.gmra.mrb[112].mxu1 %v9371_v40  ;;  %v6659_v63 = vpop.f32.mrb[11].mxu0 }
 0x48e   : > { %7060 = vst.msk [vmem:[%s9629_s30 + $0x38] sm:$0xff] %vm7053_vm2, %v7858_v49  ;;  %5562 = vmatprep.mubr.bf16.mxu1 %v9373_v45 }
 0x48f   : > { %7835 = vmatmul.mubr.msk.bf16.gmra.mrb[116].mxu0 %vm4207_vm1, %v9376_v56 }
 0x490   : > { %v5294_v50 = vpop.f32.mrb[8].mxu1  ;;  %6931 = vmatprep.mubr.bf16.mxu0 %v9510_v1 }
 0x491   : > { %v7859_v52 = vadd.f32 %v6653_v51, %v5294_v50  ;;  %v5296_v53 = vpop.f32.mrb[9].mxu1 }
 0x492   : > { %v7860_v57 = vadd.f32 %v6655_v54, %v5296_v53  ;;  %v5298_v58 = vpop.f32.mrb[10].mxu1  ;;  %v6663_v3 = vpop.f32.mrb[12].mxu0  ;;  %v9392_v53 = vld [vmem:[%s9619_s28 + $0xb80] ss:$44 sps:$4 sm:$0xff]  }
 0x493   : > { %7061 = vst [vmem:[%s9629_s30 + $0x40] sm:$0xff] %v7859_v52  ;;  %v7861_v61 = vadd.f32 %v6657_v59, %v5298_v58  ;;  %v5300_v62 = vpop.f32.mrb[11].mxu1  ;;  %v6665_v6 = vpop.f32.mrb[13].mxu0  ;;  %v9391_v52 = vld [vmem:[%s9619_s28 + $0xb68] ss:$44 sps:$4 sm:$0xff]  }
 0x494   : > { %7062 = vst.msk [vmem:[%s9629_s30 + $0x48] sm:$0xff] %vm7053_vm2, %v7860_v57  ;;  %v7862_v0 = vadd.f32 %v6659_v63, %v5300_v62  ;;  %v6667_v11 = vpop.f32.mrb[14].mxu0  ;;  %v9393_v57 = vld [vmem:[%s9619_s28 + $0xbc4] ss:$44 sps:$4 sm:$0xff]  }
 0x495   : > { %7063 = vst [vmem:[%s9629_s30 + $0x50] sm:$0xff] %v7861_v61  ;;  %5563 = vmatmul.mubr.bf16.gmra.mrb[116].mxu1 %v9375_v55  ;;  %v6669_v15 = vpop.f32.mrb[15].mxu0 }
 0x496   : > { %7064 = vst.msk [vmem:[%s9629_s30 + $0x58] sm:$0xff] %vm7053_vm2, %v7862_v0  ;;  %5572 = vmatprep.mubr.bf16.mxu1 %v9377_v60 }
 0x497   : > { %7836 = vmatmul.mubr.msk.bf16.gmra.mrb[120].mxu0 %vm4207_vm1, %v9380_v8 }
 0x498   : > { %v5304_v2 = vpop.f32.mrb[12].mxu1  ;;  %6941 = vmatprep.mubr.bf16.mxu0 %v9510_v1 }
 0x499   : > { %v7863_v4 = vadd.f32 %v6663_v3, %v5304_v2  ;;  %v5306_v5 = vpop.f32.mrb[13].mxu1 }
 0x49a   : > { %v7864_v9 = vadd.f32 %v6665_v6, %v5306_v5  ;;  %v5308_v10 = vpop.f32.mrb[14].mxu1  ;;  %v6673_v18 = vpop.f32.mrb[16].mxu0  ;;  %v9396_v5 = vld [vmem:[%s9619_s28 + $0xbd8] ss:$44 sps:$4 sm:$0xff]  }
 0x49b   : > { %7065 = vst [vmem:[%s9629_s30 + $0x60] sm:$0xff] %v7863_v4  ;;  %v7865_v13 = vadd.f32 %v6667_v11, %v5308_v10  ;;  %v5310_v14 = vpop.f32.mrb[15].mxu1  ;;  %v6675_v21 = vpop.f32.mrb[17].mxu0  ;;  %v9395_v4 = vld [vmem:[%s9619_s28 + $0xbc0] ss:$44 sps:$4 sm:$0xff]  }
 0x49c   : > { %7066 = vst.msk [vmem:[%s9629_s30 + $0x68] sm:$0xff] %vm7053_vm2, %v7864_v9  ;;  %v7866_v16 = vadd.f32 %v6669_v15, %v5310_v14  ;;  %v6677_v26 = vpop.f32.mrb[18].mxu0  ;;  %v9397_v9 = vld [vmem:[%s9619_s28 + $0xc1c] ss:$44 sps:$4 sm:$0xff]  }
 0x49d   : > { %7067 = vst [vmem:[%s9629_s30 + $0x70] sm:$0xff] %v7865_v13  ;;  %5573 = vmatmul.mubr.bf16.gmra.mrb[120].mxu1 %v9379_v7  ;;  %v6679_v30 = vpop.f32.mrb[19].mxu0 }
 0x49e   : > { %7068 = vst.msk [vmem:[%s9629_s30 + $0x78] sm:$0xff] %vm7053_vm2, %v7866_v16  ;;  %5582 = vmatprep.mubr.bf16.mxu1 %v9381_v12 }
 0x49f   : > { %7837 = vmatmul.mubr.msk.bf16.gmra.mrb[124].mxu0 %vm4207_vm1, %v9384_v23 }
 0x4a0   : > { %v5314_v17 = vpop.f32.mrb[16].mxu1  ;;  %6951 = vmatprep.mubr.bf16.mxu0 %v9510_v1 }
 0x4a1   : > { %v7867_v19 = vadd.f32 %v6673_v18, %v5314_v17  ;;  %v5316_v20 = vpop.f32.mrb[17].mxu1 }
 0x4a2   : > { %v7868_v24 = vadd.f32 %v6675_v21, %v5316_v20  ;;  %v5318_v25 = vpop.f32.mrb[18].mxu1  ;;  %v6683_v33 = vpop.f32.mrb[20].mxu0  ;;  %v9400_v20 = vld [vmem:[%s9619_s28 + $0xc30] ss:$44 sps:$4 sm:$0xff]  }
 0x4a3   : > { %7069 = vst [vmem:[%s9629_s30 + $0x80] sm:$0xff] %v7867_v19  ;;  %v7869_v28 = vadd.f32 %v6677_v26, %v5318_v25  ;;  %v5320_v29 = vpop.f32.mrb[19].mxu1  ;;  %v6685_v36 = vpop.f32.mrb[21].mxu0  ;;  %v9399_v19 = vld [vmem:[%s9619_s28 + $0xc18] ss:$44 sps:$4 sm:$0xff]  }
 0x4a4   : > { %7070 = vst.msk [vmem:[%s9629_s30 + $0x88] sm:$0xff] %vm7053_vm2, %v7868_v24  ;;  %v7870_v31 = vadd.f32 %v6679_v30, %v5320_v29  ;;  %v6687_v41 = vpop.f32.mrb[22].mxu0  ;;  %v9401_v24 = vld [vmem:[%s9619_s28 + $0xc74] ss:$44 sps:$4 sm:$0xff]  }
 0x4a5   : > { %7071 = vst [vmem:[%s9629_s30 + $0x90] sm:$0xff] %v7869_v28  ;;  %5583 = vmatmul.mubr.bf16.gmra.mrb[124].mxu1 %v9383_v22  ;;  %v6689_v45 = vpop.f32.mrb[23].mxu0 }
 0x4a6   : > { %7072 = vst.msk [vmem:[%s9629_s30 + $0x98] sm:$0xff] %vm7053_vm2, %v7870_v31  ;;  %5592 = vmatprep.mubr.bf16.mxu1 %v9385_v27 }
 0x4a7   : > { %7838 = vmatmul.mubr.msk.bf16.gmra.mrb[128].mxu0 %vm4207_vm1, %v9388_v38 }
 0x4a8   : > { %v5324_v32 = vpop.f32.mrb[20].mxu1  ;;  %6961 = vmatprep.mubr.bf16.mxu0 %v9510_v1 }
 0x4a9   : > { %v7871_v34 = vadd.f32 %v6683_v33, %v5324_v32  ;;  %v5326_v35 = vpop.f32.mrb[21].mxu1 }
 0x4aa   : > { %v7872_v39 = vadd.f32 %v6685_v36, %v5326_v35  ;;  %v5328_v40 = vpop.f32.mrb[22].mxu1  ;;  %v6693_v48 = vpop.f32.mrb[24].mxu0  ;;  %v9404_v35 = vld [vmem:[%s9619_s28 + $0xc88] ss:$44 sps:$4 sm:$0xff]  }
 0x4ab   : > { %7073 = vst [vmem:[%s9629_s30 + $0xa0] sm:$0xff] %v7871_v34  ;;  %v7873_v43 = vadd.f32 %v6687_v41, %v5328_v40  ;;  %v5330_v44 = vpop.f32.mrb[23].mxu1  ;;  %v6695_v51 = vpop.f32.mrb[25].mxu0  ;;  %v9403_v34 = vld [vmem:[%s9619_s28 + $0xc70] ss:$44 sps:$4 sm:$0xff]  }
 0x4ac   : > { %7074 = vst.msk [vmem:[%s9629_s30 + $0xa8] sm:$0xff] %vm7053_vm2, %v7872_v39  ;;  %v7874_v46 = vadd.f32 %v6689_v45, %v5330_v44  ;;  %v6697_v56 = vpop.f32.mrb[26].mxu0  ;;  %v9405_v39 = vld [vmem:[%s9619_s28 + $0xccc] ss:$44 sps:$4 sm:$0xff]  }
 0x4ad   : > { %7075 = vst [vmem:[%s9629_s30 + $0xb0] sm:$0xff] %v7873_v43  ;;  %5593 = vmatmul.mubr.bf16.gmra.mrb[128].mxu1 %v9387_v37  ;;  %v6699_v60 = vpop.f32.mrb[27].mxu0 }
 0x4ae   : > { %7076 = vst.msk [vmem:[%s9629_s30 + $0xb8] sm:$0xff] %vm7053_vm2, %v7874_v46  ;;  %5602 = vmatprep.mubr.bf16.mxu1 %v9389_v42 }
 0x4af   : > { %7839 = vmatmul.mubr.msk.bf16.gmra.mrb[132].mxu0 %vm4207_vm1, %v9392_v53 }
 0x4b0   : > { %v5334_v47 = vpop.f32.mrb[24].mxu1  ;;  %6971 = vmatprep.mubr.bf16.mxu0 %v9510_v1 }
 0x4b1   : > { %v7875_v49 = vadd.f32 %v6693_v48, %v5334_v47  ;;  %v5336_v50 = vpop.f32.mrb[25].mxu1 }
 0x4b2   : > { %v7876_v54 = vadd.f32 %v6695_v51, %v5336_v50  ;;  %v5338_v55 = vpop.f32.mrb[26].mxu1  ;;  %v6703_v63 = vpop.f32.mrb[28].mxu0  ;;  %v9408_v50 = vld [vmem:[%s9619_s28 + $0xce0] ss:$44 sps:$4 sm:$0xff]  }
 0x4b3   : > { %7077 = vst [vmem:[%s9629_s30 + $0xc0] sm:$0xff] %v7875_v49  ;;  %v7877_v58 = vadd.f32 %v6697_v56, %v5338_v55  ;;  %v5340_v59 = vpop.f32.mrb[27].mxu1  ;;  %v6705_v3 = vpop.f32.mrb[29].mxu0  ;;  %v9407_v49 = vld [vmem:[%s9619_s28 + $0xcc8] ss:$44 sps:$4 sm:$0xff]  }
 0x4b4   : > { %7078 = vst.msk [vmem:[%s9629_s30 + $0xc8] sm:$0xff] %vm7053_vm2, %v7876_v54  ;;  %v7878_v61 = vadd.f32 %v6699_v60, %v5340_v59  ;;  %v6707_v8 = vpop.f32.mrb[30].mxu0  ;;  %v9409_v54 = vld [vmem:[%s9619_s28 + $0xd24] ss:$44 sps:$4 sm:$0xff]  }
 0x4b5   : > { %7079 = vst [vmem:[%s9629_s30 + $0xd0] sm:$0xff] %v7877_v58  ;;  %5603 = vmatmul.mubr.bf16.gmra.mrb[132].mxu1 %v9391_v52  ;;  %v6709_v12 = vpop.f32.mrb[31].mxu0 }
 0x4b6   : > { %7080 = vst.msk [vmem:[%s9629_s30 + $0xd8] sm:$0xff] %vm7053_vm2, %v7878_v61  ;;  %5612 = vmatprep.mubr.bf16.mxu1 %v9393_v57 }
 0x4b7   : > { %7840 = vmatmul.mubr.msk.bf16.gmra.mrb[136].mxu0 %vm4207_vm1, %v9396_v5 }
 0x4b8   : > { %v5344_v62 = vpop.f32.mrb[28].mxu1  ;;  %6981 = vmatprep.mubr.bf16.mxu0 %v9510_v1 }
 0x4b9   : > { %v7879_v0 = vadd.f32 %v6703_v63, %v5344_v62  ;;  %v5346_v2 = vpop.f32.mrb[29].mxu1 }
 0x4ba   : > { %v7880_v6 = vadd.f32 %v6705_v3, %v5346_v2  ;;  %v5348_v7 = vpop.f32.mrb[30].mxu1  ;;  %v6713_v15 = vpop.f32.mrb[32].mxu0  ;;  %v9412_v2 = vld [vmem:[%s9619_s28 + $0xd38] ss:$44 sps:$4 sm:$0xff]  }
 0x4bb   : > { %7081 = vst [vmem:[%s9629_s30 + $0xe0] sm:$0xff] %v7879_v0  ;;  %v7881_v10 = vadd.f32 %v6707_v8, %v5348_v7  ;;  %v5350_v11 = vpop.f32.mrb[31].mxu1  ;;  %v6715_v18 = vpop.f32.mrb[33].mxu0  ;;  %v9411_v0 = vld [vmem:[%s9619_s28 + $0xd20] ss:$44 sps:$4 sm:$0xff]  }
 0x4bc   : > { %7082 = vst.msk [vmem:[%s9629_s30 + $0xe8] sm:$0xff] %vm7053_vm2, %v7880_v6  ;;  %v7882_v13 = vadd.f32 %v6709_v12, %v5350_v11  ;;  %v6717_v23 = vpop.f32.mrb[34].mxu0  ;;  %v9413_v6 = vld [vmem:[%s9619_s28 + $0xd7c] ss:$44 sps:$4 sm:$0xff]  }
 0x4bd   : > { %7083 = vst [vmem:[%s9629_s30 + $0xf0] sm:$0xff] %v7881_v10  ;;  %5613 = vmatmul.mubr.bf16.gmra.mrb[136].mxu1 %v9395_v4  ;;  %v6719_v27 = vpop.f32.mrb[35].mxu0 }
 0x4be   : > { %7084 = vst.msk [vmem:[%s9629_s30 + $0xf8] sm:$0xff] %vm7053_vm2, %v7882_v13  ;;  %5622 = vmatprep.mubr.bf16.mxu1 %v9397_v9 }
 0x4bf   : > { %7841 = vmatmul.mubr.msk.bf16.gmra.mrb[140].mxu0 %vm4207_vm1, %v9400_v20 }
 0x4c0   : > { %v5354_v14 = vpop.f32.mrb[32].mxu1  ;;  %6991 = vmatprep.mubr.bf16.mxu0 %v9510_v1 }
 0x4c1   : > { %v7883_v16 = vadd.f32 %v6713_v15, %v5354_v14  ;;  %v5356_v17 = vpop.f32.mrb[33].mxu1 }
 0x4c2   : > { %v7884_v21 = vadd.f32 %v6715_v18, %v5356_v17  ;;  %v5358_v22 = vpop.f32.mrb[34].mxu1  ;;  %v6723_v30 = vpop.f32.mrb[36].mxu0  ;;  %v9416_v17 = vld [vmem:[%s9619_s28 + $0xd90] ss:$44 sps:$4 sm:$0xff]  }
 0x4c3   : > { %7085 = vst [vmem:[%s9629_s30 + $0x100] sm:$0xff] %v7883_v16  ;;  %v7885_v25 = vadd.f32 %v6717_v23, %v5358_v22  ;;  %v5360_v26 = vpop.f32.mrb[35].mxu1  ;;  %v6725_v33 = vpop.f32.mrb[37].mxu0  ;;  %v9415_v16 = vld [vmem:[%s9619_s28 + $0xd78] ss:$44 sps:$4 sm:$0xff]  }
 0x4c4   : > { %7086 = vst.msk [vmem:[%s9629_s30 + $0x108] sm:$0xff] %vm7053_vm2, %v7884_v21  ;;  %v7886_v28 = vadd.f32 %v6719_v27, %v5360_v26  ;;  %v6727_v38 = vpop.f32.mrb[38].mxu0  ;;  %v9417_v21 = vld [vmem:[%s9619_s28 + $0xdd4] ss:$44 sps:$4 sm:$0xff]  }
 0x4c5   : > { %7087 = vst [vmem:[%s9629_s30 + $0x110] sm:$0xff] %v7885_v25  ;;  %5623 = vmatmul.mubr.bf16.gmra.mrb[140].mxu1 %v9399_v19  ;;  %v6729_v42 = vpop.f32.mrb[39].mxu0 }
 0x4c6   : > { %7088 = vst.msk [vmem:[%s9629_s30 + $0x118] sm:$0xff] %vm7053_vm2, %v7886_v28  ;;  %5632 = vmatprep.mubr.bf16.mxu1 %v9401_v24 }
 0x4c7   : > { %7842 = vmatmul.mubr.msk.bf16.gmra.mrb[144].mxu0 %vm4207_vm1, %v9404_v35 }
 0x4c8   : > { %v5364_v29 = vpop.f32.mrb[36].mxu1  ;;  %7001 = vmatprep.mubr.bf16.mxu0 %v9510_v1 }
 0x4c9   : > { %v7887_v31 = vadd.f32 %v6723_v30, %v5364_v29  ;;  %v5366_v32 = vpop.f32.mrb[37].mxu1 }
 0x4ca   : > { %v7888_v36 = vadd.f32 %v6725_v33, %v5366_v32  ;;  %v5368_v37 = vpop.f32.mrb[38].mxu1  ;;  %v6733_v45 = vpop.f32.mrb[40].mxu0  ;;  %v9420_v32 = vld [vmem:[%s9619_s28 + $0xde8] ss:$44 sps:$4 sm:$0xff]  }
 0x4cb   : > { %7089 = vst [vmem:[%s9629_s30 + $0x120] sm:$0xff] %v7887_v31  ;;  %v7889_v40 = vadd.f32 %v6727_v38, %v5368_v37  ;;  %v5370_v41 = vpop.f32.mrb[39].mxu1  ;;  %v6735_v48 = vpop.f32.mrb[41].mxu0  ;;  %v9419_v31 = vld [vmem:[%s9619_s28 + $0xdd0] ss:$44 sps:$4 sm:$0xff]  }
 0x4cc   : > { %7090 = vst.msk [vmem:[%s9629_s30 + $0x128] sm:$0xff] %vm7053_vm2, %v7888_v36  ;;  %v7890_v43 = vadd.f32 %v6729_v42, %v5370_v41  ;;  %v6737_v53 = vpop.f32.mrb[42].mxu0  ;;  %v9421_v36 = vld [vmem:[%s9619_s28 + $0xe2c] ss:$44 sps:$4 sm:$0xff]  }
 0x4cd   : > { %7091 = vst [vmem:[%s9629_s30 + $0x130] sm:$0xff] %v7889_v40  ;;  %5633 = vmatmul.mubr.bf16.gmra.mrb[144].mxu1 %v9403_v34  ;;  %v6739_v57 = vpop.f32.mrb[43].mxu0 }
 0x4ce   : > { %7092 = vst.msk [vmem:[%s9629_s30 + $0x138] sm:$0xff] %vm7053_vm2, %v7890_v43  ;;  %5642 = vmatprep.mubr.bf16.mxu1 %v9405_v39 }
 0x4cf   : > { %7843 = vmatmul.mubr.msk.bf16.gmra.mrb[148].mxu0 %vm4207_vm1, %v9408_v50 }
 0x4d0   : > { %v5374_v44 = vpop.f32.mrb[40].mxu1  ;;  %7011 = vmatprep.mubr.bf16.mxu0 %v9510_v1 }
 0x4d1   : > { %v7891_v46 = vadd.f32 %v6733_v45, %v5374_v44  ;;  %v5376_v47 = vpop.f32.mrb[41].mxu1 }
 0x4d2   : > { %v7892_v51 = vadd.f32 %v6735_v48, %v5376_v47  ;;  %v5378_v52 = vpop.f32.mrb[42].mxu1  ;;  %v6743_v60 = vpop.f32.mrb[44].mxu0  ;;  %v9424_v47 = vld [vmem:[%s9619_s28 + $0xe40] ss:$44 sps:$4 sm:$0xff]  }
 0x4d3   : > { %7093 = vst [vmem:[%s9629_s30 + $0x140] sm:$0xff] %v7891_v46  ;;  %v7893_v55 = vadd.f32 %v6737_v53, %v5378_v52  ;;  %v5380_v56 = vpop.f32.mrb[43].mxu1  ;;  %v6745_v63 = vpop.f32.mrb[45].mxu0  ;;  %v9423_v46 = vld [vmem:[%s9619_s28 + $0xe28] ss:$44 sps:$4 sm:$0xff]  }
 0x4d4   : > { %7094 = vst.msk [vmem:[%s9629_s30 + $0x148] sm:$0xff] %vm7053_vm2, %v7892_v51  ;;  %v7894_v58 = vadd.f32 %v6739_v57, %v5380_v56  ;;  %v6747_v5 = vpop.f32.mrb[46].mxu0 }
 0x4d5   : > { %7095 = vst [vmem:[%s9629_s30 + $0x150] sm:$0xff] %v7893_v55  ;;  %5643 = vmatmul.mubr.bf16.gmra.mrb[148].mxu1 %v9407_v49  ;;  %v6749_v9 = vpop.f32.mrb[47].mxu0 }
 0x4d6   : > { %7096 = vst.msk [vmem:[%s9629_s30 + $0x158] sm:$0xff] %vm7053_vm2, %v7894_v58  ;;  %5652 = vmatprep.mubr.bf16.mxu1 %v9409_v54 }
 0x4d7   : > { %7844 = vmatmul.mubr.msk.bf16.gmra.mrb[152].mxu0 %vm4207_vm1, %v9412_v2 }
 0x4d8   : > { %v5384_v59 = vpop.f32.mrb[44].mxu1  ;;  %7021 = vmatprep.mubr.bf16.mxu0 %v9510_v1 }
 0x4d9   : > { %v7895_v61 = vadd.f32 %v6743_v60, %v5384_v59  ;;  %v5386_v62 = vpop.f32.mrb[45].mxu1 }
 0x4da   : > { %v7896_v3 = vadd.f32 %v6745_v63, %v5386_v62  ;;  %v5388_v4 = vpop.f32.mrb[46].mxu1  ;;  %v6753_v12 = vpop.f32.mrb[48].mxu0 }
 0x4db   : > { %7097 = vst [vmem:[%s9629_s30 + $0x160] sm:$0xff] %v7895_v61  ;;  %v7897_v7 = vadd.f32 %v6747_v5, %v5388_v4  ;;  %v5390_v8 = vpop.f32.mrb[47].mxu1  ;;  %v6755_v15 = vpop.f32.mrb[49].mxu0 }
 0x4dc   : > { %7098 = vst.msk [vmem:[%s9629_s30 + $0x168] sm:$0xff] %vm7053_vm2, %v7896_v3  ;;  %v7898_v10 = vadd.f32 %v6749_v9, %v5390_v8  ;;  %v6757_v20 = vpop.f32.mrb[50].mxu0 }
 0x4dd   : > { %7099 = vst [vmem:[%s9629_s30 + $0x170] sm:$0xff] %v7897_v7  ;;  %5653 = vmatmul.mubr.bf16.gmra.mrb[152].mxu1 %v9411_v0  ;;  %v6759_v24 = vpop.f32.mrb[51].mxu0 }
 0x4de   : > { %7100 = vst.msk [vmem:[%s9629_s30 + $0x178] sm:$0xff] %vm7053_vm2, %v7898_v10  ;;  %5662 = vmatprep.mubr.bf16.mxu1 %v9413_v6 }
 0x4df   : > { %7845 = vmatmul.mubr.msk.bf16.gmra.mrb[156].mxu0 %vm4207_vm1, %v9416_v17 }
 0x4e0   : > { %v5394_v11 = vpop.f32.mrb[48].mxu1  ;;  %7031 = vmatprep.mubr.bf16.mxu0 %v9510_v1 }
 0x4e1   : > { %v7899_v13 = vadd.f32 %v6753_v12, %v5394_v11  ;;  %v5396_v14 = vpop.f32.mrb[49].mxu1 }
 0x4e2   : > { %v7900_v18 = vadd.f32 %v6755_v15, %v5396_v14  ;;  %v5398_v19 = vpop.f32.mrb[50].mxu1  ;;  %v6763_v27 = vpop.f32.mrb[52].mxu0 }
 0x4e3   : > { %7101 = vst [vmem:[%s9629_s30 + $0x180] sm:$0xff] %v7899_v13  ;;  %v7901_v22 = vadd.f32 %v6757_v20, %v5398_v19  ;;  %v5400_v23 = vpop.f32.mrb[51].mxu1  ;;  %v6765_v30 = vpop.f32.mrb[53].mxu0 }
 0x4e4   : > { %7102 = vst.msk [vmem:[%s9629_s30 + $0x188] sm:$0xff] %vm7053_vm2, %v7900_v18  ;;  %v7902_v25 = vadd.f32 %v6759_v24, %v5400_v23  ;;  %v6767_v35 = vpop.f32.mrb[54].mxu0 }
 0x4e5   : > { %7103 = vst [vmem:[%s9629_s30 + $0x190] sm:$0xff] %v7901_v22  ;;  %5663 = vmatmul.mubr.bf16.gmra.mrb[156].mxu1 %v9415_v16  ;;  %v6769_v39 = vpop.f32.mrb[55].mxu0 }
 0x4e6   : > { %7104 = vst.msk [vmem:[%s9629_s30 + $0x198] sm:$0xff] %vm7053_vm2, %v7902_v25  ;;  %5672 = vmatprep.mubr.bf16.mxu1 %v9417_v21 }
 0x4e7   : > { %7846 = vmatmul.mubr.msk.bf16.gmra.mrb[160].mxu0 %vm4207_vm1, %v9420_v32 }
 0x4e8   : > { %v5404_v26 = vpop.f32.mrb[52].mxu1  ;;  %7041 = vmatprep.mubr.bf16.mxu0 %v9510_v1 }
 0x4e9   : > { %v7903_v28 = vadd.f32 %v6763_v27, %v5404_v26  ;;  %v5406_v29 = vpop.f32.mrb[53].mxu1 }
 0x4ea   : > { %v7904_v33 = vadd.f32 %v6765_v30, %v5406_v29  ;;  %v5408_v34 = vpop.f32.mrb[54].mxu1  ;;  %v6773_v42 = vpop.f32.mrb[56].mxu0 }
 0x4eb   : > { %7105 = vst [vmem:[%s9629_s30 + $0x1a0] sm:$0xff] %v7903_v28  ;;  %v7905_v37 = vadd.f32 %v6767_v35, %v5408_v34  ;;  %v5410_v38 = vpop.f32.mrb[55].mxu1  ;;  %v6775_v45 = vpop.f32.mrb[57].mxu0 }
 0x4ec   : > { %7106 = vst.msk [vmem:[%s9629_s30 + $0x1a8] sm:$0xff] %vm7053_vm2, %v7904_v33  ;;  %v7906_v40 = vadd.f32 %v6769_v39, %v5410_v38  ;;  %v6777_v50 = vpop.f32.mrb[58].mxu0 }
 0x4ed   : > { %7107 = vst [vmem:[%s9629_s30 + $0x1b0] sm:$0xff] %v7905_v37  ;;  %5673 = vmatmul.mubr.bf16.gmra.mrb[160].mxu1 %v9419_v31  ;;  %v6779_v53 = vpop.f32.mrb[59].mxu0 }
 0x4ee   : > { %7108 = vst.msk [vmem:[%s9629_s30 + $0x1b8] sm:$0xff] %vm7053_vm2, %v7906_v40  ;;  %5682 = vmatprep.mubr.bf16.mxu1 %v9421_v36 }
 0x4ef   : > { %7847 = vmatmul.mubr.msk.bf16.gmra.mrb[164].mxu0 %vm4207_vm1, %v9424_v47 }
 0x4f0   : > { %v5414_v41 = vpop.f32.mrb[56].mxu1 }
 0x4f1   : > { %v7907_v43 = vadd.f32 %v6773_v42, %v5414_v41  ;;  %v5416_v44 = vpop.f32.mrb[57].mxu1 }
 0x4f2   : > { %v7908_v48 = vadd.f32 %v6775_v45, %v5416_v44  ;;  %v5418_v49 = vpop.f32.mrb[58].mxu1  ;;  %v6783_v55 = vpop.f32.mrb[60].mxu0 }
 0x4f3   : > { %7109 = vst [vmem:[%s9629_s30 + $0x1c0] sm:$0xff] %v7907_v43  ;;  %v7909_v51 = vadd.f32 %v6777_v50, %v5418_v49  ;;  %v5420_v52 = vpop.f32.mrb[59].mxu1  ;;  %v6785_v58 = vpop.f32.mrb[61].mxu0 }
 0x4f4   : > { %7110 = vst.msk [vmem:[%s9629_s30 + $0x1c8] sm:$0xff] %vm7053_vm2, %v7908_v48  ;;  %v7910_v1 = vadd.f32 %v6779_v53, %v5420_v52  ;;  %v6787_v61 = vpop.f32.mrb[62].mxu0 }
 0x4f5   : > { %7111 = vst [vmem:[%s9629_s30 + $0x1d0] sm:$0xff] %v7909_v51  ;;  %5683 = vmatmul.mubr.bf16.gmra.mrb[164].mxu1 %v9423_v46  ;;  %v6789_v0 = vpop.f32.mrb[63].mxu0 }
 0x4f6   : > { %7112 = vst.msk [vmem:[%s9629_s30 + $0x1d8] sm:$0xff] %vm7053_vm2, %v7910_v1 }
 0x4f8   : > { %v5424_v54 = vpop.f32.mrb[60].mxu1 }
 0x4f9   : > { %v7911_v56 = vadd.f32 %v6783_v55, %v5424_v54  ;;  %v5426_v57 = vpop.f32.mrb[61].mxu1 }
 0x4fa   : > { %v7912_v59 = vadd.f32 %v6785_v58, %v5426_v57  ;;  %v5428_v60 = vpop.f32.mrb[62].mxu1  ;;  %v6793_v4 = vpop.f32.mrb[64].mxu0 }
 0x4fb   : > { %7113 = vst [vmem:[%s9629_s30 + $0x1e0] sm:$0xff] %v7911_v56  ;;  %v7913_v62 = vadd.f32 %v6787_v61, %v5428_v60  ;;  %v5430_v63 = vpop.f32.mrb[63].mxu1  ;;  %v6795_v7 = vpop.f32.mrb[65].mxu0 }
 0x4fc   : > { %7114 = vst.msk [vmem:[%s9629_s30 + $0x1e8] sm:$0xff] %vm7053_vm2, %v7912_v59  ;;  %v7914_v2 = vadd.f32 %v6789_v0, %v5430_v63  ;;  %v6797_v10 = vpop.f32.mrb[66].mxu0 }
 0x4fd   : > { %7115 = vst [vmem:[%s9629_s30 + $0x1f0] sm:$0xff] %v7913_v62  ;;  %v6799_v13 = vpop.f32.mrb[67].mxu0 }
 0x4fe   : > { %7116 = vst.msk [vmem:[%s9629_s30 + $0x1f8] sm:$0xff] %vm7053_vm2, %v7914_v2 }
 0x500   : > { %v5434_v3 = vpop.f32.mrb[64].mxu1 }
 0x501   : > { %v7915_v5 = vadd.f32 %v6793_v4, %v5434_v3  ;;  %v5436_v6 = vpop.f32.mrb[65].mxu1 }
 0x502   : > { %v7916_v8 = vadd.f32 %v6795_v7, %v5436_v6  ;;  %v5438_v9 = vpop.f32.mrb[66].mxu1  ;;  %v6803_v16 = vpop.f32.mrb[68].mxu0 }
 0x503   : > { %7117 = vst [vmem:[%s9629_s30 + $0x200] sm:$0xff] %v7915_v5  ;;  %v7917_v11 = vadd.f32 %v6797_v10, %v5438_v9  ;;  %v5440_v12 = vpop.f32.mrb[67].mxu1  ;;  %v6805_v19 = vpop.f32.mrb[69].mxu0 }
 0x504   : > { %7118 = vst.msk [vmem:[%s9629_s30 + $0x208] sm:$0xff] %vm7053_vm2, %v7916_v8  ;;  %v7918_v14 = vadd.f32 %v6799_v13, %v5440_v12  ;;  %v6807_v22 = vpop.f32.mrb[70].mxu0 }
 0x505   : > { %7119 = vst [vmem:[%s9629_s30 + $0x210] sm:$0xff] %v7917_v11  ;;  %v6809_v25 = vpop.f32.mrb[71].mxu0 }
 0x506   : > { %7120 = vst.msk [vmem:[%s9629_s30 + $0x218] sm:$0xff] %vm7053_vm2, %v7918_v14 }
 0x508   : > { %v5444_v15 = vpop.f32.mrb[68].mxu1 }
 0x509   : > { %v7919_v17 = vadd.f32 %v6803_v16, %v5444_v15  ;;  %v5446_v18 = vpop.f32.mrb[69].mxu1 }
 0x50a   : > { %v7920_v20 = vadd.f32 %v6805_v19, %v5446_v18  ;;  %v5448_v21 = vpop.f32.mrb[70].mxu1  ;;  %v6813_v28 = vpop.f32.mrb[72].mxu0 }
 0x50b   : > { %7121 = vst [vmem:[%s9629_s30 + $0x220] sm:$0xff] %v7919_v17  ;;  %v7921_v23 = vadd.f32 %v6807_v22, %v5448_v21  ;;  %v5450_v24 = vpop.f32.mrb[71].mxu1  ;;  %v6815_v31 = vpop.f32.mrb[73].mxu0 }
 0x50c   : > { %7122 = vst.msk [vmem:[%s9629_s30 + $0x228] sm:$0xff] %vm7053_vm2, %v7920_v20  ;;  %v7922_v26 = vadd.f32 %v6809_v25, %v5450_v24  ;;  %v6817_v34 = vpop.f32.mrb[74].mxu0 }
 0x50d   : > { %7123 = vst [vmem:[%s9629_s30 + $0x230] sm:$0xff] %v7921_v23  ;;  %v6819_v37 = vpop.f32.mrb[75].mxu0 }
 0x50e   : > { %7124 = vst.msk [vmem:[%s9629_s30 + $0x238] sm:$0xff] %vm7053_vm2, %v7922_v26 }
 0x510   : > { %v5454_v27 = vpop.f32.mrb[72].mxu1 }
 0x511   : > { %v7923_v29 = vadd.f32 %v6813_v28, %v5454_v27  ;;  %v5456_v30 = vpop.f32.mrb[73].mxu1 }
 0x512   : > { %v7924_v32 = vadd.f32 %v6815_v31, %v5456_v30  ;;  %v5458_v33 = vpop.f32.mrb[74].mxu1  ;;  %v6823_v40 = vpop.f32.mrb[76].mxu0 }
 0x513   : > { %7125 = vst [vmem:[%s9629_s30 + $0x240] sm:$0xff] %v7923_v29  ;;  %v7925_v35 = vadd.f32 %v6817_v34, %v5458_v33  ;;  %v5460_v36 = vpop.f32.mrb[75].mxu1  ;;  %v6825_v43 = vpop.f32.mrb[77].mxu0 }
 0x514   : > { %7126 = vst.msk [vmem:[%s9629_s30 + $0x248] sm:$0xff] %vm7053_vm2, %v7924_v32  ;;  %v7926_v38 = vadd.f32 %v6819_v37, %v5460_v36  ;;  %v6827_v46 = vpop.f32.mrb[78].mxu0 }
 0x515   : > { %7127 = vst [vmem:[%s9629_s30 + $0x250] sm:$0xff] %v7925_v35  ;;  %v6829_v49 = vpop.f32.mrb[79].mxu0 }
 0x516   : > { %7128 = vst.msk [vmem:[%s9629_s30 + $0x258] sm:$0xff] %vm7053_vm2, %v7926_v38 }
 0x518   : > { %v5464_v39 = vpop.f32.mrb[76].mxu1 }
 0x519   : > { %v7927_v41 = vadd.f32 %v6823_v40, %v5464_v39  ;;  %v5466_v42 = vpop.f32.mrb[77].mxu1 }
 0x51a   : > { %v7928_v44 = vadd.f32 %v6825_v43, %v5466_v42  ;;  %v5468_v45 = vpop.f32.mrb[78].mxu1  ;;  %v6833_v52 = vpop.f32.mrb[80].mxu0 }
 0x51b   : > { %7129 = vst [vmem:[%s9629_s30 + $0x260] sm:$0xff] %v7927_v41  ;;  %v7929_v47 = vadd.f32 %v6827_v46, %v5468_v45  ;;  %v5470_v48 = vpop.f32.mrb[79].mxu1  ;;  %v6835_v54 = vpop.f32.mrb[81].mxu0 }
 0x51c   : > { %7130 = vst.msk [vmem:[%s9629_s30 + $0x268] sm:$0xff] %vm7053_vm2, %v7928_v44  ;;  %v7930_v50 = vadd.f32 %v6829_v49, %v5470_v48  ;;  %v6837_v57 = vpop.f32.mrb[82].mxu0 }
 0x51d   : > { %7131 = vst [vmem:[%s9629_s30 + $0x270] sm:$0xff] %v7929_v47  ;;  %v6839_v60 = vpop.f32.mrb[83].mxu0 }
 0x51e   : > { %7132 = vst.msk [vmem:[%s9629_s30 + $0x278] sm:$0xff] %vm7053_vm2, %v7930_v50 }
 0x520   : > { %v5474_v51 = vpop.f32.mrb[80].mxu1 }
 0x521   : > { %v7931_v53 = vadd.f32 %v6833_v52, %v5474_v51  ;;  %v5476_v1 = vpop.f32.mrb[81].mxu1 }
 0x522   : > { %v7932_v55 = vadd.f32 %v6835_v54, %v5476_v1  ;;  %v5478_v56 = vpop.f32.mrb[82].mxu1  ;;  %v6843_v63 = vpop.f32.mrb[84].mxu0 }
 0x523   : > { %7133 = vst [vmem:[%s9629_s30 + $0x280] sm:$0xff] %v7931_v53  ;;  %v7933_v58 = vadd.f32 %v6837_v57, %v5478_v56  ;;  %v5480_v59 = vpop.f32.mrb[83].mxu1  ;;  %v6845_v3 = vpop.f32.mrb[85].mxu0 }
 0x524   : > { %7134 = vst.msk [vmem:[%s9629_s30 + $0x288] sm:$0xff] %vm7053_vm2, %v7932_v55  ;;  %v7934_v61 = vadd.f32 %v6839_v60, %v5480_v59  ;;  %v6847_v6 = vpop.f32.mrb[86].mxu0 }
 0x525   : > { %7135 = vst [vmem:[%s9629_s30 + $0x290] sm:$0xff] %v7933_v58  ;;  %v6849_v9 = vpop.f32.mrb[87].mxu0 }
 0x526   : > { %7136 = vst.msk [vmem:[%s9629_s30 + $0x298] sm:$0xff] %vm7053_vm2, %v7934_v61 }
 0x528   : > { %v5484_v62 = vpop.f32.mrb[84].mxu1 }
 0x529   : > { %v7935_v0 = vadd.f32 %v6843_v63, %v5484_v62  ;;  %v5486_v2 = vpop.f32.mrb[85].mxu1 }
 0x52a   : > { %v7936_v4 = vadd.f32 %v6845_v3, %v5486_v2  ;;  %v5488_v5 = vpop.f32.mrb[86].mxu1  ;;  %v6853_v12 = vpop.f32.mrb[88].mxu0 }
 0x52b   : > { %7137 = vst [vmem:[%s9629_s30 + $0x2a0] sm:$0xff] %v7935_v0  ;;  %v7937_v7 = vadd.f32 %v6847_v6, %v5488_v5  ;;  %v5490_v8 = vpop.f32.mrb[87].mxu1  ;;  %v6855_v15 = vpop.f32.mrb[89].mxu0 }
 0x52c   : > { %7138 = vst.msk [vmem:[%s9629_s30 + $0x2a8] sm:$0xff] %vm7053_vm2, %v7936_v4  ;;  %v7938_v10 = vadd.f32 %v6849_v9, %v5490_v8  ;;  %v6857_v18 = vpop.f32.mrb[90].mxu0 }
 0x52d   : > { %7139 = vst [vmem:[%s9629_s30 + $0x2b0] sm:$0xff] %v7937_v7  ;;  %v6859_v21 = vpop.f32.mrb[91].mxu0 }
 0x52e   : > { %7140 = vst.msk [vmem:[%s9629_s30 + $0x2b8] sm:$0xff] %vm7053_vm2, %v7938_v10 }
 0x530   : > { %v5494_v11 = vpop.f32.mrb[88].mxu1 }
 0x531   : > { %v7939_v13 = vadd.f32 %v6853_v12, %v5494_v11  ;;  %v5496_v14 = vpop.f32.mrb[89].mxu1 }
 0x532   : > { %v7940_v16 = vadd.f32 %v6855_v15, %v5496_v14  ;;  %v5498_v17 = vpop.f32.mrb[90].mxu1  ;;  %v6863_v24 = vpop.f32.mrb[92].mxu0 }
 0x533   : > { %7141 = vst [vmem:[%s9629_s30 + $0x2c0] sm:$0xff] %v7939_v13  ;;  %v7941_v19 = vadd.f32 %v6857_v18, %v5498_v17  ;;  %v5500_v20 = vpop.f32.mrb[91].mxu1  ;;  %v6865_v27 = vpop.f32.mrb[93].mxu0 }
 0x534   : > { %7142 = vst.msk [vmem:[%s9629_s30 + $0x2c8] sm:$0xff] %vm7053_vm2, %v7940_v16  ;;  %v7942_v22 = vadd.f32 %v6859_v21, %v5500_v20  ;;  %v6867_v30 = vpop.f32.mrb[94].mxu0 }
 0x535   : > { %7143 = vst [vmem:[%s9629_s30 + $0x2d0] sm:$0xff] %v7941_v19  ;;  %v6869_v33 = vpop.f32.mrb[95].mxu0 }
 0x536   : > { %7144 = vst.msk [vmem:[%s9629_s30 + $0x2d8] sm:$0xff] %vm7053_vm2, %v7942_v22 }
 0x538   : > { %v5504_v23 = vpop.f32.mrb[92].mxu1 }
 0x539   : > { %v7943_v25 = vadd.f32 %v6863_v24, %v5504_v23  ;;  %v5506_v26 = vpop.f32.mrb[93].mxu1 }
 0x53a   : > { %v7944_v28 = vadd.f32 %v6865_v27, %v5506_v26  ;;  %v5508_v29 = vpop.f32.mrb[94].mxu1  ;;  %v6873_v36 = vpop.f32.mrb[96].mxu0 }
 0x53b   : > { %7145 = vst [vmem:[%s9629_s30 + $0x2e0] sm:$0xff] %v7943_v25  ;;  %v7945_v31 = vadd.f32 %v6867_v30, %v5508_v29  ;;  %v5510_v32 = vpop.f32.mrb[95].mxu1  ;;  %v6875_v39 = vpop.f32.mrb[97].mxu0 }
 0x53c   : > { %7146 = vst.msk [vmem:[%s9629_s30 + $0x2e8] sm:$0xff] %vm7053_vm2, %v7944_v28  ;;  %v7946_v34 = vadd.f32 %v6869_v33, %v5510_v32  ;;  %v6877_v42 = vpop.f32.mrb[98].mxu0 }
 0x53d   : > { %7147 = vst [vmem:[%s9629_s30 + $0x2f0] sm:$0xff] %v7945_v31  ;;  %v6879_v45 = vpop.f32.mrb[99].mxu0 }
 0x53e   : > { %7148 = vst.msk [vmem:[%s9629_s30 + $0x2f8] sm:$0xff] %vm7053_vm2, %v7946_v34 }
 0x540   : > { %v5514_v35 = vpop.f32.mrb[96].mxu1 }
 0x541   : > { %v7947_v37 = vadd.f32 %v6873_v36, %v5514_v35  ;;  %v5516_v38 = vpop.f32.mrb[97].mxu1 }
 0x542   : > { %v7948_v40 = vadd.f32 %v6875_v39, %v5516_v38  ;;  %v5518_v41 = vpop.f32.mrb[98].mxu1  ;;  %v6883_v48 = vpop.f32.mrb[100].mxu0 }
 0x543   : > { %7149 = vst [vmem:[%s9629_s30 + $0x300] sm:$0xff] %v7947_v37  ;;  %v7949_v43 = vadd.f32 %v6877_v42, %v5518_v41  ;;  %v5520_v44 = vpop.f32.mrb[99].mxu1  ;;  %v6885_v51 = vpop.f32.mrb[101].mxu0 }
 0x544   : > { %7150 = vst.msk [vmem:[%s9629_s30 + $0x308] sm:$0xff] %vm7053_vm2, %v7948_v40  ;;  %v7950_v46 = vadd.f32 %v6879_v45, %v5520_v44  ;;  %v6887_v1 = vpop.f32.mrb[102].mxu0 }
 0x545   : > { %7151 = vst [vmem:[%s9629_s30 + $0x310] sm:$0xff] %v7949_v43  ;;  %v6889_v56 = vpop.f32.mrb[103].mxu0 }
 0x546   : > { %7152 = vst.msk [vmem:[%s9629_s30 + $0x318] sm:$0xff] %vm7053_vm2, %v7950_v46 }
 0x548   : > { %v5524_v47 = vpop.f32.mrb[100].mxu1 }
 0x549   : > { %v7951_v49 = vadd.f32 %v6883_v48, %v5524_v47  ;;  %v5526_v50 = vpop.f32.mrb[101].mxu1 }
 0x54a   : > { %v7952_v52 = vadd.f32 %v6885_v51, %v5526_v50  ;;  %v5528_v53 = vpop.f32.mrb[102].mxu1  ;;  %v6893_v59 = vpop.f32.mrb[104].mxu0 }
 0x54b   : > { %7153 = vst [vmem:[%s9629_s30 + $0x320] sm:$0xff] %v7951_v49  ;;  %v7953_v54 = vadd.f32 %v6887_v1, %v5528_v53  ;;  %v5530_v55 = vpop.f32.mrb[103].mxu1  ;;  %v6895_v62 = vpop.f32.mrb[105].mxu0 }
 0x54c   : > { %7154 = vst.msk [vmem:[%s9629_s30 + $0x328] sm:$0xff] %vm7053_vm2, %v7952_v52  ;;  %v7954_v57 = vadd.f32 %v6889_v56, %v5530_v55  ;;  %v6897_v2 = vpop.f32.mrb[106].mxu0 }
 0x54d   : > { %7155 = vst [vmem:[%s9629_s30 + $0x330] sm:$0xff] %v7953_v54  ;;  %v6899_v5 = vpop.f32.mrb[107].mxu0 }
 0x54e   : > { %7156 = vst.msk [vmem:[%s9629_s30 + $0x338] sm:$0xff] %vm7053_vm2, %v7954_v57 }
 0x550   : > { %v5534_v58 = vpop.f32.mrb[104].mxu1 }
 0x551   : > { %v7955_v60 = vadd.f32 %v6893_v59, %v5534_v58  ;;  %v5536_v61 = vpop.f32.mrb[105].mxu1 }
 0x552   : > { %v7956_v63 = vadd.f32 %v6895_v62, %v5536_v61  ;;  %v5538_v0 = vpop.f32.mrb[106].mxu1  ;;  %v6903_v8 = vpop.f32.mrb[108].mxu0 }
 0x553   : > { %7157 = vst [vmem:[%s9629_s30 + $0x340] sm:$0xff] %v7955_v60  ;;  %v7957_v3 = vadd.f32 %v6897_v2, %v5538_v0  ;;  %v5540_v4 = vpop.f32.mrb[107].mxu1  ;;  %v6905_v11 = vpop.f32.mrb[109].mxu0 }
 0x554   : > { %7158 = vst.msk [vmem:[%s9629_s30 + $0x348] sm:$0xff] %vm7053_vm2, %v7956_v63  ;;  %v7958_v6 = vadd.f32 %v6899_v5, %v5540_v4  ;;  %v6907_v14 = vpop.f32.mrb[110].mxu0 }
 0x555   : > { %7159 = vst [vmem:[%s9629_s30 + $0x350] sm:$0xff] %v7957_v3  ;;  %v6909_v17 = vpop.f32.mrb[111].mxu0 }
 0x556   : > { %7160 = vst.msk [vmem:[%s9629_s30 + $0x358] sm:$0xff] %vm7053_vm2, %v7958_v6 }
 0x558   : > { %v5544_v7 = vpop.f32.mrb[108].mxu1 }
 0x559   : > { %v7959_v9 = vadd.f32 %v6903_v8, %v5544_v7  ;;  %v5546_v10 = vpop.f32.mrb[109].mxu1 }
 0x55a   : > { %v7960_v12 = vadd.f32 %v6905_v11, %v5546_v10  ;;  %v5548_v13 = vpop.f32.mrb[110].mxu1  ;;  %v6913_v20 = vpop.f32.mrb[112].mxu0 }
 0x55b   : > { %7161 = vst [vmem:[%s9629_s30 + $0x360] sm:$0xff] %v7959_v9  ;;  %v7961_v15 = vadd.f32 %v6907_v14, %v5548_v13  ;;  %v5550_v16 = vpop.f32.mrb[111].mxu1  ;;  %v6915_v23 = vpop.f32.mrb[113].mxu0 }
 0x55c   : > { %7162 = vst.msk [vmem:[%s9629_s30 + $0x368] sm:$0xff] %vm7053_vm2, %v7960_v12  ;;  %v7962_v18 = vadd.f32 %v6909_v17, %v5550_v16  ;;  %v6917_v26 = vpop.f32.mrb[114].mxu0 }
 0x55d   : > { %7163 = vst [vmem:[%s9629_s30 + $0x370] sm:$0xff] %v7961_v15  ;;  %v6919_v29 = vpop.f32.mrb[115].mxu0 }
 0x55e   : > { %7164 = vst.msk [vmem:[%s9629_s30 + $0x378] sm:$0xff] %vm7053_vm2, %v7962_v18 }
 0x560   : > { %v5554_v19 = vpop.f32.mrb[112].mxu1 }
 0x561   : > { %v7963_v21 = vadd.f32 %v6913_v20, %v5554_v19  ;;  %v5556_v22 = vpop.f32.mrb[113].mxu1 }
 0x562   : > { %v7964_v24 = vadd.f32 %v6915_v23, %v5556_v22  ;;  %v5558_v25 = vpop.f32.mrb[114].mxu1  ;;  %v6923_v32 = vpop.f32.mrb[116].mxu0 }
 0x563   : > { %7165 = vst [vmem:[%s9629_s30 + $0x380] sm:$0xff] %v7963_v21  ;;  %v7965_v27 = vadd.f32 %v6917_v26, %v5558_v25  ;;  %v5560_v28 = vpop.f32.mrb[115].mxu1  ;;  %v6925_v35 = vpop.f32.mrb[117].mxu0 }
 0x564   : > { %7166 = vst.msk [vmem:[%s9629_s30 + $0x388] sm:$0xff] %vm7053_vm2, %v7964_v24  ;;  %v7966_v30 = vadd.f32 %v6919_v29, %v5560_v28  ;;  %v6927_v38 = vpop.f32.mrb[118].mxu0 }
 0x565   : > { %7167 = vst [vmem:[%s9629_s30 + $0x390] sm:$0xff] %v7965_v27  ;;  %v6929_v41 = vpop.f32.mrb[119].mxu0 }
 0x566   : > { %7168 = vst.msk [vmem:[%s9629_s30 + $0x398] sm:$0xff] %vm7053_vm2, %v7966_v30 }
 0x568   : > { %v5564_v31 = vpop.f32.mrb[116].mxu1 }
 0x569   : > { %v7967_v33 = vadd.f32 %v6923_v32, %v5564_v31  ;;  %v5566_v34 = vpop.f32.mrb[117].mxu1 }
 0x56a   : > { %v7968_v36 = vadd.f32 %v6925_v35, %v5566_v34  ;;  %v5568_v37 = vpop.f32.mrb[118].mxu1  ;;  %v6933_v44 = vpop.f32.mrb[120].mxu0 }
 0x56b   : > { %7169 = vst [vmem:[%s9629_s30 + $0x3a0] sm:$0xff] %v7967_v33  ;;  %v7969_v39 = vadd.f32 %v6927_v38, %v5568_v37  ;;  %v5570_v40 = vpop.f32.mrb[119].mxu1  ;;  %v6935_v47 = vpop.f32.mrb[121].mxu0 }
 0x56c   : > { %7170 = vst.msk [vmem:[%s9629_s30 + $0x3a8] sm:$0xff] %vm7053_vm2, %v7968_v36  ;;  %v7970_v42 = vadd.f32 %v6929_v41, %v5570_v40  ;;  %v6937_v50 = vpop.f32.mrb[122].mxu0 }
 0x56d   : > { %7171 = vst [vmem:[%s9629_s30 + $0x3b0] sm:$0xff] %v7969_v39  ;;  %v6939_v53 = vpop.f32.mrb[123].mxu0 }
 0x56e   : > { %7172 = vst.msk [vmem:[%s9629_s30 + $0x3b8] sm:$0xff] %vm7053_vm2, %v7970_v42 }
 0x570   : > { %v5574_v43 = vpop.f32.mrb[120].mxu1 }
 0x571   : > { %v7971_v45 = vadd.f32 %v6933_v44, %v5574_v43  ;;  %v5576_v46 = vpop.f32.mrb[121].mxu1 }
 0x572   : > { %v7972_v48 = vadd.f32 %v6935_v47, %v5576_v46  ;;  %v5578_v49 = vpop.f32.mrb[122].mxu1  ;;  %v6943_v55 = vpop.f32.mrb[124].mxu0 }
 0x573   : > { %7173 = vst [vmem:[%s9629_s30 + $0x3c0] sm:$0xff] %v7971_v45  ;;  %v7973_v51 = vadd.f32 %v6937_v50, %v5578_v49  ;;  %v5580_v52 = vpop.f32.mrb[123].mxu1  ;;  %v6945_v58 = vpop.f32.mrb[125].mxu0 }
 0x574   : > { %7174 = vst.msk [vmem:[%s9629_s30 + $0x3c8] sm:$0xff] %vm7053_vm2, %v7972_v48  ;;  %v7974_v1 = vadd.f32 %v6939_v53, %v5580_v52  ;;  %v6947_v61 = vpop.f32.mrb[126].mxu0 }
 0x575   : > { %7175 = vst [vmem:[%s9629_s30 + $0x3d0] sm:$0xff] %v7973_v51  ;;  %v6949_v0 = vpop.f32.mrb[127].mxu0 }
 0x576   : > { %7176 = vst.msk [vmem:[%s9629_s30 + $0x3d8] sm:$0xff] %vm7053_vm2, %v7974_v1 }
 0x578   : > { %v5584_v54 = vpop.f32.mrb[124].mxu1 }
 0x579   : > { %v7975_v56 = vadd.f32 %v6943_v55, %v5584_v54  ;;  %v5586_v57 = vpop.f32.mrb[125].mxu1 }
 0x57a   : > { %v7976_v59 = vadd.f32 %v6945_v58, %v5586_v57  ;;  %v5588_v60 = vpop.f32.mrb[126].mxu1  ;;  %v6953_v4 = vpop.f32.mrb[128].mxu0 }
 0x57b   : > { %7177 = vst [vmem:[%s9629_s30 + $0x3e0] sm:$0xff] %v7975_v56  ;;  %v7977_v62 = vadd.f32 %v6947_v61, %v5588_v60  ;;  %v5590_v63 = vpop.f32.mrb[127].mxu1  ;;  %v6955_v7 = vpop.f32.mrb[129].mxu0 }
 0x57c   : > { %7178 = vst.msk [vmem:[%s9629_s30 + $0x3e8] sm:$0xff] %vm7053_vm2, %v7976_v59  ;;  %v7978_v2 = vadd.f32 %v6949_v0, %v5590_v63  ;;  %v6957_v10 = vpop.f32.mrb[130].mxu0 }
 0x57d   : > { %7179 = vst [vmem:[%s9629_s30 + $0x3f0] sm:$0xff] %v7977_v62  ;;  %v6959_v13 = vpop.f32.mrb[131].mxu0 }
 0x57e   : > { %7180 = vst.msk [vmem:[%s9629_s30 + $0x3f8] sm:$0xff] %vm7053_vm2, %v7978_v2 }
 0x580   : > { %v5594_v3 = vpop.f32.mrb[128].mxu1 }
 0x581   : > { %v7979_v5 = vadd.f32 %v6953_v4, %v5594_v3  ;;  %v5596_v6 = vpop.f32.mrb[129].mxu1 }
 0x582   : > { %v7980_v8 = vadd.f32 %v6955_v7, %v5596_v6  ;;  %v5598_v9 = vpop.f32.mrb[130].mxu1  ;;  %v6963_v16 = vpop.f32.mrb[132].mxu0 }
 0x583   : > { %7181 = vst [vmem:[%s9629_s30 + $0x400] sm:$0xff] %v7979_v5  ;;  %v7981_v11 = vadd.f32 %v6957_v10, %v5598_v9  ;;  %v5600_v12 = vpop.f32.mrb[131].mxu1  ;;  %v6965_v19 = vpop.f32.mrb[133].mxu0 }
 0x584   : > { %7182 = vst.msk [vmem:[%s9629_s30 + $0x408] sm:$0xff] %vm7053_vm2, %v7980_v8  ;;  %v7982_v14 = vadd.f32 %v6959_v13, %v5600_v12  ;;  %v6967_v22 = vpop.f32.mrb[134].mxu0 }
 0x585   : > { %7183 = vst [vmem:[%s9629_s30 + $0x410] sm:$0xff] %v7981_v11  ;;  %v6969_v25 = vpop.f32.mrb[135].mxu0 }
 0x586   : > { %7184 = vst.msk [vmem:[%s9629_s30 + $0x418] sm:$0xff] %vm7053_vm2, %v7982_v14 }
 0x588   : > { %v5604_v15 = vpop.f32.mrb[132].mxu1 }
 0x589   : > { %v7983_v17 = vadd.f32 %v6963_v16, %v5604_v15  ;;  %v5606_v18 = vpop.f32.mrb[133].mxu1 }
 0x58a   : > { %v7984_v20 = vadd.f32 %v6965_v19, %v5606_v18  ;;  %v5608_v21 = vpop.f32.mrb[134].mxu1  ;;  %v6973_v28 = vpop.f32.mrb[136].mxu0 }
 0x58b   : > { %7185 = vst [vmem:[%s9629_s30 + $0x420] sm:$0xff] %v7983_v17  ;;  %v7985_v23 = vadd.f32 %v6967_v22, %v5608_v21  ;;  %v5610_v24 = vpop.f32.mrb[135].mxu1  ;;  %v6975_v31 = vpop.f32.mrb[137].mxu0 }
 0x58c   : > { %7186 = vst.msk [vmem:[%s9629_s30 + $0x428] sm:$0xff] %vm7053_vm2, %v7984_v20  ;;  %v7986_v26 = vadd.f32 %v6969_v25, %v5610_v24  ;;  %v6977_v34 = vpop.f32.mrb[138].mxu0 }
 0x58d   : > { %7187 = vst [vmem:[%s9629_s30 + $0x430] sm:$0xff] %v7985_v23  ;;  %v6979_v37 = vpop.f32.mrb[139].mxu0 }
 0x58e   : > { %7188 = vst.msk [vmem:[%s9629_s30 + $0x438] sm:$0xff] %vm7053_vm2, %v7986_v26 }
 0x590   : > { %v5614_v27 = vpop.f32.mrb[136].mxu1 }
 0x591   : > { %v7987_v29 = vadd.f32 %v6973_v28, %v5614_v27  ;;  %v5616_v30 = vpop.f32.mrb[137].mxu1 }
 0x592   : > { %v7988_v32 = vadd.f32 %v6975_v31, %v5616_v30  ;;  %v5618_v33 = vpop.f32.mrb[138].mxu1  ;;  %v6983_v40 = vpop.f32.mrb[140].mxu0 }
 0x593   : > { %7189 = vst [vmem:[%s9629_s30 + $0x440] sm:$0xff] %v7987_v29  ;;  %v7989_v35 = vadd.f32 %v6977_v34, %v5618_v33  ;;  %v5620_v36 = vpop.f32.mrb[139].mxu1  ;;  %v6985_v43 = vpop.f32.mrb[141].mxu0 }
 0x594   : > { %7190 = vst.msk [vmem:[%s9629_s30 + $0x448] sm:$0xff] %vm7053_vm2, %v7988_v32  ;;  %v7990_v38 = vadd.f32 %v6979_v37, %v5620_v36  ;;  %v6987_v46 = vpop.f32.mrb[142].mxu0 }
 0x595   : > { %7191 = vst [vmem:[%s9629_s30 + $0x450] sm:$0xff] %v7989_v35  ;;  %v6989_v49 = vpop.f32.mrb[143].mxu0 }
 0x596   : > { %7192 = vst.msk [vmem:[%s9629_s30 + $0x458] sm:$0xff] %vm7053_vm2, %v7990_v38 }
 0x598   : > { %v5624_v39 = vpop.f32.mrb[140].mxu1 }
 0x599   : > { %v7991_v41 = vadd.f32 %v6983_v40, %v5624_v39  ;;  %v5626_v42 = vpop.f32.mrb[141].mxu1 }
 0x59a   : > { %v7992_v44 = vadd.f32 %v6985_v43, %v5626_v42  ;;  %v5628_v45 = vpop.f32.mrb[142].mxu1  ;;  %v6993_v52 = vpop.f32.mrb[144].mxu0 }
 0x59b   : > { %7193 = vst [vmem:[%s9629_s30 + $0x460] sm:$0xff] %v7991_v41  ;;  %v7993_v47 = vadd.f32 %v6987_v46, %v5628_v45  ;;  %v5630_v48 = vpop.f32.mrb[143].mxu1  ;;  %v6995_v54 = vpop.f32.mrb[145].mxu0 }
 0x59c   : > { %7194 = vst.msk [vmem:[%s9629_s30 + $0x468] sm:$0xff] %vm7053_vm2, %v7992_v44  ;;  %v7994_v50 = vadd.f32 %v6989_v49, %v5630_v48  ;;  %v6997_v57 = vpop.f32.mrb[146].mxu0 }
 0x59d   : > { %7195 = vst [vmem:[%s9629_s30 + $0x470] sm:$0xff] %v7993_v47  ;;  %v6999_v60 = vpop.f32.mrb[147].mxu0 }
 0x59e   : > { %7196 = vst.msk [vmem:[%s9629_s30 + $0x478] sm:$0xff] %vm7053_vm2, %v7994_v50 }
 0x5a0   : > { %v5634_v51 = vpop.f32.mrb[144].mxu1 }
 0x5a1   : > { %v7995_v53 = vadd.f32 %v6993_v52, %v5634_v51  ;;  %v5636_v1 = vpop.f32.mrb[145].mxu1 }
 0x5a2   : > { %v7996_v55 = vadd.f32 %v6995_v54, %v5636_v1  ;;  %v5638_v56 = vpop.f32.mrb[146].mxu1  ;;  %v7003_v63 = vpop.f32.mrb[148].mxu0 }
 0x5a3   : > { %7197 = vst [vmem:[%s9629_s30 + $0x480] sm:$0xff] %v7995_v53  ;;  %v7997_v58 = vadd.f32 %v6997_v57, %v5638_v56  ;;  %v5640_v59 = vpop.f32.mrb[147].mxu1  ;;  %v7005_v3 = vpop.f32.mrb[149].mxu0 }
 0x5a4   : > { %7198 = vst.msk [vmem:[%s9629_s30 + $0x488] sm:$0xff] %vm7053_vm2, %v7996_v55  ;;  %v7998_v61 = vadd.f32 %v6999_v60, %v5640_v59  ;;  %v7007_v6 = vpop.f32.mrb[150].mxu0 }
 0x5a5   : > { %7199 = vst [vmem:[%s9629_s30 + $0x490] sm:$0xff] %v7997_v58  ;;  %v7009_v9 = vpop.f32.mrb[151].mxu0 }
 0x5a6   : > { %7200 = vst.msk [vmem:[%s9629_s30 + $0x498] sm:$0xff] %vm7053_vm2, %v7998_v61 }
 0x5a8   : > { %v5644_v62 = vpop.f32.mrb[148].mxu1 }
 0x5a9   : > { %v7999_v0 = vadd.f32 %v7003_v63, %v5644_v62  ;;  %v5646_v2 = vpop.f32.mrb[149].mxu1 }
 0x5aa   : > { %v8000_v4 = vadd.f32 %v7005_v3, %v5646_v2  ;;  %v5648_v5 = vpop.f32.mrb[150].mxu1  ;;  %v7013_v12 = vpop.f32.mrb[152].mxu0 }
 0x5ab   : > { %7201 = vst [vmem:[%s9629_s30 + $0x4a0] sm:$0xff] %v7999_v0  ;;  %v8001_v7 = vadd.f32 %v7007_v6, %v5648_v5  ;;  %v5650_v8 = vpop.f32.mrb[151].mxu1  ;;  %v7015_v15 = vpop.f32.mrb[153].mxu0 }
 0x5ac   : > { %7202 = vst.msk [vmem:[%s9629_s30 + $0x4a8] sm:$0xff] %vm7053_vm2, %v8000_v4  ;;  %v8002_v10 = vadd.f32 %v7009_v9, %v5650_v8  ;;  %v7017_v18 = vpop.f32.mrb[154].mxu0 }
 0x5ad   : > { %7203 = vst [vmem:[%s9629_s30 + $0x4b0] sm:$0xff] %v8001_v7  ;;  %v7019_v21 = vpop.f32.mrb[155].mxu0 }
 0x5ae   : > { %7204 = vst.msk [vmem:[%s9629_s30 + $0x4b8] sm:$0xff] %vm7053_vm2, %v8002_v10 }
 0x5b0   : > { %v5654_v11 = vpop.f32.mrb[152].mxu1 }
 0x5b1   : > { %v8003_v13 = vadd.f32 %v7013_v12, %v5654_v11  ;;  %v5656_v14 = vpop.f32.mrb[153].mxu1 }
 0x5b2   : > { %v8004_v16 = vadd.f32 %v7015_v15, %v5656_v14  ;;  %v5658_v17 = vpop.f32.mrb[154].mxu1  ;;  %v7023_v24 = vpop.f32.mrb[156].mxu0 }
 0x5b3   : > { %7205 = vst [vmem:[%s9629_s30 + $0x4c0] sm:$0xff] %v8003_v13  ;;  %v8005_v19 = vadd.f32 %v7017_v18, %v5658_v17  ;;  %v5660_v20 = vpop.f32.mrb[155].mxu1  ;;  %v7025_v27 = vpop.f32.mrb[157].mxu0 }
 0x5b4   : > { %7206 = vst.msk [vmem:[%s9629_s30 + $0x4c8] sm:$0xff] %vm7053_vm2, %v8004_v16  ;;  %v8006_v22 = vadd.f32 %v7019_v21, %v5660_v20  ;;  %v7027_v30 = vpop.f32.mrb[158].mxu0 }
 0x5b5   : > { %7207 = vst [vmem:[%s9629_s30 + $0x4d0] sm:$0xff] %v8005_v19  ;;  %v7029_v33 = vpop.f32.mrb[159].mxu0 }
 0x5b6   : > { %7208 = vst.msk [vmem:[%s9629_s30 + $0x4d8] sm:$0xff] %vm7053_vm2, %v8006_v22 }
 0x5b8   : > { %v5664_v23 = vpop.f32.mrb[156].mxu1 }
 0x5b9   : > { %v8007_v25 = vadd.f32 %v7023_v24, %v5664_v23  ;;  %v5666_v26 = vpop.f32.mrb[157].mxu1 }
 0x5ba   : > { %v8008_v28 = vadd.f32 %v7025_v27, %v5666_v26  ;;  %v5668_v29 = vpop.f32.mrb[158].mxu1  ;;  %v7033_v36 = vpop.f32.mrb[160].mxu0 }
 0x5bb   : > { %7209 = vst [vmem:[%s9629_s30 + $0x4e0] sm:$0xff] %v8007_v25  ;;  %v8009_v31 = vadd.f32 %v7027_v30, %v5668_v29  ;;  %v5670_v32 = vpop.f32.mrb[159].mxu1  ;;  %v7035_v39 = vpop.f32.mrb[161].mxu0 }
 0x5bc   : > { %7210 = vst.msk [vmem:[%s9629_s30 + $0x4e8] sm:$0xff] %vm7053_vm2, %v8008_v28  ;;  %v8010_v34 = vadd.f32 %v7029_v33, %v5670_v32  ;;  %v7037_v42 = vpop.f32.mrb[162].mxu0 }
 0x5bd   : > { %7211 = vst [vmem:[%s9629_s30 + $0x4f0] sm:$0xff] %v8009_v31  ;;  %v7039_v45 = vpop.f32.mrb[163].mxu0 }
 0x5be   : > { %7212 = vst.msk [vmem:[%s9629_s30 + $0x4f8] sm:$0xff] %vm7053_vm2, %v8010_v34 }
 0x5c0   : > { %v5674_v35 = vpop.f32.mrb[160].mxu1 }
 0x5c1   : > { %v8011_v37 = vadd.f32 %v7033_v36, %v5674_v35  ;;  %v5676_v38 = vpop.f32.mrb[161].mxu1 }
 0x5c2   : > { %v8012_v40 = vadd.f32 %v7035_v39, %v5676_v38  ;;  %v5678_v41 = vpop.f32.mrb[162].mxu1  ;;  %v7043_v48 = vpop.f32.mrb[164].mxu0 }
 0x5c3   : > { %7213 = vst [vmem:[%s9629_s30 + $0x500] sm:$0xff] %v8011_v37  ;;  %v8013_v43 = vadd.f32 %v7037_v42, %v5678_v41  ;;  %v5680_v44 = vpop.f32.mrb[163].mxu1  ;;  %v7045_v51 = vpop.f32.mrb[165].mxu0 }
 0x5c4   : > { %7214 = vst.msk [vmem:[%s9629_s30 + $0x508] sm:$0xff] %vm7053_vm2, %v8012_v40  ;;  %v8014_v46 = vadd.f32 %v7039_v45, %v5680_v44  ;;  %v7047_v1 = vpop.f32.mrb[166].mxu0 }
 0x5c5   : > { %7215 = vst [vmem:[%s9629_s30 + $0x510] sm:$0xff] %v8013_v43  ;;  %v7049_v56 = vpop.f32.mrb[167].mxu0 }
 0x5c6   : > { %7216 = vst.msk [vmem:[%s9629_s30 + $0x518] sm:$0xff] %vm7053_vm2, %v8014_v46 }
 0x5c8   : > { %v5684_v47 = vpop.f32.mrb[164].mxu1 }
 0x5c9   : > { %v8015_v49 = vadd.f32 %v7043_v48, %v5684_v47  ;;  %v5686_v50 = vpop.f32.mrb[165].mxu1 }
 0x5ca   : > { %v8016_v52 = vadd.f32 %v7045_v51, %v5686_v50  ;;  %v5688_v53 = vpop.f32.mrb[166].mxu1 }
 0x5cb   : > { %7217 = vst [vmem:[%s9629_s30 + $0x520] sm:$0xff] %v8015_v49  ;;  %v8017_v54 = vadd.f32 %v7047_v1, %v5688_v53  ;;  %v5690_v55 = vpop.f32.mrb[167].mxu1 }
 0x5cc   : > { %7218 = vst.msk [vmem:[%s9629_s30 + $0x528] sm:$0xff] %vm7053_vm2, %v8016_v52  ;;  %v8018_v57 = vadd.f32 %v7049_v56, %v5690_v55 }
 0x5cd   : > { %7219 = vst [vmem:[%s9629_s30 + $0x530] sm:$0xff] %v8017_v54 }
 0x5ce   : > { %7220 = vst.msk [vmem:[%s9629_s30 + $0x538] sm:$0xff] %vm7053_vm2, %v8018_v57 }
 0x5cf PF: > { %s15_s14 = sadd.s32 1, %s9505_s14   ;;  %s11546_s9 = smov %s9489_s10 }
 0x5d0   : > { %p12_p7 = scmp.ge.s32.totalorder %s15_s14, 4   ;;  %s11547_s10 = smov %s9493_s11 }
 0x5d1   : > { %s11548_s11 = smov %s9571_s20  ;;  %s11549_s12 = smov %s9501_s13 }
 0x5d2   : > { %s11550_s13 = smov %s11552_s16  ;;  %14 = sbr.rel (!%p12_p7) target bundleno = 4 (0x4), region = 75 }
 0x5d9   :  { %7253 = vsyncpa [#allocation4], 1 }
 0x5da   :  { %7255 = vsyncpa [#allocation4 + $0x1], 1 }

</bundles_post_ra>
